<compile_context>
chip_gen: v7x
topology: tpu7x:2x2x1
jax: 0.10.0
libtpu: 0.0.40
codegen_flags: <defaults>
</compile_context>

<pallas_src>
import jax
import jax.numpy as jnp
from jax.experimental import pallas as pl
from jax.experimental.pallas import tpu as pltpu

NEG_SLOPE = 0.01        # nn.LeakyReLU default
VRANGE = 100.0
NETSCALE = 1000.0
P5, P6, P7, P8 = 0.0873, 0.0089, 0.0052, 0.0316

RAW_HID = 200           # module hidden width
HID = 256               # lane-aligned padded hidden width
OUT_PAD = 128           # padded final-layer width (only column 0 is real)
BLOCK_B = 128           # batch rows per grid tile


def _odefunc_kernel(y_ref, v_ref, *rest):
    """rest = (w1, b1, ..., w7, b7, out_ref). Weights bf16 (in,out), biases f32 (1,out)."""
    out_ref = rest[-1]
    wb = rest[:-1]

    y = y_ref[...]                      # (Bt, 2) f32
    v = v_ref[...]                      # (Bt, 1) f32
    a = y[:, 0:1]                       # (Bt, 1)
    r = y[:, 1:2]                       # (Bt, 1)

    # Scalar (per-row) gating dynamics — pure f32 VPU/EUP work.
    nv = v * (1.0 / VRANGE)
    k3 = P5 * jnp.exp(P6 * v)
    k4 = P7 * jnp.exp(-P8 * v)
    drdt = -k3 * r + k4 * (1.0 - r)     # (Bt, 1)

    # MLP input rows [nv, a] built by lane select (no concat/stack needed).
    col2 = jax.lax.broadcasted_iota(jnp.int32, (y.shape[0], 2), 1)
    h = jnp.where(col2 == 0, nv, a).astype(jnp.float32)       # (Bt, 2)

    n_layers = len(wb) // 2
    for i in range(n_layers):
        w = wb[2 * i][...]              # bf16 (in, out)  -- VMEM-resident
        b = wb[2 * i + 1][...]          # f32  (1, out)
        h = jnp.dot(h.astype(jnp.bfloat16), w,
                    preferred_element_type=jnp.float32) + b   # f32 accumulate
        if i < n_layers - 1:
            h = jnp.where(h > 0, h, NEG_SLOPE * h)            # LeakyReLU(0.01)

    dadt = h[:, 0:1] * (1.0 / NETSCALE)                       # (Bt, 1)

    # out rows = [dadt, drdt]
    out_ref[...] = jnp.where(col2 == 0, dadt, drdt).astype(out_ref.dtype)


def init_params(key):
    """Deterministic init matching the module: W ~ N(0, 0.1), b = 0.

    Weights are stored as (in_features, out_features) — the transpose of the
    PyTorch (out, in) convention — so the kernel computes h @ W + b.
    """
    dims = [(2, RAW_HID)] + [(RAW_HID, RAW_HID)] * 5 + [(RAW_HID, 1)]
    params = []
    for (din, dout) in dims:
        key, sub = jax.random.split(key)
        w = 0.1 * jax.random.normal(sub, (din, dout), dtype=jnp.float32)
        b = jnp.zeros((1, dout), dtype=jnp.float32)
        params.append((w, b))
    return params


def pad_params(params):
    """Zero-pad to lane-aligned shapes and cast weights to bf16 (biases stay f32)."""
    padded = []
    for (w, b) in params:
        din, dout = w.shape
        pin = din if din == 2 else HID
        pout = OUT_PAD if dout == 1 else HID
        wp = jnp.zeros((pin, pout), jnp.float32).at[:din, :dout].set(w)
        bp = jnp.zeros((1, pout), jnp.float32).at[:, :dout].set(b)
        padded.append((wp.astype(jnp.bfloat16), bp))
    return padded


def odefunc1_6_forward(y, v, params_padded, *, block_b=BLOCK_B):
    """y: (B, 2) f32 states [a, r]; v: (B, 1) f32 voltages -> (B, 2) f32 [dadt, drdt].

    Rows are independent; each row reproduces ODEFunc1_6.forward for that state
    and voltage. B is padded internally to a multiple of `block_b`.
    """
    y = y.astype(jnp.float32)
    v = v.astype(jnp.float32)
    B = y.shape[0]
    Bp = ((B + block_b - 1) // block_b) * block_b
    if Bp != B:
        y = jnp.pad(y, ((0, Bp - B), (0, 0)))
        v = jnp.pad(v, ((0, Bp - B), (0, 0)))

    flat = [y, v]
    in_specs = [
        pl.BlockSpec((block_b, 2), lambda i: (i, 0)),   # y tile
        pl.BlockSpec((block_b, 1), lambda i: (i, 0)),   # v tile
    ]
    for (w, b) in params_padded:
        flat += [w, b]
        # Full-array blocks with a constant index_map: DMA'd once, VMEM-resident.
        in_specs.append(pl.BlockSpec(w.shape, lambda i: (0, 0)))
        in_specs.append(pl.BlockSpec(b.shape, lambda i: (0, 0)))

    out = pl.pallas_call(
        _odefunc_kernel,
        out_shape=jax.ShapeDtypeStruct((Bp, 2), jnp.float32),
        grid=(Bp // block_b,),
        in_specs=in_specs,
        out_specs=pl.BlockSpec((block_b, 2), lambda i: (i, 0)),
        compiler_params=pltpu.CompilerParams(
            dimension_semantics=("parallel",)),     # v7x: shard tiles across 2 TCs
    )(*flat)
    return out[:B]


def odefunc1_6_reference(y, v, params_padded):
    """Pure-JAX reference with the same numerics (bf16 weights, f32 accumulation)."""
    y = y.astype(jnp.float32)
    vv = v.astype(jnp.float32)
    a = y[:, 0:1]
    r = y[:, 1:2]
    nv = vv / VRANGE
    k3 = P5 * jnp.exp(P6 * vv)
    k4 = P7 * jnp.exp(-P8 * vv)
    drdt = -k3 * r + k4 * (1.0 - r)
    h = jnp.concatenate([nv, a], axis=1)
    n = len(params_padded)
    for i, (w, b) in enumerate(params_padded):
        h = jnp.dot(h.astype(jnp.bfloat16), w,
                    preferred_element_type=jnp.float32) + b
        if i < n - 1:
            h = jnp.where(h > 0, h, NEG_SLOPE * h)
    dadt = h[:, 0:1] / NETSCALE
    return jnp.concatenate([dadt, drdt], axis=1)


if __name__ == "__main__":
    key = jax.random.PRNGKey(0)
    kp, ky, kv = jax.random.split(key, 3)
    params = init_params(kp)
    params_padded = pad_params(params)

    # Batched demo: 256 independent ODE evaluations (e.g. many solver states /
    # time points) in a single pallas_call; two 128-row tiles over the grid.
    B = 256
    y = jax.random.uniform(ky, (B, 2), dtype=jnp.float32)          # [a, r] in [0, 1)
    v = -80.0 + 5.0 * jax.random.normal(kv, (B, 1), dtype=jnp.float32)

    out = jax.block_until_ready(odefunc1_6_forward(y, v, params_padded))
    ref = odefunc1_6_reference(y, v, params_padded)
    assert out.shape == (B, 2)
    assert jnp.allclose(out, ref, atol=1e-5, rtol=1e-3), (out, ref)

    # Single-state call matching the module's (1, 2) forward exactly
    # (voltage = the module's -80 mV fallback).
    y1 = y[:1]
    v1 = jnp.array([[-80.0]], dtype=jnp.float32)
    out1 = jax.block_until_ready(odefunc1_6_forward(y1, v1, params_padded))
    ref1 = odefunc1_6_reference(y1, v1, params_padded)
    assert out1.shape == (1, 2)
    assert jnp.allclose(out1, ref1, atol=1e-5, rtol=1e-3), (out1, ref1)

    print("KERNEL_OK")
</pallas_src>

<mosaic_0001>
module attributes {stable_mosaic.version = 11 : i64} {
  func.func @_odefunc_kernel(%arg0: i32, %arg1: memref<128x2xf32, #tpu.memory_space<vmem>>, %arg2: memref<128x1xf32, #tpu.memory_space<vmem>>, %arg3: memref<2x256xbf16, #tpu.memory_space<vmem>>, %arg4: memref<1x256xf32, #tpu.memory_space<vmem>>, %arg5: memref<256x256xbf16, #tpu.memory_space<vmem>>, %arg6: memref<1x256xf32, #tpu.memory_space<vmem>>, %arg7: memref<256x256xbf16, #tpu.memory_space<vmem>>, %arg8: memref<1x256xf32, #tpu.memory_space<vmem>>, %arg9: memref<256x256xbf16, #tpu.memory_space<vmem>>, %arg10: memref<1x256xf32, #tpu.memory_space<vmem>>, %arg11: memref<256x256xbf16, #tpu.memory_space<vmem>>, %arg12: memref<1x256xf32, #tpu.memory_space<vmem>>, %arg13: memref<256x256xbf16, #tpu.memory_space<vmem>>, %arg14: memref<1x256xf32, #tpu.memory_space<vmem>>, %arg15: memref<256x128xbf16, #tpu.memory_space<vmem>>, %arg16: memref<1x128xf32, #tpu.memory_space<vmem>>, %arg17: memref<128x2xf32, #tpu.memory_space<vmem>>) attributes {dimension_semantics = [#tpu.dimension_semantics<parallel>], iteration_bounds = array<i64: 2>, scalar_prefetch = 0 : i64, scratch_operands = 0 : i64, tpu.core_type = #tpu.core_type<tc>, window_params = [{transform_indices = @transform_0, window_bounds = array<i64: 128, 2>}, {transform_indices = @transform_1, window_bounds = array<i64: 128, 1>}, {pipeline_mode = #tpu.pipeline_mode<synchronous>, transform_indices = @transform_2, window_bounds = array<i64: 2, 256>}, {pipeline_mode = #tpu.pipeline_mode<synchronous>, transform_indices = @transform_3, window_bounds = array<i64: 1, 256>}, {pipeline_mode = #tpu.pipeline_mode<synchronous>, transform_indices = @transform_4, window_bounds = array<i64: 256, 256>}, {pipeline_mode = #tpu.pipeline_mode<synchronous>, transform_indices = @transform_5, window_bounds = array<i64: 1, 256>}, {pipeline_mode = #tpu.pipeline_mode<synchronous>, transform_indices = @transform_6, window_bounds = array<i64: 256, 256>}, {pipeline_mode = #tpu.pipeline_mode<synchronous>, transform_indices = @transform_7, window_bounds = array<i64: 1, 256>}, {pipeline_mode = #tpu.pipeline_mode<synchronous>, transform_indices = @transform_8, window_bounds = array<i64: 256, 256>}, {pipeline_mode = #tpu.pipeline_mode<synchronous>, transform_indices = @transform_9, window_bounds = array<i64: 1, 256>}, {pipeline_mode = #tpu.pipeline_mode<synchronous>, transform_indices = @transform_10, window_bounds = array<i64: 256, 256>}, {pipeline_mode = #tpu.pipeline_mode<synchronous>, transform_indices = @transform_11, window_bounds = array<i64: 1, 256>}, {pipeline_mode = #tpu.pipeline_mode<synchronous>, transform_indices = @transform_12, window_bounds = array<i64: 256, 256>}, {pipeline_mode = #tpu.pipeline_mode<synchronous>, transform_indices = @transform_13, window_bounds = array<i64: 1, 256>}, {pipeline_mode = #tpu.pipeline_mode<synchronous>, transform_indices = @transform_14, window_bounds = array<i64: 256, 128>}, {pipeline_mode = #tpu.pipeline_mode<synchronous>, transform_indices = @transform_15, window_bounds = array<i64: 1, 128>}, {transform_indices = @transform_16, window_bounds = array<i64: 128, 2>}]} {
    %c0 = arith.constant 0 : index
    %c0_0 = arith.constant 0 : index
    %0 = vector.load %arg1[%c0, %c0_0] : memref<128x2xf32, #tpu.memory_space<vmem>>, vector<128x2xf32>
    %c0_1 = arith.constant 0 : index
    %c0_2 = arith.constant 0 : index
    %1 = vector.load %arg2[%c0_1, %c0_2] : memref<128x1xf32, #tpu.memory_space<vmem>>, vector<128x1xf32>
    %2 = vector.extract_strided_slice %0 {offsets = [0, 0], sizes = [128, 1], strides = [1, 1]} : vector<128x2xf32> to vector<128x1xf32>
    %3 = vector.extract_strided_slice %0 {offsets = [0, 1], sizes = [128, 1], strides = [1, 1]} : vector<128x2xf32> to vector<128x1xf32>
    %cst = arith.constant 0.00999999977 : f32
    %4 = vector.broadcast %cst : f32 to vector<128x1xf32>
    %5 = arith.mulf %1, %4 : vector<128x1xf32>
    %cst_3 = arith.constant 0.00889999978 : f32
    %6 = vector.broadcast %cst_3 : f32 to vector<128x1xf32>
    %7 = arith.mulf %6, %1 : vector<128x1xf32>
    %8 = math.exp %7 : vector<128x1xf32>
    %cst_4 = arith.constant 8.730000e-02 : f32
    %9 = vector.broadcast %cst_4 : f32 to vector<128x1xf32>
    %10 = arith.mulf %9, %8 : vector<128x1xf32>
    %cst_5 = arith.constant -3.160000e-02 : f32
    %11 = vector.broadcast %cst_5 : f32 to vector<128x1xf32>
    %12 = arith.mulf %11, %1 : vector<128x1xf32>
    %13 = math.exp %12 : vector<128x1xf32>
    %cst_6 = arith.constant 5.200000e-03 : f32
    %14 = vector.broadcast %cst_6 : f32 to vector<128x1xf32>
    %15 = arith.mulf %14, %13 : vector<128x1xf32>
    %cst_7 = arith.constant 0.000000e+00 : f32
    %16 = vector.broadcast %cst_7 : f32 to vector<128x1xf32>
    %17 = arith.subf %16, %10 : vector<128x1xf32>
    %18 = arith.mulf %17, %3 : vector<128x1xf32>
    %cst_8 = arith.constant 1.000000e+00 : f32
    %19 = vector.broadcast %cst_8 : f32 to vector<128x1xf32>
    %20 = arith.subf %19, %3 : vector<128x1xf32>
    %21 = arith.mulf %15, %20 : vector<128x1xf32>
    %22 = arith.addf %18, %21 : vector<128x1xf32>
    %23 = tpu.iota {dimensions = array<i32: 1>} : vector<128x2xi32>
    %c0_i32 = arith.constant 0 : i32
    %24 = vector.broadcast %c0_i32 : i32 to vector<128x2xi32>
    %25 = arith.cmpi eq, %23, %24 : vector<128x2xi32>
    %26 = vector.shape_cast %5 : vector<128x1xf32> to vector<128x1xf32>
    %27 = vector.broadcast %26 : vector<128x1xf32> to vector<128x2xf32>
    %28 = vector.shape_cast %2 : vector<128x1xf32> to vector<128x1xf32>
    %29 = vector.broadcast %28 : vector<128x1xf32> to vector<128x2xf32>
    %30 = arith.select %25, %27, %29 : vector<128x2xi1>, vector<128x2xf32>
    %c0_9 = arith.constant 0 : index
    %c0_10 = arith.constant 0 : index
    %31 = vector.load %arg3[%c0_9, %c0_10] : memref<2x256xbf16, #tpu.memory_space<vmem>>, vector<2x256xbf16>
    %c0_11 = arith.constant 0 : index
    %c0_12 = arith.constant 0 : index
    %32 = vector.load %arg4[%c0_11, %c0_12] : memref<1x256xf32, #tpu.memory_space<vmem>>, vector<1x256xf32>
    %33 = arith.truncf %30 : vector<128x2xf32> to vector<128x2xbf16>
    %cst_13 = arith.constant dense<0.000000e+00> : vector<128x256xf32>
    %34 = tpu.matmul %33, %31, %cst_13 {dimension_numbers = #tpu.dot_dimension_numbers<[1], [0], [0], [1], [0, 0, 1, 1], [], []>} : vector<128x2xbf16>, vector<2x256xbf16>, vector<128x256xf32> -> vector<128x256xf32>
    %35 = vector.broadcast %32 : vector<1x256xf32> to vector<128x256xf32>
    %36 = arith.addf %34, %35 : vector<128x256xf32>
    %cst_14 = arith.constant 0.000000e+00 : f32
    %37 = vector.broadcast %cst_14 : f32 to vector<128x256xf32>
    %38 = arith.cmpf ogt, %36, %37 : vector<128x256xf32>
    %cst_15 = arith.constant 0.00999999977 : f32
    %39 = vector.broadcast %cst_15 : f32 to vector<128x256xf32>
    %40 = arith.mulf %39, %36 : vector<128x256xf32>
    %41 = arith.select %38, %36, %40 : vector<128x256xi1>, vector<128x256xf32>
    %c0_16 = arith.constant 0 : index
    %c0_17 = arith.constant 0 : index
    %42 = vector.load %arg5[%c0_16, %c0_17] : memref<256x256xbf16, #tpu.memory_space<vmem>>, vector<256x256xbf16>
    %c0_18 = arith.constant 0 : index
    %c0_19 = arith.constant 0 : index
    %43 = vector.load %arg6[%c0_18, %c0_19] : memref<1x256xf32, #tpu.memory_space<vmem>>, vector<1x256xf32>
    %44 = arith.truncf %41 : vector<128x256xf32> to vector<128x256xbf16>
    %cst_20 = arith.constant dense<0.000000e+00> : vector<128x256xf32>
    %45 = tpu.matmul %44, %42, %cst_20 {dimension_numbers = #tpu.dot_dimension_numbers<[1], [0], [0], [1], [0, 0, 1, 1], [], []>} : vector<128x256xbf16>, vector<256x256xbf16>, vector<128x256xf32> -> vector<128x256xf32>
    %46 = vector.broadcast %43 : vector<1x256xf32> to vector<128x256xf32>
    %47 = arith.addf %45, %46 : vector<128x256xf32>
    %cst_21 = arith.constant 0.000000e+00 : f32
    %48 = vector.broadcast %cst_21 : f32 to vector<128x256xf32>
    %49 = arith.cmpf ogt, %47, %48 : vector<128x256xf32>
    %cst_22 = arith.constant 0.00999999977 : f32
    %50 = vector.broadcast %cst_22 : f32 to vector<128x256xf32>
    %51 = arith.mulf %50, %47 : vector<128x256xf32>
    %52 = arith.select %49, %47, %51 : vector<128x256xi1>, vector<128x256xf32>
    %c0_23 = arith.constant 0 : index
    %c0_24 = arith.constant 0 : index
    %53 = vector.load %arg7[%c0_23, %c0_24] : memref<256x256xbf16, #tpu.memory_space<vmem>>, vector<256x256xbf16>
    %c0_25 = arith.constant 0 : index
    %c0_26 = arith.constant 0 : index
    %54 = vector.load %arg8[%c0_25, %c0_26] : memref<1x256xf32, #tpu.memory_space<vmem>>, vector<1x256xf32>
    %55 = arith.truncf %52 : vector<128x256xf32> to vector<128x256xbf16>
    %cst_27 = arith.constant dense<0.000000e+00> : vector<128x256xf32>
    %56 = tpu.matmul %55, %53, %cst_27 {dimension_numbers = #tpu.dot_dimension_numbers<[1], [0], [0], [1], [0, 0, 1, 1], [], []>} : vector<128x256xbf16>, vector<256x256xbf16>, vector<128x256xf32> -> vector<128x256xf32>
    %57 = vector.broadcast %54 : vector<1x256xf32> to vector<128x256xf32>
    %58 = arith.addf %56, %57 : vector<128x256xf32>
    %cst_28 = arith.constant 0.000000e+00 : f32
    %59 = vector.broadcast %cst_28 : f32 to vector<128x256xf32>
    %60 = arith.cmpf ogt, %58, %59 : vector<128x256xf32>
    %cst_29 = arith.constant 0.00999999977 : f32
    %61 = vector.broadcast %cst_29 : f32 to vector<128x256xf32>
    %62 = arith.mulf %61, %58 : vector<128x256xf32>
    %63 = arith.select %60, %58, %62 : vector<128x256xi1>, vector<128x256xf32>
    %c0_30 = arith.constant 0 : index
    %c0_31 = arith.constant 0 : index
    %64 = vector.load %arg9[%c0_30, %c0_31] : memref<256x256xbf16, #tpu.memory_space<vmem>>, vector<256x256xbf16>
    %c0_32 = arith.constant 0 : index
    %c0_33 = arith.constant 0 : index
    %65 = vector.load %arg10[%c0_32, %c0_33] : memref<1x256xf32, #tpu.memory_space<vmem>>, vector<1x256xf32>
    %66 = arith.truncf %63 : vector<128x256xf32> to vector<128x256xbf16>
    %cst_34 = arith.constant dense<0.000000e+00> : vector<128x256xf32>
    %67 = tpu.matmul %66, %64, %cst_34 {dimension_numbers = #tpu.dot_dimension_numbers<[1], [0], [0], [1], [0, 0, 1, 1], [], []>} : vector<128x256xbf16>, vector<256x256xbf16>, vector<128x256xf32> -> vector<128x256xf32>
    %68 = vector.broadcast %65 : vector<1x256xf32> to vector<128x256xf32>
    %69 = arith.addf %67, %68 : vector<128x256xf32>
    %cst_35 = arith.constant 0.000000e+00 : f32
    %70 = vector.broadcast %cst_35 : f32 to vector<128x256xf32>
    %71 = arith.cmpf ogt, %69, %70 : vector<128x256xf32>
    %cst_36 = arith.constant 0.00999999977 : f32
    %72 = vector.broadcast %cst_36 : f32 to vector<128x256xf32>
    %73 = arith.mulf %72, %69 : vector<128x256xf32>
    %74 = arith.select %71, %69, %73 : vector<128x256xi1>, vector<128x256xf32>
    %c0_37 = arith.constant 0 : index
    %c0_38 = arith.constant 0 : index
    %75 = vector.load %arg11[%c0_37, %c0_38] : memref<256x256xbf16, #tpu.memory_space<vmem>>, vector<256x256xbf16>
    %c0_39 = arith.constant 0 : index
    %c0_40 = arith.constant 0 : index
    %76 = vector.load %arg12[%c0_39, %c0_40] : memref<1x256xf32, #tpu.memory_space<vmem>>, vector<1x256xf32>
    %77 = arith.truncf %74 : vector<128x256xf32> to vector<128x256xbf16>
    %cst_41 = arith.constant dense<0.000000e+00> : vector<128x256xf32>
    %78 = tpu.matmul %77, %75, %cst_41 {dimension_numbers = #tpu.dot_dimension_numbers<[1], [0], [0], [1], [0, 0, 1, 1], [], []>} : vector<128x256xbf16>, vector<256x256xbf16>, vector<128x256xf32> -> vector<128x256xf32>
    %79 = vector.broadcast %76 : vector<1x256xf32> to vector<128x256xf32>
    %80 = arith.addf %78, %79 : vector<128x256xf32>
    %cst_42 = arith.constant 0.000000e+00 : f32
    %81 = vector.broadcast %cst_42 : f32 to vector<128x256xf32>
    %82 = arith.cmpf ogt, %80, %81 : vector<128x256xf32>
    %cst_43 = arith.constant 0.00999999977 : f32
    %83 = vector.broadcast %cst_43 : f32 to vector<128x256xf32>
    %84 = arith.mulf %83, %80 : vector<128x256xf32>
    %85 = arith.select %82, %80, %84 : vector<128x256xi1>, vector<128x256xf32>
    %c0_44 = arith.constant 0 : index
    %c0_45 = arith.constant 0 : index
    %86 = vector.load %arg13[%c0_44, %c0_45] : memref<256x256xbf16, #tpu.memory_space<vmem>>, vector<256x256xbf16>
    %c0_46 = arith.constant 0 : index
    %c0_47 = arith.constant 0 : index
    %87 = vector.load %arg14[%c0_46, %c0_47] : memref<1x256xf32, #tpu.memory_space<vmem>>, vector<1x256xf32>
    %88 = arith.truncf %85 : vector<128x256xf32> to vector<128x256xbf16>
    %cst_48 = arith.constant dense<0.000000e+00> : vector<128x256xf32>
    %89 = tpu.matmul %88, %86, %cst_48 {dimension_numbers = #tpu.dot_dimension_numbers<[1], [0], [0], [1], [0, 0, 1, 1], [], []>} : vector<128x256xbf16>, vector<256x256xbf16>, vector<128x256xf32> -> vector<128x256xf32>
    %90 = vector.broadcast %87 : vector<1x256xf32> to vector<128x256xf32>
    %91 = arith.addf %89, %90 : vector<128x256xf32>
    %cst_49 = arith.constant 0.000000e+00 : f32
    %92 = vector.broadcast %cst_49 : f32 to vector<128x256xf32>
    %93 = arith.cmpf ogt, %91, %92 : vector<128x256xf32>
    %cst_50 = arith.constant 0.00999999977 : f32
    %94 = vector.broadcast %cst_50 : f32 to vector<128x256xf32>
    %95 = arith.mulf %94, %91 : vector<128x256xf32>
    %96 = arith.select %93, %91, %95 : vector<128x256xi1>, vector<128x256xf32>
    %c0_51 = arith.constant 0 : index
    %c0_52 = arith.constant 0 : index
    %97 = vector.load %arg15[%c0_51, %c0_52] : memref<256x128xbf16, #tpu.memory_space<vmem>>, vector<256x128xbf16>
    %c0_53 = arith.constant 0 : index
    %c0_54 = arith.constant 0 : index
    %98 = vector.load %arg16[%c0_53, %c0_54] : memref<1x128xf32, #tpu.memory_space<vmem>>, vector<1x128xf32>
    %99 = arith.truncf %96 : vector<128x256xf32> to vector<128x256xbf16>
    %cst_55 = arith.constant dense<0.000000e+00> : vector<128x128xf32>
    %100 = tpu.matmul %99, %97, %cst_55 {dimension_numbers = #tpu.dot_dimension_numbers<[1], [0], [0], [1], [0, 0, 1, 1], [], []>} : vector<128x256xbf16>, vector<256x128xbf16>, vector<128x128xf32> -> vector<128x128xf32>
    %101 = vector.broadcast %98 : vector<1x128xf32> to vector<128x128xf32>
    %102 = arith.addf %100, %101 : vector<128x128xf32>
    %103 = vector.extract_strided_slice %102 {offsets = [0, 0], sizes = [128, 1], strides = [1, 1]} : vector<128x128xf32> to vector<128x1xf32>
    %cst_56 = arith.constant 1.000000e-03 : f32
    %104 = vector.broadcast %cst_56 : f32 to vector<128x1xf32>
    %105 = arith.mulf %103, %104 : vector<128x1xf32>
    %c0_i32_57 = arith.constant 0 : i32
    %106 = vector.broadcast %c0_i32_57 : i32 to vector<128x2xi32>
    %107 = arith.cmpi eq, %23, %106 : vector<128x2xi32>
    %108 = vector.shape_cast %105 : vector<128x1xf32> to vector<128x1xf32>
    %109 = vector.broadcast %108 : vector<128x1xf32> to vector<128x2xf32>
    %110 = vector.shape_cast %22 : vector<128x1xf32> to vector<128x1xf32>
    %111 = vector.broadcast %110 : vector<128x1xf32> to vector<128x2xf32>
    %112 = arith.select %107, %109, %111 : vector<128x2xi1>, vector<128x2xf32>
    %c0_58 = arith.constant 0 : index
    %c0_59 = arith.constant 0 : index
    %113 = vector.load %arg17[%c0_58, %c0_59] : memref<128x2xf32, #tpu.memory_space<vmem>>, vector<128x2xf32>
    tpu.vector_store %arg17[%c0_58, %c0_59], %112 {strides = array<i32>} : memref<128x2xf32, #tpu.memory_space<vmem>>, vector<128x2xf32>,
    return
  }
  func.func @transform_0(%arg0: i32) -> (i32, i32) {
    %c0_i32 = arith.constant 0 : i32
    %c0_i32_0 = arith.constant 0 : i32
    return %arg0, %c0_i32 : i32, i32
  }
  func.func @transform_1(%arg0: i32) -> (i32, i32) {
    %c0_i32 = arith.constant 0 : i32
    %c0_i32_0 = arith.constant 0 : i32
    return %arg0, %c0_i32 : i32, i32
  }
  func.func @transform_2(%arg0: i32) -> (i32, i32) {
    %c0_i32 = arith.constant 0 : i32
    %c0_i32_0 = arith.constant 0 : i32
    %c0_i32_1 = arith.constant 0 : i32
    return %c0_i32, %c0_i32_0 : i32, i32
  }
  func.func @transform_3(%arg0: i32) -> (i32, i32) {
    %c0_i32 = arith.constant 0 : i32
    %c0_i32_0 = arith.constant 0 : i32
    %c0_i32_1 = arith.constant 0 : i32
    return %c0_i32, %c0_i32_0 : i32, i32
  }
  func.func @transform_4(%arg0: i32) -> (i32, i32) {
    %c0_i32 = arith.constant 0 : i32
    %c0_i32_0 = arith.constant 0 : i32
    %c0_i32_1 = arith.constant 0 : i32
    return %c0_i32, %c0_i32_0 : i32, i32
  }
  func.func @transform_5(%arg0: i32) -> (i32, i32) {
    %c0_i32 = arith.constant 0 : i32
    %c0_i32_0 = arith.constant 0 : i32
    %c0_i32_1 = arith.constant 0 : i32
    return %c0_i32, %c0_i32_0 : i32, i32
  }
  func.func @transform_6(%arg0: i32) -> (i32, i32) {
    %c0_i32 = arith.constant 0 : i32
    %c0_i32_0 = arith.constant 0 : i32
    %c0_i32_1 = arith.constant 0 : i32
    return %c0_i32, %c0_i32_0 : i32, i32
  }
  func.func @transform_7(%arg0: i32) -> (i32, i32) {
    %c0_i32 = arith.constant 0 : i32
    %c0_i32_0 = arith.constant 0 : i32
    %c0_i32_1 = arith.constant 0 : i32
    return %c0_i32, %c0_i32_0 : i32, i32
  }
  func.func @transform_8(%arg0: i32) -> (i32, i32) {
    %c0_i32 = arith.constant 0 : i32
    %c0_i32_0 = arith.constant 0 : i32
    %c0_i32_1 = arith.constant 0 : i32
    return %c0_i32, %c0_i32_0 : i32, i32
  }
  func.func @transform_9(%arg0: i32) -> (i32, i32) {
    %c0_i32 = arith.constant 0 : i32
    %c0_i32_0 = arith.constant 0 : i32
    %c0_i32_1 = arith.constant 0 : i32
    return %c0_i32, %c0_i32_0 : i32, i32
  }
  func.func @transform_10(%arg0: i32) -> (i32, i32) {
    %c0_i32 = arith.constant 0 : i32
    %c0_i32_0 = arith.constant 0 : i32
    %c0_i32_1 = arith.constant 0 : i32
    return %c0_i32, %c0_i32_0 : i32, i32
  }
  func.func @transform_11(%arg0: i32) -> (i32, i32) {
    %c0_i32 = arith.constant 0 : i32
    %c0_i32_0 = arith.constant 0 : i32
    %c0_i32_1 = arith.constant 0 : i32
    return %c0_i32, %c0_i32_0 : i32, i32
  }
  func.func @transform_12(%arg0: i32) -> (i32, i32) {
    %c0_i32 = arith.constant 0 : i32
    %c0_i32_0 = arith.constant 0 : i32
    %c0_i32_1 = arith.constant 0 : i32
    return %c0_i32, %c0_i32_0 : i32, i32
  }
  func.func @transform_13(%arg0: i32) -> (i32, i32) {
    %c0_i32 = arith.constant 0 : i32
    %c0_i32_0 = arith.constant 0 : i32
    %c0_i32_1 = arith.constant 0 : i32
    return %c0_i32, %c0_i32_0 : i32, i32
  }
  func.func @transform_14(%arg0: i32) -> (i32, i32) {
    %c0_i32 = arith.constant 0 : i32
    %c0_i32_0 = arith.constant 0 : i32
    %c0_i32_1 = arith.constant 0 : i32
    return %c0_i32, %c0_i32_0 : i32, i32
  }
  func.func @transform_15(%arg0: i32) -> (i32, i32) {
    %c0_i32 = arith.constant 0 : i32
    %c0_i32_0 = arith.constant 0 : i32
    %c0_i32_1 = arith.constant 0 : i32
    return %c0_i32, %c0_i32_0 : i32, i32
  }
  func.func @transform_16(%arg0: i32) -> (i32, i32) {
    %c0_i32 = arith.constant 0 : i32
    %c0_i32_0 = arith.constant 0 : i32
    return %arg0, %c0_i32 : i32, i32
  }
}

</mosaic_0001>

<bundles_post_ra>
// kernel: tpu_custom_call.1
= control target key start
LH: loop header
LB: loop body
LE: loop exit
PB: predicated region body
PF: predicated region fallthrough
CT: control target
= control target key end

     0   :  { %s6193_s0 = inlined_call_operand.vmem [shape: f32[256,2], index: 0, kind: input, shape index: {}]   ;;  %s6194_s1 = inlined_call_operand.vmem [shape: f32[256,1], index: 1, kind: input, shape index: {}]   ;;  %s6195_s2 = inlined_call_operand.vmem [shape: bf16[2,256], index: 2, kind: input, shape index: {}]   ;;  %s6196_s3 = inlined_call_operand.vmem [shape: f32[1,256], index: 3, kind: input, shape index: {}]   ;;  %s6197_s4 = inlined_call_operand.vmem [shape: bf16[256,256], index: 4, kind: input, shape index: {}]   ;;  %s6198_s5 = inlined_call_operand.vmem [shape: f32[1,256], index: 5, kind: input, shape index: {}]   ;;  %s6199_s6 = inlined_call_operand.vmem [shape: bf16[256,256], index: 6, kind: input, shape index: {}]   ;;  %s6200_s7 = inlined_call_operand.vmem [shape: f32[1,256], index: 7, kind: input, shape index: {}]   ;;  %s6201_s8 = inlined_call_operand.hbm [shape: bf16[256,256], index: 8, kind: input, shape index: {}]   ;;  %s6202_s9 = inlined_call_operand.vmem [shape: f32[1,256], index: 9, kind: input, shape index: {}]   ;;  %s6203_s10 = inlined_call_operand.hbm [shape: bf16[256,256], index: 10, kind: input, shape index: {}]   ;;  %s6204_s11 = inlined_call_operand.vmem [shape: f32[1,256], index: 11, kind: input, shape index: {}]   ;;  %s6205_s12 = inlined_call_operand.hbm [shape: bf16[256,256], index: 12, kind: input, shape index: {}]   ;;  %s6206_s13 = inlined_call_operand.vmem [shape: f32[1,256], index: 13, kind: input, shape index: {}]   ;;  %s6207_s14 = inlined_call_operand.hbm [shape: bf16[256,128], index: 14, kind: input, shape index: {}]   ;;  %s6208_s15 = inlined_call_operand.vmem [shape: f32[1,128], index: 15, kind: input, shape index: {}]   ;;  %s6209_s16 = inlined_call_operand.vmem [shape: f32[256,2], index: 16, kind: output, shape index: {}]  }
   0x1   :  { %6214 = sst [smem:[#allocation12_spill]] %s6193_s0 }
   0x2   :  { %6215 = sst [smem:[#allocation13_spill]] %s6202_s9 }
   0x3   :  { %6216 = sst [smem:[#allocation14_spill]] %s6204_s11 }
   0x4   :  { %6217 = sst [smem:[#allocation15_spill]] %s6206_s13 }
   0x5   :  { %6218 = sst [smem:[#allocation16_spill]] %s6208_s15 }
   0x6   :  { %6219 = sst [smem:[#allocation17_spill]] %s6209_s16 }
   0x7   :  { %21 = vsyncpa [#allocation3], 0 }
   0x8   :  { %22 = vsyncpa [#allocation5], 0 }
   0x9   :  { %23 = vsyncpa [#allocation8], 0  ;;  %s5110_s21 = smov 0  }
   0xa LB: > { %s6210_s22 = sadd.s32 4294967295, %s5012_s21   ;;  %p4151_p0 = scmp.ge.s32.totalorder %s5012_s21, 1  ;;  %s5012_s21 = sphi %s5110_s21, %s29_s21  }
   0xb   : > { %p406_p1 = scmp.lt.s32.totalorder %s5012_s21, 3  ;;  %p5120_p2 = scmp.eq.s32.totalorder %s6210_s22, 0 }
   0xc   : > { %s5014_s25 = smov [#allocation4]   ;;  %s5015_s27 = smov [#allocation2]  }
   0xd   : > { %s6220_s23 = scalar_select %p5120_p2, 1, 0 }
   0xe   : > { %p5124_p3 = pnand %p4151_p0, %p406_p1  ;;  %s452_s26 = sshll.u32 %s5014_s25, 4  ;;  %s5128_s26 = int_to_ptr.vmem [resolvable:$true] %s452_s26 }
   0xf   : > { %s436_s28 = sshll.u32 %s5015_s27, 4  ;;  %s5016_s30 = smov [#allocation6]   ;;  %s5132_s28 = int_to_ptr.vmem [resolvable:$true] %s436_s28 }
  0x10   : > { %s6221_s24 = scalar_select %p5124_p3, 1, 0 }
  0x11   : > { %p4437_p4 = pneg %p5124_p3  ;;  %s468_s0 = sshll.u32 %s5016_s30, 4  ;;  %s5140_s0 = int_to_ptr.vmem [resolvable:$true] %s468_s0 }
  0x12   : > { %s5017_s17 = smov [#allocation7]   ;;  %s4882_s25 = scalar_lea.hbm %s6203_s10, 4096 }
  0x13   : > { %p5136_p5 = pnand %p5120_p2, %p4437_p4  ;;  %s5142_s18 = sshll.u32 %s5017_s17, 4  ;;  %s485_s18 = int_to_ptr.vmem [resolvable:$true] %s5142_s18 }
  0x14   : > { %p4883_p6 = scmp.ne.s32.totalorder %s6203_s10, %s4882_s25  ;;  %p4889_p10 = scmp.lt.u32.totalorder %s4882_s25, %s6203_s10 }
  0x15   : > { %p5152_p7 = pneg %p5136_p5 }
  0x17   : > { %p4885_p8 = pnand %p5152_p7, %p4883_p6 }
  0x19   : > { %p4886_p9 = pneg %p4885_p8 }
  0x1b   : > { %p4891_p11 = pnand %p4889_p10, %p4886_p9 }
  0x1d   : > { %4894 = shalt.err (!%p4891_p11)
}
  0x1e   : > { %s4895_s22 = scalar_lea.vmem %s5128_s26, 4096  ;;  %p4903_p1 = scmp.lt.s32.totalorder %s5128_s26, %s5128_s26 }
  0x1f   : > { %p4896_p12 = scmp.ne.s32.totalorder %s5128_s26, %s4895_s22  ;;  %p4904_p4 = scmp.lt.s32.totalorder %s4895_s22, %s4895_s22 }
  0x21   : > { %p4898_p13 = pnand %p4896_p12, %p5152_p7  ;;  %p4905_p6 = por %p4904_p4, %p4903_p1 }
  0x23   : > { %p4899_p0 = pneg %p4898_p13 }
  0x25   : > { %p4906_p8 = pnand %p4905_p6, %p4899_p0 }
  0x27   : > { %4909 = shalt.err (!%p4906_p8)
}
  0x28   : > { %s5018_s19 = smov 128   ;;  %s5019_s20 = smov 8  }
  0x29   : > { %4443 = dma.hbm_to_vmem [thread:$0]  (!%p5136_p5), %s6203_s10, 4096, %s5128_s26, [#allocation5], %s5018_s19, %s5018_s19, %s5019_s20  }
  0x2a   : > { %s4910_s22 = scalar_lea.hbm %s6201_s8, 4096 }
  0x2b   : > { %p4911_p9 = scmp.ne.s32.totalorder %s6201_s8, %s4910_s22  ;;  %p4917_p12 = scmp.lt.u32.totalorder %s4910_s22, %s6201_s8 }
  0x2d   : > { %p4913_p10 = pnand %p4911_p9, %p5152_p7 }
  0x2f   : > { %p4914_p11 = pneg %p4913_p10 }
  0x31   : > { %p4919_p13 = pnand %p4917_p12, %p4914_p11 }
  0x33   : > { %4922 = shalt.err (!%p4919_p13)
}
  0x34   : > { %s4923_s26 = scalar_lea.vmem %s5132_s28, 4096  ;;  %p4931_p6 = scmp.lt.s32.totalorder %s5132_s28, %s5132_s28 }
  0x35   : > { %p4924_p0 = scmp.ne.s32.totalorder %s5132_s28, %s4923_s26  ;;  %p4932_p8 = scmp.lt.s32.totalorder %s4923_s26, %s4923_s26 }
  0x37   : > { %p4926_p1 = pnand %p4924_p0, %p5152_p7  ;;  %p4933_p9 = por %p4932_p8, %p4931_p6 }
  0x39   : > { %p4927_p4 = pneg %p4926_p1 }
  0x3b   : > { %p4934_p10 = pnand %p4933_p9, %p4927_p4 }
  0x3d   : > { %4937 = shalt.err (!%p4934_p10)
}
  0x3e   : > { %4440 = dma.hbm_to_vmem [thread:$0]  (!%p5136_p5), %s6201_s8, 4096, %s5132_s28, [#allocation3], %s5018_s19, %s5018_s19, %s5019_s20  }
  0x3f   : > { %s4938_s25 = scalar_lea.hbm %s6205_s12, 4096 }
  0x40   : > { %p4939_p11 = scmp.ne.s32.totalorder %s6205_s12, %s4938_s25  ;;  %p4945_p0 = scmp.lt.u32.totalorder %s4938_s25, %s6205_s12 }
  0x42   : > { %p4941_p12 = pnand %p4939_p11, %p5152_p7 }
  0x44   : > { %p4942_p13 = pneg %p4941_p12 }
  0x46   : > { %p4947_p1 = pnand %p4945_p0, %p4942_p13 }
  0x48   : > { %4950 = shalt.err (!%p4947_p1)
}
  0x49   : > { %s4951_s28 = scalar_lea.vmem %s5140_s0, 4096  ;;  %p4959_p9 = scmp.lt.s32.totalorder %s5140_s0, %s5140_s0 }
  0x4a   : > { %p4952_p4 = scmp.ne.s32.totalorder %s5140_s0, %s4951_s28  ;;  %p4960_p10 = scmp.lt.s32.totalorder %s4951_s28, %s4951_s28 }
  0x4c   : > { %p4954_p6 = pnand %p4952_p4, %p5152_p7  ;;  %p4961_p11 = por %p4960_p10, %p4959_p9 }
  0x4e   : > { %p4955_p8 = pneg %p4954_p6 }
  0x50   : > { %p4962_p12 = pnand %p4961_p11, %p4955_p8 }
  0x52   : > { %4965 = shalt.err (!%p4962_p12)
}
  0x53   : > { %4446 = dma.hbm_to_vmem [thread:$0]  (!%p5136_p5), %s6205_s12, 4096, %s5140_s0, [#allocation5], %s5018_s19, %s5018_s19, %s5019_s20  }
  0x54   : > { %s4966_s15 = scalar_lea.hbm %s6207_s14, 2048 }
  0x55   : > { %p4967_p13 = scmp.ne.s32.totalorder %s6207_s14, %s4966_s15  ;;  %p4973_p4 = scmp.lt.u32.totalorder %s4966_s15, %s6207_s14 }
  0x57   : > { %p4969_p0 = pnand %p4967_p13, %p5152_p7 }
  0x59   : > { %p4970_p1 = pneg %p4969_p0 }
  0x5b   : > { %p4975_p6 = pnand %p4973_p4, %p4970_p1 }
  0x5d   : > { %4978 = shalt.err (!%p4975_p6)
}
  0x5e   : > { %s4979_s22 = scalar_lea.vmem %s485_s18, 2048  ;;  %p4987_p11 = scmp.lt.s32.totalorder %s485_s18, %s485_s18 }
  0x5f   : > { %p4980_p8 = scmp.ne.s32.totalorder %s485_s18, %s4979_s22  ;;  %p4988_p12 = scmp.lt.s32.totalorder %s4979_s22, %s4979_s22 }
  0x61   : > { %p4982_p9 = pnand %p4980_p8, %p5152_p7  ;;  %p4989_p2 = por %p4988_p12, %p4987_p11 }
  0x63   : > { %p4983_p10 = pneg %p4982_p9 }
  0x65   : > { %p4990_p3 = pnand %p4989_p2, %p4983_p10 }
  0x67   : > { %4993 = shalt.err (!%p4990_p3)
}
  0x68   : > { %s5020_s0 = smov 64   ;;  %s5021_s19 = smov 4  }
  0x69   : > { %4449 = dma.hbm_to_vmem [thread:$0]  (!%p5136_p5), %s6207_s14, 2048, %s485_s18, [#allocation8], %s5020_s0, %s5020_s0, %s5021_s19  }
  0x6a   : > { %p6224_p13 = scmp.ne.s32.totalorder %s6221_s24, 0 }
  0x6b   : > { %p6225_p0 = scmp.ne.s32.totalorder (!%p6224_p13), %s6220_s23, 0 }
  0x6c   : > { %521 = sbr.rel (%p6224_p13) target bundleno = 2019 (0x7e3), region = 84 }
  0x73   : > { %4999 = dma.done.wait (%p6225_p0), [#allocation3], 4096  }
  0x74   : > { %5001 = vsyncadd (%p6225_p0), [#allocation3], 4294963200 }
  0x75   : > { %5003 = dma.done.wait (%p6225_p0), [#allocation5], 8192  }
  0x76   : > { %5005 = vsyncadd (%p6225_p0), [#allocation5], 4294959104 }
  0x77   : > { %5007 = dma.done.wait (%p6225_p0), [#allocation8], 2048  }
  0x78   : > { %5009 = vsyncadd (%p6225_p0), [#allocation8], 4294965248  ;;  %s6226_s16 = sadd.s32 4294967295, %s5012_s21   ;;  %v5022_v0 = vmov 0   ;;  %s6227_s13 = sld [smem:[#allocation12_spill]]  ;;  %v991_v35 = vlaneseq  ;;  %vm1223_vm0 = vcmask 1040384  }
  0x79   : > { %s4162_s24 = sshll.u32 %s6226_s16, 4  ;;  %4488 = vset.pattern.permute.xlu1 %v5022_v0  ;;  %4477 = vset.pattern.permute.xlu0 %v5022_v0  ;;  %v4168_v42 = vld.sshfl [vmem:[%s6195_s2] sm:$0x11 pattern:$0x75316420]  ;;  %s5024_s30 = smov 127  }
  0x7a   : > { %p589_p2 = scmp.lt.s32.totalorder %s4162_s24, 31  ;;  %1262 = vmatprep.mubr.bf16.mxu0 %v5022_v0  ;;  %v5377_v47 = vshrl.u32 %v991_v35, 7  ;;  %v5023_v48 = vmov 1966171168   ;;  %v1183_v54 = vcombine.high %v4168_v42, %v4168_v42  ;;  %vm1198_vm2 = vcmask 15360   ;;  %s6228_s17 = sld [smem:[#allocation13_spill]] }
  0x7b   : > { %v1185_v49 = vunpack.c.l.s4 %v5023_v48  ;;  %v4567_v48 = vld [vmem:[%s6197_s4 + $0x20] ss:$8 sps:$4 sm:$0xff]   ;;  %s6229_s19 = sld [smem:[#allocation14_spill]]  ;;  %s6230_s16 = sld [smem:[#allocation15_spill]] }
  0x7c   : > { %s6234_s24 = smov (!%p589_p2, %s4162_s24), 31  ;;  %s6231_s26 = sld [smem:[#allocation16_spill]] }
  0x7d   : > { %s5266_s29 = sshll.u32 %s6234_s24, 3  ;;  %v1186_v55 = vunpack.c.0.s8 %v1185_v49  ;;  %v4568_v49 = vld [vmem:[%s6197_s4 + $0x34] ss:$8 sps:$4 sm:$0xff]   ;;  %s6232_s11 = sld [smem:[#allocation17_spill]] }
  0x7e   : > { %s5272_s23 = scalar_lea.vmem %s6194_s1, %s5266_s29  ;;  %s5278_s15 = scalar_lea.vmem %s6227_s13, %s5266_s29 }
  0x7f   : > { %v5281_v1 = vld [vmem:[%s5272_s23 + $0x10] sm:$0xff]  ;;  %v5284_v2 = vld [vmem:[%s5272_s23 + $0x18] sm:$0xff]  ;;  %v5287_v3 = vld [vmem:[%s5272_s23] sm:$0xff]  ;;  %v1189_v62 = vsub.s32 %v1186_v55, %v5377_v47 }
  0x80   : > { %v641_v4 = vmul.f32 0.01, %v5281_v1  ;;  %v642_v5 = vmul.f32 0.01, %v5284_v2  ;;  %v5292_v6 = vld [vmem:[%s5272_s23 + $0x8] sm:$0xff]  ;;  %v5297_v9 = vld [vmem:[%s5278_s15 + $0x10] sm:$0xff] }
  0x81   : > { %v639_v7 = vmul.f32 0.01, %v5287_v3  ;;  %v640_v8 = vmul.f32 0.01, %v5292_v6  ;;  %v5300_v10 = vld [vmem:[%s5278_s15 + $0x18] sm:$0xff]  ;;  %v5303_v12 = vld [vmem:[%s5278_s15] sm:$0xff] }
  0x82   : > { %v4489_v11 = vpack.i.bf16 %v642_v5, %v641_v4  ;;  %v5306_v13 = vld [vmem:[%s5278_s15 + $0x8] sm:$0xff]  ;;  %v5309_v15 = vld [vmem:[%s5272_s23 + $0x20] sm:$0xff]  ;;  %v4494_v17 = vpack.i.bf16 %v5300_v10, %v5297_v9  ;;  %v5327_v23 = vld [vmem:[%s5272_s23 + $0x30] sm:$0xff]  ;;  %v1197_v5 = vrot.slane %v1183_v54, %v1189_v62 }
  0x83   : > { %v4478_v14 = vpack.i.bf16 %v640_v8, %v639_v7  ;;  %v5312_v16 = vld [vmem:[%s5272_s23 + $0x28] sm:$0xff]  ;;  %v4483_v18 = vpack.i.bf16 %v5306_v13, %v5303_v12  ;;  %v5319_v19 = vld [vmem:[%s5278_s15 + $0x20] sm:$0xff]  ;;  %v643_v21 = vmul.f32 0.01, %v5309_v15  ;;  %v5330_v24 = vld [vmem:[%s5272_s23 + $0x38] sm:$0xff]  ;;  %v1190_v7 = vrot.slane %v4168_v42, %v1189_v62  ;;  %s6124_s13 = scalar_lea.vmem %s6232_s11, %s5266_s29 }
  0x84   : > { %4490 = vperm.xlu1 %4488, %v4489_v11   ;;  %v5322_v20 = vld [vmem:[%s5278_s15 + $0x28] sm:$0xff]  ;;  %v644_v22 = vmul.f32 0.01, %v5312_v16  ;;  %v5335_v27 = vld [vmem:[%s5278_s15 + $0x30] sm:$0xff]  ;;  %v5338_v28 = vld [vmem:[%s5278_s15 + $0x38] sm:$0xff]  ;;  %4169 = vmatprep.subr.msk.bf16.mxu0 %vm1223_vm0, %v1197_v5 }
  0x85   : > { %4479 = vperm.xlu0 %4477, %v4478_v14   ;;  %v4504_v25 = vpack.i.bf16 %v5322_v20, %v5319_v19  ;;  %v645_v29 = vmul.f32 0.01, %v5327_v23  ;;  %v646_v30 = vmul.f32 0.01, %v5330_v24  ;;  %v5343_v31 = vld [vmem:[%s5272_s23 + $0x40] sm:$0xff]  ;;  %v5346_v32 = vld [vmem:[%s5272_s23 + $0x48] sm:$0xff]  ;;  %v4514_v33 = vpack.i.bf16 %v5338_v28, %v5335_v27 }
  0x86   : > { %v4499_v26 = vpack.i.bf16 %v644_v22, %v643_v21  ;;  %v5351_v34 = vld [vmem:[%s5278_s15 + $0x40] sm:$0xff]  ;;  %v5354_v37 = vld [vmem:[%s5278_s15 + $0x48] sm:$0xff]  ;;  %v647_v38 = vmul.f32 0.01, %v5343_v31  ;;  %v648_v39 = vmul.f32 0.01, %v5346_v32 }
  0x87   : > { %v4509_v36 = vpack.i.bf16 %v646_v30, %v645_v29  ;;  %v5359_v40 = vld [vmem:[%s5272_s23 + $0x50] sm:$0xff]  ;;  %v5362_v41 = vld [vmem:[%s5272_s23 + $0x58] sm:$0xff]  ;;  %v4524_v43 = vpack.i.bf16 %v5354_v37, %v5351_v34  ;;  %v5381_v52 = vld [vmem:[%s5272_s23 + $0x60] sm:$0xff]  ;;  %v880_v29 = vsub.f32 1.0, %v5306_v13  ;;  %v879_v30 = vsub.f32 1.0, %v5303_v12 }
  0x88   : > { %4495 = vperm.xlu1 %4488, %v4494_v17   ;;  %v5370_v44 = vld [vmem:[%s5278_s15 + $0x50] sm:$0xff]  ;;  %v5373_v45 = vld [vmem:[%s5278_s15 + $0x58] sm:$0xff]  ;;  %v649_v46 = vmul.f32 0.01, %v5359_v40  ;;  %v4519_v50 = vpack.i.bf16 %v648_v39, %v647_v38  ;;  %v650_v51 = vmul.f32 0.01, %v5362_v41 }
  0x89   : > { %4484 = vperm.xlu0 %4477, %v4483_v18   ;;  %v5384_v53 = vld [vmem:[%s5272_s23 + $0x68] sm:$0xff]  ;;  %v5387_v56 = vld [vmem:[%s5278_s15 + $0x60] sm:$0xff]  ;;  %v637_v58 = vld [vmem:[%s5272_s23 + $0x70] sm:$0xff]  ;;  %v4534_v59 = vpack.i.bf16 %v5373_v45, %v5370_v44  ;;  %v651_v60 = vmul.f32 0.01, %v5381_v52  ;;  %v1225_v18 = vsel %vm1223_vm0, %v1190_v7, 0 }
  0x8a   : > { %v5390_v57 = vld [vmem:[%s5278_s15 + $0x68] sm:$0xff]  ;;  %v638_v61 = vld [vmem:[%s5272_s23 + $0x78] sm:$0xff]  ;;  %v4529_v63 = vpack.i.bf16 %v650_v51, %v649_v46  ;;  %v652_v4 = vmul.f32 0.01, %v5384_v53  ;;  %v5400_v8 = vld [vmem:[%s5278_s15 + $0x70] sm:$0xff]  ;;  %1231 = vmatpush1.bf16.msra.mxu0 %v1225_v18  ;;  %v884_v38 = vsub.f32 1.0, %v5322_v20 }
  0x8b   : > { %v5403_v11 = vld [vmem:[%s5278_s15 + $0x78] sm:$0xff]  ;;  %v4544_v14 = vpack.i.bf16 %v5390_v57, %v5387_v56  ;;  %v653_v17 = vmul.f32 0.01, %v637_v58  ;;  %v654_v22 = vmul.f32 0.01, %v638_v61  ;;  %v893_v39 = vsub.f32 1.0, %v5400_v8 }
  0x8c   : > { %4505 = vperm.xlu1 %4488, %v4504_v25   ;;  %v4539_v21 = vpack.i.bf16 %v652_v4, %v651_v60  ;;  %v4554_v25 = vpack.i.bf16 %v5403_v11, %v5400_v8  ;;  %v4559_v42 = vld [vmem:[%s6197_s4 + $0x4] ss:$8 sps:$4 sm:$0xff]   ;;  %v4573_v54 = vld [vmem:[%s6197_s4 + $0x40] ss:$8 sps:$4 sm:$0xff]   ;;  %v4574_v55 = vld [vmem:[%s6197_s4 + $0x54] ss:$8 sps:$4 sm:$0xff]  }
  0x8d   : > { %4500 = vperm.xlu0 %4477, %v4499_v26   ;;  %v4549_v26 = vpack.i.bf16 %v654_v22, %v653_v17  ;;  %1659 = vmatprep.subr.bf16.mxu1 %v4559_v42  ;;  %v4565_v46 = vld [vmem:[%s6197_s4 + $0x24] ss:$8 sps:$4 sm:$0xff]   ;;  %v4579_v58 = vld [vmem:[%s6197_s4 + $0x60] ss:$8 sps:$4 sm:$0xff]   ;;  %v5516_v61 = vand.u32 127, %v991_v35 }
  0x8e   : > { %v4571_v51 = vld [vmem:[%s6197_s4 + $0x44] ss:$8 sps:$4 sm:$0xff]   ;;  %v656_v42 = vmul.f32 0.0089, %v5292_v6 }
  0x8f   : > { %vm993_vm1 = vcmp.eq.s32.totalorder %v5516_v61, 0 }
  0x90   : > { %4515 = vperm.xlu1 %4488, %v4514_v33   ;;  %v882_v33 = vsub.f32 1.0, %v5300_v10 }
  0x91   : > { %4510 = vperm.xlu0 %4477, %v4509_v36   ;;  %v881_v36 = vsub.f32 1.0, %v5297_v9 }
  0x94   : > { %4525 = vperm.xlu1 %4488, %v4524_v43   ;;  %v4561_v43 = vld [vmem:[%s6197_s4] ss:$8 sps:$4 sm:$0xff]  }
  0x95   : > { %4520 = vperm.xlu0 %4477, %v4519_v50   ;;  %1660 = vmatpush1.bf16.msra.mxu1 %v4561_v43  ;;  %v4570_v50 = vld [vmem:[%s6197_s4 + $0x30] ss:$8 sps:$4 sm:$0xff]  }
  0x98   : > { %4535 = vperm.xlu1 %4488, %v4534_v59  }
  0x99   : > { %4530 = vperm.xlu0 %4477, %v4529_v63  }
  0x9c   : > { %4545 = vperm.xlu1 %4488, %v4544_v14  }
  0x9d   : > { %4540 = vperm.xlu0 %4477, %v4539_v21  }
  0xa0   : > { %4555 = vperm.xlu1 %4488, %v4554_v25  }
  0xa1   : > { %4550 = vperm.xlu0 %4477, %v4549_v26  }
  0xa4   : > { %817 = vrot.lane.b32.xlu1 %v5306_v13, %s5024_s30  ;;  %v883_v13 = vsub.f32 1.0, %v5319_v19 }
  0xa5   : > { %815 = vrot.lane.b32.xlu0 %v5303_v12, %s5024_s30  ;;  %v886_v12 = vsub.f32 1.0, %v5338_v28 }
  0xa8   : > { %821 = vrot.lane.b32.xlu1 %v5300_v10, %s5024_s30  ;;  %v885_v10 = vsub.f32 1.0, %v5335_v27 }
  0xa9   : > { %819 = vrot.lane.b32.xlu0 %v5297_v9, %s5024_s30  ;;  %v888_v9 = vsub.f32 1.0, %v5354_v37 }
  0xac   : > { %825 = vrot.lane.b32.xlu1 %v5322_v20, %s5024_s30  ;;  %v887_v20 = vsub.f32 1.0, %v5351_v34 }
  0xad   : > { %823 = vrot.lane.b32.xlu0 %v5319_v19, %s5024_s30  ;;  %v890_v19 = vsub.f32 1.0, %v5373_v45 }
  0xb0   : > { %829 = vrot.lane.b32.xlu1 %v5338_v28, %s5024_s30  ;;  %v889_v28 = vsub.f32 1.0, %v5370_v44 }
  0xb1   : > { %827 = vrot.lane.b32.xlu0 %v5335_v27, %s5024_s30  ;;  %v892_v27 = vsub.f32 1.0, %v5390_v57 }
  0xb4   : > { %833 = vrot.lane.b32.xlu1 %v5354_v37, %s5024_s30  ;;  %v891_v37 = vsub.f32 1.0, %v5387_v56 }
  0xb5   : > { %831 = vrot.lane.b32.xlu0 %v5351_v34, %s5024_s30  ;;  %v894_v34 = vsub.f32 1.0, %v5403_v11 }
  0xb8   : > { %837 = vrot.lane.b32.xlu1 %v5373_v45, %s5024_s30  ;;  %v4564_v45 = vld [vmem:[%s6197_s4 + $0x10] ss:$8 sps:$4 sm:$0xff]  }
  0xb9   : > { %835 = vrot.lane.b32.xlu0 %v5370_v44, %s5024_s30  ;;  %v4562_v44 = vld [vmem:[%s6197_s4 + $0x14] ss:$8 sps:$4 sm:$0xff]  }
  0xba   : > { %1661 = vmatprep.subr.bf16.mxu1 %v4562_v44 }
  0xbb   : > { %1662 = vmatpush1.bf16.msra.mxu1 %v4564_v45  ;;  %v655_v45 = vmul.f32 0.0089, %v5287_v3 }
  0xbc   : > { %841 = vrot.lane.b32.xlu1 %v5390_v57, %s5024_s30  ;;  %1663 = vmatprep.subr.bf16.mxu1 %v4565_v46  ;;  %v4577_v57 = vld [vmem:[%s6197_s4 + $0x64] ss:$8 sps:$4 sm:$0xff]  }
  0xbd   : > { %839 = vrot.lane.b32.xlu0 %v5387_v56, %s5024_s30  ;;  %v4576_v56 = vld [vmem:[%s6197_s4 + $0x50] ss:$8 sps:$4 sm:$0xff]  }
  0xbf   : > { %1664 = vmatpush1.bf16.msra.mxu1 %v4567_v48 }
  0xc0   : > { %845 = vrot.lane.b32.xlu1 %v5403_v11, %s5024_s30  ;;  %1665 = vmatprep.subr.bf16.mxu1 %v4568_v49 }
  0xc1   : > { %843 = vrot.lane.b32.xlu0 %v5400_v8, %s5024_s30 }
  0xc3   : > { %1666 = vmatpush1.bf16.msra.mxu1 %v4570_v50 }
  0xc4   : > { %913 = vrot.lane.b32.xlu1 %v880_v29, %s5024_s30  ;;  %1667 = vmatprep.subr.bf16.mxu1 %v4571_v51  ;;  %v658_v51 = vmul.f32 0.0089, %v5284_v2 }
  0xc5   : > { %911 = vrot.lane.b32.xlu0 %v879_v30, %s5024_s30 }
  0xc7   : > { %1668 = vmatpush1.bf16.msra.mxu1 %v4573_v54 }
  0xc8   : > { %917 = vrot.lane.b32.xlu1 %v882_v33, %s5024_s30  ;;  %1669 = vmatprep.subr.bf16.mxu1 %v4574_v55  ;;  %v673_v55 = vmul.f32 1.442695, %v656_v42 }
  0xc9   : > { %915 = vrot.lane.b32.xlu0 %v881_v36, %s5024_s30 }
  0xca   : > { %4815 = vpow2.f32 %v673_v55 }
  0xcb   : > { %1670 = vmatpush1.bf16.msra.mxu1 %v4576_v56 }
  0xcc   : > { %921 = vrot.lane.b32.xlu1 %v884_v38, %s5024_s30  ;;  %1671 = vmatprep.subr.bf16.mxu1 %v4577_v57  ;;  %v671_v57 = vmul.f32 1.442695, %v655_v45 }
  0xcd   : > { %919 = vrot.lane.b32.xlu0 %v883_v13, %s5024_s30 }
  0xce   : > { %4817 = vpow2.f32 %v671_v57 }
  0xcf   : > { %1672 = vmatpush1.bf16.msra.mxu1 %v4579_v58 }
  0xd0   : > { %925 = vrot.lane.b32.xlu1 %v886_v12, %s5024_s30 }
  0xd1   : > { %923 = vrot.lane.b32.xlu0 %v885_v10, %s5024_s30 }
  0xd4   : > { %929 = vrot.lane.b32.xlu1 %v888_v9, %s5024_s30 }
  0xd5   : > { %927 = vrot.lane.b32.xlu0 %v887_v20, %s5024_s30 }
  0xd8   : > { %933 = vrot.lane.b32.xlu1 %v890_v19, %s5024_s30 }
  0xd9   : > { %931 = vrot.lane.b32.xlu0 %v889_v28, %s5024_s30 }
  0xdc   : > { %937 = vrot.lane.b32.xlu1 %v892_v27, %s5024_s30 }
  0xdd   : > { %935 = vrot.lane.b32.xlu0 %v891_v37, %s5024_s30 }
  0xe0   : > { %941 = vrot.lane.b32.xlu1 %v894_v34, %s5024_s30 }
  0xe1   : > { %939 = vrot.lane.b32.xlu0 %v893_v39, %s5024_s30 }
 0x103   : > { %v4491_v59 = vpop.permute.xlu1 %4490 }
 0x104   : > { %v4480_v60 = vpop.permute.xlu0 %4479  ;;  %v4493_v35 = vunpack.i.h.bf16 %v4491_v59  ;;  %v4492_v22 = vunpack.i.l.bf16 %v4491_v59 }
 0x105   : > { %v4482_v4 = vunpack.i.h.bf16 %v4480_v60  ;;  %v4481_v5 = vunpack.i.l.bf16 %v4480_v60  ;;  %v677_v60 = vmul.f32 1.442695, %v658_v51 }
 0x107   : > { %v4496_v62 = vpop.permute.xlu1 %4495  ;;  %4819 = vpow2.f32 %v677_v60 }
 0x108   : > { %v4485_v63 = vpop.permute.xlu0 %4484  ;;  %v4498_v25 = vunpack.i.h.bf16 %v4496_v62  ;;  %v4497_v26 = vunpack.i.l.bf16 %v4496_v62  ;;  %v657_v62 = vmul.f32 0.0089, %v5281_v1 }
 0x109   : > { %v4487_v7 = vunpack.i.h.bf16 %v4485_v63  ;;  %v4486_v8 = vunpack.i.l.bf16 %v4485_v63 }
 0x10a   : > { %v1141_v33 = vsel %vm993_vm1, %v4493_v35, %v4498_v25  ;;  %v1140_v36 = vsel %vm993_vm1, %v4492_v22, %v4497_v26  ;;  %v659_v22 = vmul.f32 0.0089, %v5309_v15  ;;  %v662_v26 = vmul.f32 0.0089, %v5330_v24 }
 0x10b   : > { %v1139_v11 = vsel %vm993_vm1, %v4482_v4, %v4487_v7  ;;  %v1138_v14 = vsel %vm993_vm1, %v4481_v5, %v4486_v8  ;;  %v4506_v17 = vpop.permute.xlu1 %4505  ;;  %v1157_v13 = vpack.c.bf16 %v1141_v33, %v1140_v36  ;;  %v660_v4 = vmul.f32 0.0089, %v5312_v16 }
 0x10c   : > { %v1156_v18 = vpack.c.bf16 %v1139_v11, %v1138_v14  ;;  %v4501_v21 = vpop.permute.xlu0 %4500  ;;  %v4508_v10 = vunpack.i.h.bf16 %v4506_v17  ;;  %v4507_v9 = vunpack.i.l.bf16 %v4506_v17  ;;  %v720_v33 = vmul.f32 -0.0316, %v5292_v6 }
 0x10d   : > { %v4503_v20 = vunpack.i.h.bf16 %v4501_v21  ;;  %v4502_v19 = vunpack.i.l.bf16 %v4501_v21  ;;  %v681_v35 = vmul.f32 1.442695, %v660_v4  ;;  %v666_v4 = vmul.f32 0.0089, %v5362_v41 }
 0x10e   : > { %4170 = vmatmul.mubr.msk.bf16.vlgmr.msra.gmra.mrb[0].mxu0 %vm1198_vm2, %v1156_v18  ;;  %v675_v18 = vmul.f32 1.442695, %v657_v62 }
 0x10f   : > { %v4516_v29 = vpop.permute.xlu1 %4515  ;;  %1272 = vmatprep.mubr.bf16.mxu0 %v5022_v0  ;;  %v1143_v37 = vsel %vm993_vm1, %v4503_v20, %v4508_v10  ;;  %v1142_v34 = vsel %vm993_vm1, %v4502_v19, %v4507_v9  ;;  %v685_v9 = vmul.f32 1.442695, %v662_v26  ;;  %v661_v20 = vmul.f32 0.0089, %v5327_v23 }
 0x110   : > { %v4511_v30 = vpop.permute.xlu0 %4510  ;;  %v1158_v43 = vpack.c.bf16 %v1143_v37, %v1142_v34  ;;  %v4518_v46 = vunpack.i.h.bf16 %v4516_v29  ;;  %v4517_v48 = vunpack.i.l.bf16 %v4516_v29  ;;  %4821 = vpow2.f32 %v675_v18  ;;  %v4816_v37 = vpop.eup %4815 }
 0x111   : > { %v4513_v49 = vunpack.i.h.bf16 %v4511_v30  ;;  %v4512_v50 = vunpack.i.l.bf16 %v4511_v30  ;;  %4823 = vpow2.f32 %v681_v35  ;;  %v722_v19 = vmul.f32 -0.0316, %v5284_v2  ;;  %v4818_v45 = vpop.eup %4817 }
 0x112   : > { %v663_v2 = vmul.f32 0.0089, %v5343_v31  ;;  %v5601_v60 = vmul.f32 0.0873, %v4818_v45 }
 0x113   : > { %v4526_v38 = vpop.permute.xlu1 %4525  ;;  %v1145_v58 = vsel %vm993_vm1, %v4513_v49, %v4518_v46  ;;  %v1144_v59 = vsel %vm993_vm1, %v4512_v50, %v4517_v48  ;;  %v737_v46 = vmul.f32 1.442695, %v720_v33  ;;  %v4820_v50 = vpop.eup %4819  ;;  %v741_v51 = vmul.f32 1.442695, %v722_v19 }
 0x114   : > { %v4521_v12 = vpop.permute.xlu0 %4520  ;;  %v1159_v5 = vpack.c.bf16 %v1145_v58, %v1144_v59  ;;  %v4528_v8 = vunpack.i.h.bf16 %v4526_v38  ;;  %v4527_v11 = vunpack.i.l.bf16 %v4526_v38  ;;  %v679_v38 = vmul.f32 1.442695, %v659_v22 }
 0x115   : > { %v4523_v14 = vunpack.i.h.bf16 %v4521_v12  ;;  %v4522_v17 = vunpack.i.l.bf16 %v4521_v12  ;;  %v5599_v58 = vmul.f32 0.0873, %v4816_v37  ;;  %v683_v59 = vmul.f32 1.442695, %v661_v20 }
 0x116   : > { %4171 = vmatmul.mubr.msk.bf16.gmra.mrb[4].mxu0 %vm1198_vm2, %v1157_v13  ;;  %v719_v13 = vmul.f32 -0.0316, %v5287_v3  ;;  %v664_v3 = vmul.f32 0.0089, %v5346_v32  ;;  %4825 = vpow2.f32 %v679_v38  ;;  %v723_v22 = vmul.f32 -0.0316, %v5309_v15 }
 0x117   : > { %v5530_v28 = vpop.permute.xlu1 %4535  ;;  %1282 = vmatprep.mubr.bf16.mxu0 %v5022_v0  ;;  %v1147_v29 = vsel %vm993_vm1, %v4523_v14, %v4528_v8  ;;  %v1146_v30 = vsel %vm993_vm1, %v4522_v17, %v4527_v11  ;;  %4827 = vpow2.f32 %v685_v9  ;;  %v724_v11 = vmul.f32 -0.0316, %v5312_v16 }
 0x118   : > { %v5533_v27 = vpop.permute.xlu0 %4530  ;;  %v1160_v12 = vpack.c.bf16 %v1147_v29, %v1146_v30  ;;  %v4538_v34 = vunpack.i.h.bf16 %v5530_v28  ;;  %v4537_v42 = vunpack.i.l.bf16 %v5530_v28  ;;  %v735_v49 = vmul.f32 1.442695, %v719_v13 }
 0x119   : > { %v4533_v6 = vunpack.i.h.bf16 %v5533_v27  ;;  %v689_v62 = vmul.f32 1.442695, %v664_v3  ;;  %4829 = vpow2.f32 %v737_v46  ;;  %v784_v13 = vsub.f32 0.0, %v5599_v58 }
 0x11a   : > { %4831 = vpow2.f32 %v735_v49  ;;  %v4822_v14 = vpop.eup %4821  ;;  %v693_v16 = vmul.f32 1.442695, %v666_v4  ;;  %v783_v9 = vsub.f32 0.0, %v5601_v60  ;;  %v726_v20 = vmul.f32 -0.0316, %v5330_v24 }
 0x11b   : > { %v5539_v39 = vpop.permute.xlu1 %4545  ;;  %v1149_v55 = vsel %vm993_vm1, %v4533_v6, %v4538_v34  ;;  %4833 = vpow2.f32 %v741_v51  ;;  %v4824_v26 = vpop.eup %4823  ;;  %v743_v37 = vmul.f32 1.442695, %v723_v22  ;;  %v725_v34 = vmul.f32 -0.0316, %v5327_v23 }
 0x11c   : > { %v5542_v44 = vpop.permute.xlu0 %4540  ;;  %v4548_v29 = vunpack.i.h.bf16 %v5539_v39  ;;  %v4547_v30 = vunpack.i.l.bf16 %v5539_v39  ;;  %4835 = vpow2.f32 %v683_v59  ;;  %v745_v39 = vmul.f32 1.442695, %v724_v11 }
 0x11d   : > { %v4543_v33 = vunpack.i.h.bf16 %v5542_v44  ;;  %v4542_v38 = vunpack.i.l.bf16 %v5542_v44  ;;  %4837 = vpow2.f32 %v689_v62  ;;  %v5632_v45 = vmul.f32 0.0873, %v4822_v14 }
 0x11e   : > { %4172 = vmatmul.mubr.msk.bf16.gmra.mrb[8].mxu0 %vm1198_vm2, %v1158_v43  ;;  %v4532_v43 = vunpack.i.l.bf16 %v5533_v27  ;;  %v721_v27 = vmul.f32 -0.0316, %v5281_v1  ;;  %v687_v1 = vmul.f32 1.442695, %v663_v2  ;;  %v5634_v24 = vmul.f32 0.0873, %v4824_v26 }
 0x11f   : > { %v5547_v54 = vpop.permute.xlu1 %4555  ;;  %1292 = vmatprep.mubr.bf16.mxu0 %v5022_v0  ;;  %v1151_v6 = vsel %vm993_vm1, %v4543_v33, %v4548_v29  ;;  %v728_v2 = vmul.f32 -0.0316, %v5346_v32  ;;  %v668_v49 = vmul.f32 0.0089, %v5384_v53  ;;  %v727_v51 = vmul.f32 -0.0316, %v5343_v31 }
 0x120   : > { %v5550_v56 = vpop.permute.xlu0 %4550  ;;  %v1148_v57 = vsel %vm993_vm1, %v4532_v43, %v4537_v42  ;;  %v739_v35 = vmul.f32 1.442695, %v721_v27  ;;  %v4826_v42 = vpop.eup %4825  ;;  %v1150_v43 = vsel %vm993_vm1, %v4542_v38, %v4547_v30  ;;  %v747_v62 = vmul.f32 1.442695, %v725_v34 }
 0x121   : > { %v1161_v17 = vpack.c.bf16 %v1149_v55, %v1148_v57  ;;  %v4828_v3 = vpop.eup %4827  ;;  %v1162_v55 = vpack.c.bf16 %v1151_v6, %v1150_v43  ;;  %v5641_v57 = vmul.f32 0.0873, %v4826_v42  ;;  %v4557_v32 = vunpack.i.l.bf16 %v5547_v54 }
 0x122   : > { %4839 = vpow2.f32 %v739_v35  ;;  %v4553_v11 = vunpack.i.h.bf16 %v5550_v56  ;;  %v4552_v14 = vunpack.i.l.bf16 %v5550_v56  ;;  %v785_v31 = vsub.f32 0.0, %v5632_v45 }
 0x123   : > { %v5557_v63 = vpop.permute.xlu1 %817  ;;  %4841 = vpow2.f32 %v687_v1  ;;  %v4830_v27 = vpop.eup %4829  ;;  %v4558_v1 = vunpack.i.h.bf16 %v5547_v54  ;;  %v667_v35 = vmul.f32 0.0089, %v5381_v52  ;;  %v753_v22 = vmul.f32 1.442695, %v728_v2 }
 0x124   : > { %v5560_v7 = vpop.permute.xlu0 %815  ;;  %4843 = vpow2.f32 %v693_v16  ;;  %v4832_v4 = vpop.eup %4831  ;;  %v788_v26 = vsub.f32 0.0, %v5634_v24  ;;  %v751_v54 = vmul.f32 1.442695, %v727_v51  ;;  %v730_v30 = vmul.f32 -0.0316, %v5362_v41 }
 0x125   : > { %4845 = vpow2.f32 %v745_v39  ;;  %v697_v33 = vmul.f32 1.442695, %v668_v49  ;;  %v768_v16 = vmul.f32 0.0052, %v4830_v27  ;;  %v729_v52 = vmul.f32 -0.0316, %v5359_v40 }
 0x126   : > { %4173 = vmatmul.mubr.msk.bf16.gmra.mrb[12].mxu0 %vm1198_vm2, %v1159_v5  ;;  %v5604_v5 = vmul.f32 0.0873, %v4820_v50  ;;  %v749_v50 = vmul.f32 1.442695, %v726_v20  ;;  %4847 = vpow2.f32 %v743_v37  ;;  %v1153_v39 = vsel %vm993_vm1, %v4553_v11, %v4558_v1 }
 0x127   : > { %v5563_v21 = vpop.permute.xlu1 %821  ;;  %1302 = vmatprep.mubr.bf16.mxu0 %v5022_v0  ;;  %v1152_v20 = vsel %vm993_vm1, %v4552_v14, %v4557_v32  ;;  %v767_v37 = vmul.f32 0.0052, %v4832_v4  ;;  %v864_v41 = vmul.f32 %v5557_v63, %v784_v13  ;;  %v695_v42 = vmul.f32 1.442695, %v667_v35  ;;  %v4879_v63 = vld [vmem:[%s5272_s23 + $0x60] sm:$0xff] }
 0x128   : > { %v5567_v25 = vpop.permute.xlu0 %819  ;;  %v786_v44 = vsub.f32 0.0, %v5604_v5  ;;  %v863_v43 = vmul.f32 %v5560_v7, %v783_v9  ;;  %v732_v2 = vmul.f32 -0.0316, %v5384_v53  ;;  %v755_v27 = vmul.f32 1.442695, %v729_v52 }
 0x129   : > { %v731_v13 = vmul.f32 -0.0316, %v4879_v63  ;;  %v865_v1 = vmul.f32 %v5567_v25, %v785_v31 }
 0x12a   : > { %v866_v7 = vmul.f32 %v5563_v21, %v786_v44  ;;  %v761_v14 = vmul.f32 1.442695, %v732_v2 }
 0x12b   : > { %v5575_v36 = vpop.permute.xlu1 %825  ;;  %v759_v44 = vmul.f32 1.442695, %v731_v13 }
 0x12c   : > { %v5578_v10 = vpop.permute.xlu0 %823 }
 0x12e   : > { %4174 = vmatmul.mubr.msk.bf16.gmra.mrb[16].mxu0 %vm1198_vm2, %v1160_v12  ;;  %v665_v12 = vmul.f32 0.0089, %v5359_v40 }
 0x12f   : > { %v5588_v48 = vpop.permute.xlu1 %829  ;;  %1312 = vmatprep.mubr.bf16.mxu0 %v5022_v0 }
 0x130   : > { %v5592_v28 = vpop.permute.xlu0 %827  ;;  %v691_v46 = vmul.f32 1.442695, %v665_v12 }
 0x132   : > { %4849 = vpow2.f32 %v691_v46  ;;  %v757_v46 = vmul.f32 1.442695, %v730_v30 }
 0x133   : > { %v5606_v8 = vpop.permute.xlu1 %833  ;;  %4851 = vpow2.f32 %v749_v50  ;;  %v1163_v50 = vpack.c.bf16 %v1153_v39, %v1152_v20 }
 0x134   : > { %v5609_v18 = vpop.permute.xlu0 %831  ;;  %4853 = vpow2.f32 %v747_v62 }
 0x135   : > { %4855 = vpow2.f32 %v753_v22  ;;  %v4582_v22 = vld [vmem:[%s6197_s4 + $0x70] ss:$8 sps:$4 sm:$0xff]  }
 0x136   : > { %4175 = vmatmul.mubr.msk.bf16.gmra.mrb[20].mxu0 %vm1198_vm2, %v1161_v17  ;;  %v4834_v17 = vpop.eup %4833  ;;  %4857 = vpow2.f32 %v751_v54 }
 0x137   : > { %v5620_v15 = vpop.permute.xlu1 %837  ;;  %1322 = vmatprep.mubr.bf16.mxu0 %v5022_v0  ;;  %v4836_v56 = vpop.eup %4835  ;;  %v770_v6 = vmul.f32 0.0052, %v4834_v17  ;;  %4859 = vpow2.f32 %v697_v33  ;;  %v868_v33 = vmul.f32 %v5575_v36, %v788_v26  ;;  %v4585_v36 = vld [vmem:[%s6197_s4 + $0x80] ss:$8 sps:$4 sm:$0xff]  }
 0x138   : > { %v5625_v19 = vpop.permute.xlu0 %835  ;;  %v4838_v12 = vpop.eup %4837  ;;  %v709_v9 = vmul.f32 0.0873, %v4836_v56  ;;  %4861 = vpow2.f32 %v695_v42  ;;  %v4583_v42 = vld [vmem:[%s6197_s4 + $0x84] ss:$8 sps:$4 sm:$0xff]  }
 0x139   : > { %v4840_v34 = vpop.eup %4839  ;;  %4863 = vpow2.f32 %v757_v46  ;;  %v712_v52 = vmul.f32 0.0873, %v4838_v12 }
 0x13a   : > { %v4842_v40 = vpop.eup %4841  ;;  %v769_v60 = vmul.f32 0.0052, %v4840_v34  ;;  %4865 = vpow2.f32 %v755_v27 }
 0x13b   : > { %v5638_v23 = vpop.permute.xlu1 %841  ;;  %v5672_v49 = vpop.eup %4843  ;;  %4867 = vpow2.f32 %v761_v14 }
 0x13c   : > { %v5643_v59 = vpop.permute.xlu0 %839  ;;  %4869 = vpow2.f32 %v759_v44  ;;  %v714_v46 = vmul.f32 0.0873, %v5672_v49  ;;  %v4588_v49 = vld [vmem:[%s6197_s4 + $0x90] ss:$8 sps:$4 sm:$0xff]  }
 0x13e   : > { %4176 = vmatmul.mubr.msk.bf16.gmra.mrb[24].mxu0 %vm1198_vm2, %v1162_v55  ;;  %v4846_v55 = vpop.eup %4845 }
 0x13f   : > { %v5653_v29 = vpop.permute.xlu1 %845  ;;  %1332 = vmatprep.mubr.bf16.mxu0 %v5022_v0  ;;  %v787_v0 = vsub.f32 0.0, %v5641_v57  ;;  %v710_v57 = vmul.f32 0.0873, %v4828_v3  ;;  %v4848_v4 = vpop.eup %4847  ;;  %v4580_v3 = vld [vmem:[%s6197_s4 + $0x74] ss:$8 sps:$4 sm:$0xff]  }
 0x140   : > { %v5657_v38 = vpop.permute.xlu0 %843  ;;  %v4850_v17 = vpop.eup %4849  ;;  %v772_v21 = vmul.f32 0.0052, %v4846_v55  ;;  %v771_v30 = vmul.f32 0.0052, %v4848_v4  ;;  %1673 = vmatprep.subr.bf16.mxu1 %v4580_v3  ;;  %v4586_v55 = vld [vmem:[%s6197_s4 + $0x94] ss:$8 sps:$4 sm:$0xff]  }
 0x141   : > { %v4852_v25 = vpop.eup %4851  ;;  %v790_v31 = vsub.f32 0.0, %v710_v57  ;;  %1674 = vmatpush1.bf16.msra.mxu1 %v4582_v22  ;;  %v867_v20 = vmul.f32 %v5578_v10, %v787_v0  ;;  %v713_v27 = vmul.f32 0.0873, %v4850_v17 }
 0x142   : > { %v4854_v56 = vpop.eup %4853  ;;  %v774_v24 = vmul.f32 0.0052, %v4852_v25  ;;  %1675 = vmatprep.subr.bf16.mxu1 %v4583_v42 }
 0x143   : > { %v914_v45 = vpop.permute.xlu1 %913  ;;  %v773_v12 = vmul.f32 0.0052, %v4854_v56  ;;  %v870_v0 = vmul.f32 %v5588_v48, %v790_v31  ;;  %v793_v3 = vsub.f32 0.0, %v713_v27  ;;  %v4603_v27 = vld [vmem:[%s6197_s4 + $0xe0] ss:$8 sps:$4 sm:$0xff]  }
 0x144   : > { %v960_v58 = vmul.f32 %v914_v45, %v768_v16  ;;  %v912_v51 = vpop.permute.xlu0 %911  ;;  %v789_v16 = vsub.f32 0.0, %v709_v9 }
 0x145   : > { %v959_v62 = vmul.f32 %v912_v51, %v767_v37  ;;  %v711_v37 = vmul.f32 0.0873, %v4842_v40  ;;  %v792_v40 = vsub.f32 0.0, %v712_v52  ;;  %1676 = vmatpush1.bf16.msra.mxu1 %v4585_v36  ;;  %v873_v52 = vmul.f32 %v5625_v19, %v793_v3  ;;  %v4628_v3 = vld [vmem:[%s6199_s6 + $0x70] ss:$8 sps:$4 sm:$0xff]  }
 0x146   : > { %v976_v53 = vadd.f32 %v960_v58, %v864_v41  ;;  %4177 = vmatmul.mubr.msk.bf16.gmra.mrb[28].mxu0 %vm1198_vm2, %v1163_v50  ;;  %v869_v58 = vmul.f32 %v5592_v28, %v789_v16  ;;  %1677 = vmatprep.subr.bf16.mxu1 %v4586_v55  ;;  %v4607_v55 = vld [vmem:[%s6199_s6] ss:$8 sps:$4 sm:$0xff]  }
 0x147   : > { %v975_v32 = vadd.f32 %v959_v62, %v863_v43  ;;  %v918_v11 = vpop.permute.xlu1 %917  ;;  %v791_v51 = vsub.f32 0.0, %v711_v37 }
 0x148   : > { %v962_v35 = vmul.f32 %v918_v11, %v770_v6  ;;  %v916_v5 = vpop.permute.xlu0 %915  ;;  %3935 = vperm.xlu1 %4488, %v976_v53   ;;  %v4856_v6 = vpop.eup %4855  ;;  %v872_v53 = vmul.f32 %v5606_v8, %v792_v40  ;;  %v4591_v8 = vld [vmem:[%s6197_s4 + $0xa0] ss:$8 sps:$4 sm:$0xff]  }
 0x149   : > { %v961_v54 = vmul.f32 %v916_v5, %v769_v60  ;;  %3930 = vperm.xlu0 %4477, %v975_v32   ;;  %v4858_v26 = vpop.eup %4857  ;;  %v776_v48 = vmul.f32 0.0052, %v4856_v6  ;;  %1678 = vmatpush1.bf16.msra.mxu1 %v4588_v49  ;;  %v871_v14 = vmul.f32 %v5609_v18, %v791_v51  ;;  %v4601_v51 = vld [vmem:[%s6197_s4 + $0xe4] ss:$8 sps:$4 sm:$0xff]   ;;  %v4613_v49 = vld [vmem:[%s6199_s6 + $0x20] ss:$8 sps:$4 sm:$0xff]  }
 0x14a   : > { %v978_v39 = vadd.f32 %v962_v35, %v866_v7  ;;  %v4860_v50 = vpop.eup %4859  ;;  %v775_v28 = vmul.f32 0.0052, %v4858_v26 }
 0x14b   : > { %v977_v34 = vadd.f32 %v961_v54, %v865_v1  ;;  %v922_v41 = vpop.permute.xlu1 %921  ;;  %v4862_v57 = vpop.eup %4861  ;;  %v794_v1 = vsub.f32 0.0, %v714_v46  ;;  %v716_v32 = vmul.f32 0.0873, %v4860_v50  ;;  %v4597_v46 = vld [vmem:[%s6197_s4 + $0xc0] ss:$8 sps:$4 sm:$0xff]  }
 0x14c   : > { %v964_v43 = vmul.f32 %v922_v41, %v772_v21  ;;  %v920_v45 = vpop.permute.xlu0 %919  ;;  %3945 = vperm.xlu1 %4488, %v978_v39   ;;  %v4864_v4 = vpop.eup %4863  ;;  %v715_v17 = vmul.f32 0.0873, %v4862_v57  ;;  %v4589_v21 = vld [vmem:[%s6197_s4 + $0xa4] ss:$8 sps:$4 sm:$0xff]  }
 0x14d   : > { %v963_v10 = vmul.f32 %v920_v45, %v771_v30  ;;  %3940 = vperm.xlu0 %4477, %v977_v34   ;;  %v4866_v9 = vpop.eup %4865  ;;  %v778_v25 = vmul.f32 0.0052, %v4864_v4  ;;  %1679 = vmatprep.subr.bf16.mxu1 %v4589_v21  ;;  %v874_v56 = vmul.f32 %v5620_v15, %v794_v1  ;;  %v4592_v34 = vld [vmem:[%s6197_s4 + $0xb4] ss:$8 sps:$4 sm:$0xff]   ;;  %v4594_v15 = vld [vmem:[%s6197_s4 + $0xb0] ss:$8 sps:$4 sm:$0xff]  }
 0x14e   : > { %v980_v2 = vadd.f32 %v964_v43, %v868_v33  ;;  %v4868_v31 = vpop.eup %4867  ;;  %v777_v18 = vmul.f32 0.0052, %v4866_v9  ;;  %v796_v33 = vsub.f32 0.0, %v716_v32  ;;  %1680 = vmatpush1.bf16.msra.mxu1 %v4591_v8  ;;  %v795_v39 = vsub.f32 0.0, %v715_v17  ;;  %v4609_v57 = vld [vmem:[%s6199_s6 + $0x4] ss:$8 sps:$4 sm:$0xff]  }
 0x14f   : > { %v979_v63 = vadd.f32 %v963_v10, %v867_v20  ;;  %v926_v13 = vpop.permute.xlu1 %925  ;;  %v4870_v30 = vpop.eup %4869  ;;  %v780_v6 = vmul.f32 0.0052, %v4868_v31  ;;  %1681 = vmatprep.subr.bf16.mxu1 %v4592_v34  ;;  %2088 = vmatprep.subr.bf16.mxu0 %v4609_v57  ;;  %v4618_v4 = vld [vmem:[%s6199_s6 + $0x34] ss:$8 sps:$4 sm:$0xff]   ;;  %v4619_v9 = vld [vmem:[%s6199_s6 + $0x40] ss:$8 sps:$4 sm:$0xff]  }
 0x150   : > { %v966_v62 = vmul.f32 %v926_v13, %v774_v24  ;;  %v924_v60 = vpop.permute.xlu0 %923  ;;  %3955 = vperm.xlu1 %4488, %v980_v2   ;;  %v779_v45 = vmul.f32 0.0052, %v4870_v30  ;;  %v876_v19 = vmul.f32 %v5638_v23, %v796_v33  ;;  %v875_v36 = vmul.f32 %v5643_v59, %v795_v39  ;;  %v4598_v59 = vld [vmem:[%s6197_s4 + $0xd4] ss:$8 sps:$4 sm:$0xff]   ;;  %v4606_v13 = vld [vmem:[%s6197_s4 + $0xf0] ss:$8 sps:$4 sm:$0xff]   ;;  %2089 = vmatpush1.bf16.msra.mxu0 %v4607_v55 }
 0x151   : > { %v965_v7 = vmul.f32 %v924_v60, %v773_v12  ;;  %3950 = vperm.xlu0 %4477, %v979_v63   ;;  %v4595_v12 = vld [vmem:[%s6197_s4 + $0xc4] ss:$8 sps:$4 sm:$0xff]   ;;  %v4604_v63 = vld [vmem:[%s6197_s4 + $0xf4] ss:$8 sps:$4 sm:$0xff]   ;;  %v4610_v60 = vld [vmem:[%s6199_s6 + $0x10] ss:$8 sps:$4 sm:$0xff]  }
 0x152   : > { %v982_v11 = vadd.f32 %v966_v62, %v870_v0  ;;  %1682 = vmatpush1.bf16.msra.mxu1 %v4594_v15  ;;  %v4612_v62 = vld [vmem:[%s6199_s6 + $0x14] ss:$8 sps:$4 sm:$0xff]   ;;  %v4622_v1 = vld [vmem:[%s6199_s6 + $0x50] ss:$8 sps:$4 sm:$0xff]   ;;  %v4627_v32 = vld [vmem:[%s6199_s6 + $0x64] ss:$8 sps:$4 sm:$0xff]  }
 0x153   : > { %v981_v35 = vadd.f32 %v965_v7, %v869_v58  ;;  %v930_v5 = vpop.permute.xlu1 %929  ;;  %1683 = vmatprep.subr.bf16.mxu1 %v4595_v12  ;;  %v4600_v58 = vld [vmem:[%s6197_s4 + $0xd0] ss:$8 sps:$4 sm:$0xff]   ;;  %2090 = vmatprep.subr.bf16.mxu0 %v4612_v62  ;;  %v4633_v17 = vld [vmem:[%s6199_s6 + $0x84] ss:$8 sps:$4 sm:$0xff]   ;;  %v1155_v33 = vld [vmem:[%s6196_s3] sm:$0x3] }
 0x154   : > { %v968_v44 = vmul.f32 %v930_v5, %v776_v48  ;;  %v928_v22 = vpop.permute.xlu0 %927  ;;  %3965 = vperm.xlu1 %4488, %v982_v11   ;;  %v4615_v48 = vld [vmem:[%s6199_s6 + $0x24] ss:$8 sps:$4 sm:$0xff]   ;;  %2091 = vmatpush1.bf16.msra.mxu0 %v4610_v60  ;;  %v4616_v7 = vld [vmem:[%s6199_s6 + $0x30] ss:$8 sps:$4 sm:$0xff]   ;;  %v4625_v11 = vld [vmem:[%s6199_s6 + $0x60] ss:$8 sps:$4 sm:$0xff]  }
 0x155   : > { %v967_v54 = vmul.f32 %v928_v22, %v775_v28  ;;  %3960 = vperm.xlu0 %4477, %v981_v35   ;;  %2092 = vmatprep.subr.bf16.mxu0 %v4615_v48  ;;  %v4621_v28 = vld [vmem:[%s6199_s6 + $0x44] ss:$8 sps:$4 sm:$0xff]   ;;  %v4631_v35 = vld [vmem:[%s6199_s6 + $0x80] ss:$8 sps:$4 sm:$0xff]   ;;  %v4636_v5 = vld [vmem:[%s6199_s6 + $0x94] ss:$8 sps:$4 sm:$0xff]  }
 0x156   : > { %v984_v16 = vadd.f32 %v968_v44, %v872_v53  ;;  %1684 = vmatpush1.bf16.msra.mxu1 %v4597_v46  ;;  %v4624_v53 = vld [vmem:[%s6199_s6 + $0x54] ss:$8 sps:$4 sm:$0xff]   ;;  %v4634_v21 = vld [vmem:[%s6199_s6 + $0x90] ss:$8 sps:$4 sm:$0xff]   ;;  %v4639_v44 = vld [vmem:[%s6199_s6 + $0xa4] ss:$8 sps:$4 sm:$0xff]  }
 0x157   : > { %v983_v20 = vadd.f32 %v967_v54, %v871_v14  ;;  %v934_v37 = vpop.permute.xlu1 %933  ;;  %1685 = vmatprep.subr.bf16.mxu1 %v4598_v59  ;;  %v4630_v14 = vld [vmem:[%s6199_s6 + $0x74] ss:$8 sps:$4 sm:$0xff]   ;;  %v4637_v22 = vld [vmem:[%s6199_s6 + $0xa0] ss:$8 sps:$4 sm:$0xff]   ;;  %v4640_v8 = vld [vmem:[%s6199_s6 + $0xb0] ss:$8 sps:$4 sm:$0xff]  }
 0x158   : > { %v970_v41 = vmul.f32 %v934_v37, %v778_v25  ;;  %v932_v42 = vpop.permute.xlu0 %931  ;;  %3975 = vperm.xlu1 %4488, %v984_v16   ;;  %2093 = vmatpush1.bf16.msra.mxu0 %v4613_v49  ;;  %v4642_v25 = vld [vmem:[%s6199_s6 + $0xb4] ss:$8 sps:$4 sm:$0xff]   ;;  %v4645_v31 = vld [vmem:[%s6199_s6 + $0xc4] ss:$8 sps:$4 sm:$0xff]   ;;  %v4643_v54 = vld [vmem:[%s6199_s6 + $0xc0] ss:$8 sps:$4 sm:$0xff]  }
 0x159   : > { %v969_v43 = vmul.f32 %v932_v42, %v777_v18  ;;  %3970 = vperm.xlu0 %4477, %v983_v20   ;;  %2094 = vmatprep.subr.bf16.mxu0 %v4618_v4  ;;  %v4648_v18 = vld [vmem:[%s6199_s6 + $0xd4] ss:$8 sps:$4 sm:$0xff]   ;;  %v4646_v30 = vld [vmem:[%s6199_s6 + $0xd0] ss:$8 sps:$4 sm:$0xff]   ;;  %v5838_v16 = vsub.s32 1, %v5377_v47 }
 0x15a   : > { %v986_v24 = vadd.f32 %v970_v41, %v874_v56  ;;  %1686 = vmatpush1.bf16.msra.mxu1 %v4600_v58  ;;  %v5832_v56 = vsub.s32 0, %v5377_v47 }
 0x15b   : > { %v985_v26 = vadd.f32 %v969_v43, %v873_v52  ;;  %v938_v10 = vpop.permute.xlu1 %937  ;;  %1687 = vmatprep.subr.bf16.mxu1 %v4601_v51  ;;  %v5844_v39 = vrot.slane %v1155_v33, %v5838_v16 }
 0x15c   : > { %v972_v0 = vmul.f32 %v938_v10, %v780_v6  ;;  %v936_v40 = vpop.permute.xlu0 %935  ;;  %3985 = vperm.xlu1 %4488, %v986_v24   ;;  %2095 = vmatpush1.bf16.msra.mxu0 %v4616_v7  ;;  %v5841_v52 = vrot.slane %v1155_v33, %v5832_v56 }
 0x15d   : > { %v971_v2 = vmul.f32 %v936_v40, %v779_v45  ;;  %3980 = vperm.xlu0 %4477, %v985_v26   ;;  %2096 = vmatprep.subr.bf16.mxu0 %v4621_v28 }
 0x15e   : > { %v988_v23 = vadd.f32 %v972_v0, %v876_v19  ;;  %1688 = vmatpush1.bf16.msra.mxu1 %v4603_v27 }
 0x15f   : > { %v987_v50 = vadd.f32 %v971_v2, %v875_v36  ;;  %1689 = vmatprep.subr.bf16.mxu1 %v4604_v63 }
 0x160   : > { %3995 = vperm.xlu1 %4488, %v988_v23   ;;  %2097 = vmatpush1.bf16.msra.mxu0 %v4619_v9 }
 0x161   : > { %3990 = vperm.xlu0 %4477, %v987_v50   ;;  %2098 = vmatprep.subr.bf16.mxu0 %v4624_v53 }
 0x162   : > { %1690 = vmatpush1.bf16.msra.mxu1 %v4606_v13 }
 0x164   : > { %2099 = vmatpush1.bf16.msra.mxu0 %v4622_v1 }
 0x165   : > { %2100 = vmatprep.subr.bf16.mxu0 %v4627_v32 }
 0x168   : > { %2101 = vmatpush1.bf16.msra.mxu0 %v4625_v11 }
 0x169   : > { %2102 = vmatprep.subr.bf16.mxu0 %v4630_v14 }
 0x16c   : > { %2103 = vmatpush1.bf16.msra.mxu0 %v4628_v3 }
 0x16d   : > { %2104 = vmatprep.subr.bf16.mxu0 %v4633_v17 }
 0x170   : > { %2105 = vmatpush1.bf16.msra.mxu0 %v4631_v35 }
 0x171   : > { %2106 = vmatprep.subr.bf16.mxu0 %v4636_v5 }
 0x174   : > { %2107 = vmatpush1.bf16.msra.mxu0 %v4634_v21 }
 0x175   : > { %2108 = vmatprep.subr.bf16.mxu0 %v4639_v44 }
 0x178   : > { %2109 = vmatpush1.bf16.msra.mxu0 %v4637_v22 }
 0x179   : > { %2110 = vmatprep.subr.bf16.mxu0 %v4642_v25 }
 0x17c   : > { %2111 = vmatpush1.bf16.msra.mxu0 %v4640_v8 }
 0x17d   : > { %2112 = vmatprep.subr.bf16.mxu0 %v4645_v31 }
 0x180   : > { %2113 = vmatpush1.bf16.msra.mxu0 %v4643_v54 }
 0x181   : > { %2114 = vmatprep.subr.bf16.mxu0 %v4648_v18 }
 0x184   : > { %2115 = vmatpush1.bf16.msra.mxu0 %v4646_v30 }
 0x1e1   : > { %v1264_v20 = vpop.f32.mrb[0].mxu0 }
 0x1e2   : > { %v1265_v37 = vadd.f32 %v1264_v20, %v5841_v52  ;;  %v1266_v34 = vpop.f32.mrb[1].mxu0 }
 0x1e3   : > { %v1267_v41 = vadd.f32 %v1266_v34, %v5844_v39  ;;  %v1268_v42 = vpop.f32.mrb[2].mxu0 }
 0x1e4   : > { %v1375_v6 = vmul.f32 0.01, %v1265_v37  ;;  %v1269_v15 = vadd.f32 %v1268_v42, %v5841_v52  ;;  %v1270_v43 = vpop.f32.mrb[3].mxu0  ;;  %vm1343_vm3 = vcmp.gt.f32.partialorder %v1265_v37, 0.0 }
 0x1e5   : > { %v1376_v47 = vmul.f32 0.01, %v1267_v41  ;;  %v1271_v45 = vadd.f32 %v1270_v43, %v5844_v39  ;;  %vm1344_vm5 = vcmp.gt.f32.partialorder %v1267_v41, 0.0 }
 0x1e6   : > { %vm1345_vm4 = vcmp.gt.f32.partialorder %v1269_v15, 0.0  ;;  %v1377_v19 = vmul.f32 0.01, %v1269_v15  ;;  %v1407_v36 = vsel %vm1343_vm3, %v1265_v37, %v1375_v6 }
 0x1e7   : > { %v1378_v24 = vmul.f32 0.01, %v1271_v45  ;;  %vm1346_vm6 = vcmp.gt.f32.partialorder %v1271_v45, 0.0  ;;  %v1408_v12 = vsel %vm1344_vm5, %v1267_v41, %v1376_v47 }
 0x1e8   : > { %v1409_v26 = vsel %vm1345_vm4, %v1269_v15, %v1377_v19 }
 0x1e9   : > { %v1274_v10 = vpop.f32.mrb[4].mxu0  ;;  %v1410_v0 = vsel %vm1346_vm6, %v1271_v45, %v1378_v24  ;;  %v1472_v40 = vpack.c.bf16 %v1409_v26, %v1407_v36 }
 0x1ea   : > { %v1275_v46 = vadd.f32 %v1274_v10, %v5841_v52  ;;  %v1276_v2 = vpop.f32.mrb[5].mxu0  ;;  %v1473_v23 = vpack.c.bf16 %v1410_v0, %v1408_v12 }
 0x1eb   : > { %v1277_v50 = vadd.f32 %v1276_v2, %v5844_v39  ;;  %v1278_v59 = vpop.f32.mrb[6].mxu0 }
 0x1ec   : > { %v1379_v58 = vmul.f32 0.01, %v1275_v46  ;;  %v1279_v51 = vadd.f32 %v1278_v59, %v5841_v52  ;;  %v1280_v27 = vpop.f32.mrb[7].mxu0  ;;  %1691 = vmatprep.mubr.bf16.mxu1 %v1473_v23  ;;  %vm1347_vm7 = vcmp.gt.f32.partialorder %v1275_v46, 0.0 }
 0x1ed   : > { %v1380_v63 = vmul.f32 0.01, %v1277_v50  ;;  %v1281_v13 = vadd.f32 %v1280_v27, %v5844_v39  ;;  %1692 = vmatmul.mubr.bf16.vlgmr.msra.gmra.mrb[0].mxu1 %v1472_v40  ;;  %vm1348_vm8 = vcmp.gt.f32.partialorder %v1277_v50, 0.0 }
 0x1ee   : > { %vm1349_vm9 = vcmp.gt.f32.partialorder %v1279_v51, 0.0  ;;  %v1381_v55 = vmul.f32 0.01, %v1279_v51  ;;  %v1411_v62 = vsel %vm1347_vm7, %v1275_v46, %v1379_v58 }
 0x1ef   : > { %vm1350_vm10 = vcmp.gt.f32.partialorder %v1281_v13, 0.0  ;;  %v1382_v57 = vmul.f32 0.01, %v1281_v13  ;;  %v1412_v49 = vsel %vm1348_vm8, %v1277_v50, %v1380_v63 }
 0x1f0   : > { %v1413_v60 = vsel %vm1349_vm9, %v1279_v51, %v1381_v55 }
 0x1f1   : > { %v1284_v48 = vpop.f32.mrb[8].mxu0  ;;  %v1414_v4 = vsel %vm1350_vm10, %v1281_v13, %v1382_v57  ;;  %v1474_v7 = vpack.c.bf16 %v1413_v60, %v1411_v62 }
 0x1f2   : > { %v1285_v28 = vadd.f32 %v1284_v48, %v5841_v52  ;;  %v1286_v9 = vpop.f32.mrb[9].mxu0  ;;  %v1475_v53 = vpack.c.bf16 %v1414_v4, %v1412_v49 }
 0x1f3   : > { %v1287_v1 = vadd.f32 %v1286_v9, %v5844_v39  ;;  %v1288_v32 = vpop.f32.mrb[10].mxu0 }
 0x1f4   : > { %v1383_v11 = vmul.f32 0.01, %v1285_v28  ;;  %v1289_v14 = vadd.f32 %v1288_v32, %v5841_v52  ;;  %v1290_v3 = vpop.f32.mrb[11].mxu0  ;;  %1701 = vmatprep.mubr.bf16.mxu1 %v1475_v53  ;;  %vm1351_vm11 = vcmp.gt.f32.partialorder %v1285_v28, 0.0 }
 0x1f5   : > { %v1384_v17 = vmul.f32 0.01, %v1287_v1  ;;  %v1291_v35 = vadd.f32 %v1290_v3, %v5844_v39  ;;  %1702 = vmatmul.mubr.bf16.gmra.mrb[4].mxu1 %v1474_v7  ;;  %vm1352_vm12 = vcmp.gt.f32.partialorder %v1287_v1, 0.0 }
 0x1f6   : > { %vm1353_vm13 = vcmp.gt.f32.partialorder %v1289_v14, 0.0  ;;  %v1385_v5 = vmul.f32 0.01, %v1289_v14  ;;  %v1415_v44 = vsel %vm1351_vm11, %v1285_v28, %v1383_v11 }
 0x1f7   : > { %vm1354_vm14 = vcmp.gt.f32.partialorder %v1291_v35, 0.0  ;;  %v1386_v21 = vmul.f32 0.01, %v1291_v35  ;;  %v1416_v8 = vsel %vm1352_vm12, %v1287_v1, %v1384_v17 }
 0x1f8   : > { %v1417_v22 = vsel %vm1353_vm13, %v1289_v14, %v1385_v5 }
 0x1f9   : > { %v1294_v25 = vpop.f32.mrb[12].mxu0  ;;  %v1418_v31 = vsel %vm1354_vm14, %v1291_v35, %v1386_v21  ;;  %v1476_v54 = vpack.c.bf16 %v1417_v22, %v1415_v44 }
 0x1fa   : > { %v1295_v18 = vadd.f32 %v1294_v25, %v5841_v52  ;;  %v1296_v30 = vpop.f32.mrb[13].mxu0  ;;  %v1477_v33 = vpack.c.bf16 %v1418_v31, %v1416_v8 }
 0x1fb   : > { %v1297_v20 = vadd.f32 %v1296_v30, %v5844_v39  ;;  %v1298_v37 = vpop.f32.mrb[14].mxu0 }
 0x1fc   : > { %v1387_v34 = vmul.f32 0.01, %v1295_v18  ;;  %v1299_v41 = vadd.f32 %v1298_v37, %v5841_v52  ;;  %v1300_v42 = vpop.f32.mrb[15].mxu0  ;;  %1711 = vmatprep.mubr.bf16.mxu1 %v1477_v33  ;;  %vm1355_vm15 = vcmp.gt.f32.partialorder %v1295_v18, 0.0 }
 0x1fd   : > { %v1388_v6 = vmul.f32 0.01, %v1297_v20  ;;  %v1301_v15 = vadd.f32 %v1300_v42, %v5844_v39  ;;  %1712 = vmatmul.mubr.bf16.gmra.mrb[8].mxu1 %v1476_v54  ;;  %vm1356_vm0 = vcmp.gt.f32.partialorder %v1297_v20, 0.0 }
 0x1fe   : > { %vm1357_vm3 = vcmp.gt.f32.partialorder %v1299_v41, 0.0  ;;  %v1389_v43 = vmul.f32 0.01, %v1299_v41  ;;  %v1419_v45 = vsel %vm1355_vm15, %v1295_v18, %v1387_v34 }
 0x1ff   : > { %vm1358_vm4 = vcmp.gt.f32.partialorder %v1301_v15, 0.0  ;;  %v1390_v47 = vmul.f32 0.01, %v1301_v15  ;;  %v1420_v36 = vsel %vm1356_vm0, %v1297_v20, %v1388_v6 }
 0x200   : > { %v1421_v19 = vsel %vm1357_vm3, %v1299_v41, %v1389_v43 }
 0x201   : > { %v1304_v24 = vpop.f32.mrb[16].mxu0  ;;  %v1422_v26 = vsel %vm1358_vm4, %v1301_v15, %v1390_v47  ;;  %v1478_v10 = vpack.c.bf16 %v1421_v19, %v1419_v45 }
 0x202   : > { %v1305_v12 = vadd.f32 %v1304_v24, %v5841_v52  ;;  %v1306_v0 = vpop.f32.mrb[17].mxu0  ;;  %v1479_v40 = vpack.c.bf16 %v1422_v26, %v1420_v36 }
 0x203   : > { %v1307_v46 = vadd.f32 %v1306_v0, %v5844_v39  ;;  %v1308_v2 = vpop.f32.mrb[18].mxu0 }
 0x204   : > { %v1391_v23 = vmul.f32 0.01, %v1305_v12  ;;  %v1309_v50 = vadd.f32 %v1308_v2, %v5841_v52  ;;  %v1310_v59 = vpop.f32.mrb[19].mxu0  ;;  %1721 = vmatprep.mubr.bf16.mxu1 %v1479_v40  ;;  %vm1359_vm5 = vcmp.gt.f32.partialorder %v1305_v12, 0.0 }
 0x205   : > { %v1392_v58 = vmul.f32 0.01, %v1307_v46  ;;  %v1311_v51 = vadd.f32 %v1310_v59, %v5844_v39  ;;  %1722 = vmatmul.mubr.bf16.gmra.mrb[12].mxu1 %v1478_v10  ;;  %vm1360_vm6 = vcmp.gt.f32.partialorder %v1307_v46, 0.0 }
 0x206   : > { %vm1361_vm7 = vcmp.gt.f32.partialorder %v1309_v50, 0.0  ;;  %v1393_v27 = vmul.f32 0.01, %v1309_v50  ;;  %v1423_v13 = vsel %vm1359_vm5, %v1305_v12, %v1391_v23 }
 0x207   : > { %vm1362_vm8 = vcmp.gt.f32.partialorder %v1311_v51, 0.0  ;;  %v1394_v63 = vmul.f32 0.01, %v1311_v51  ;;  %v1424_v62 = vsel %vm1360_vm6, %v1307_v46, %v1392_v58 }
 0x208   : > { %v1425_v55 = vsel %vm1361_vm7, %v1309_v50, %v1393_v27 }
 0x209   : > { %v1314_v57 = vpop.f32.mrb[20].mxu0  ;;  %v1426_v60 = vsel %vm1362_vm8, %v1311_v51, %v1394_v63  ;;  %v1480_v48 = vpack.c.bf16 %v1425_v55, %v1423_v13 }
 0x20a   : > { %v1315_v49 = vadd.f32 %v1314_v57, %v5841_v52  ;;  %v1316_v4 = vpop.f32.mrb[21].mxu0  ;;  %v1481_v7 = vpack.c.bf16 %v1426_v60, %v1424_v62  ;;  %v4654_v62 = vld [vmem:[%s6199_s6 + $0xf4] ss:$8 sps:$4 sm:$0xff]   ;;  %v4652_v60 = vld [vmem:[%s6199_s6 + $0xf0] ss:$8 sps:$4 sm:$0xff]  }
 0x20b   : > { %v1317_v28 = vadd.f32 %v1316_v4, %v5844_v39  ;;  %v1318_v9 = vpop.f32.mrb[22].mxu0  ;;  %v4660_v4 = vld [vmem:[#allocation2 + $0x14] ss:$8 sps:$4 sm:$0xff]  }
 0x20c   : > { %v1395_v53 = vmul.f32 0.01, %v1315_v49  ;;  %v1319_v1 = vadd.f32 %v1318_v9, %v5841_v52  ;;  %v1320_v32 = vpop.f32.mrb[23].mxu0  ;;  %1731 = vmatprep.mubr.bf16.mxu1 %v1481_v7  ;;  %vm1363_vm9 = vcmp.gt.f32.partialorder %v1315_v49, 0.0  ;;  %v4658_v7 = vld [vmem:[#allocation2 + $0x10] ss:$8 sps:$4 sm:$0xff]  }
 0x20d   : > { %v1396_v11 = vmul.f32 0.01, %v1317_v28  ;;  %v1321_v14 = vadd.f32 %v1320_v32, %v5844_v39  ;;  %1732 = vmatmul.mubr.bf16.gmra.mrb[16].mxu1 %v1480_v48  ;;  %vm1364_vm10 = vcmp.gt.f32.partialorder %v1317_v28, 0.0  ;;  %v4655_v48 = vld [vmem:[#allocation2] ss:$8 sps:$4 sm:$0xff]  }
 0x20e   : > { %vm1365_vm11 = vcmp.gt.f32.partialorder %v1319_v1, 0.0  ;;  %v1397_v3 = vmul.f32 0.01, %v1319_v1  ;;  %v1427_v35 = vsel %vm1363_vm9, %v1315_v49, %v1395_v53  ;;  %v4657_v49 = vld [vmem:[#allocation2 + $0x4] ss:$8 sps:$4 sm:$0xff]  }
 0x20f   : > { %vm1366_vm12 = vcmp.gt.f32.partialorder %v1321_v14, 0.0  ;;  %v1398_v17 = vmul.f32 0.01, %v1321_v14  ;;  %v1428_v44 = vsel %vm1364_vm10, %v1317_v28, %v1396_v11  ;;  %2517 = vmatprep.subr.bf16.mxu1 %v4657_v49  ;;  %v4663_v28 = vld [vmem:[#allocation2 + $0x24] ss:$8 sps:$4 sm:$0xff]  }
 0x210   : > { %v1429_v5 = vsel %vm1365_vm11, %v1319_v1, %v1397_v3  ;;  %2518 = vmatpush1.bf16.msra.mxu1 %v4655_v48  ;;  %v4661_v9 = vld [vmem:[#allocation2 + $0x20] ss:$8 sps:$4 sm:$0xff]   ;;  %v4666_v53 = vld [vmem:[#allocation2 + $0x34] ss:$8 sps:$4 sm:$0xff]   ;;  %v4664_v1 = vld [vmem:[#allocation2 + $0x30] ss:$8 sps:$4 sm:$0xff]  }
 0x211   : > { %v1324_v21 = vpop.f32.mrb[24].mxu0  ;;  %v1430_v22 = vsel %vm1366_vm12, %v1321_v14, %v1398_v17  ;;  %v1482_v25 = vpack.c.bf16 %v1429_v5, %v1427_v35  ;;  %2519 = vmatprep.subr.bf16.mxu1 %v4660_v4  ;;  %v4669_v32 = vld [vmem:[#allocation2 + $0x44] ss:$8 sps:$4 sm:$0xff]   ;;  %v4667_v11 = vld [vmem:[#allocation2 + $0x40] ss:$8 sps:$4 sm:$0xff]  }
 0x212   : > { %v1325_v8 = vadd.f32 %v1324_v21, %v5841_v52  ;;  %v1326_v31 = vpop.f32.mrb[25].mxu0  ;;  %v1483_v54 = vpack.c.bf16 %v1430_v22, %v1428_v44  ;;  %v4672_v14 = vld [vmem:[#allocation2 + $0x54] ss:$8 sps:$4 sm:$0xff]   ;;  %v4670_v3 = vld [vmem:[#allocation2 + $0x50] ss:$8 sps:$4 sm:$0xff]  }
 0x213   : > { %v1327_v18 = vadd.f32 %v1326_v31, %v5844_v39  ;;  %v1328_v30 = vpop.f32.mrb[26].mxu0  ;;  %v4675_v17 = vld [vmem:[#allocation2 + $0x64] ss:$8 sps:$4 sm:$0xff]   ;;  %v4673_v35 = vld [vmem:[#allocation2 + $0x60] ss:$8 sps:$4 sm:$0xff]  }
 0x214   : > { %v1399_v33 = vmul.f32 0.01, %v1325_v8  ;;  %v1329_v20 = vadd.f32 %v1328_v30, %v5841_v52  ;;  %v1330_v37 = vpop.f32.mrb[27].mxu0  ;;  %1741 = vmatprep.mubr.bf16.mxu1 %v1483_v54  ;;  %vm1367_vm13 = vcmp.gt.f32.partialorder %v1325_v8, 0.0  ;;  %2520 = vmatpush1.bf16.msra.mxu1 %v4658_v7  ;;  %v4678_v5 = vld [vmem:[#allocation2 + $0x74] ss:$8 sps:$4 sm:$0xff]  }
 0x215   : > { %v1400_v34 = vmul.f32 0.01, %v1327_v18  ;;  %v1331_v41 = vadd.f32 %v1330_v37, %v5844_v39  ;;  %1742 = vmatmul.mubr.bf16.gmra.mrb[20].mxu1 %v1482_v25  ;;  %vm1368_vm14 = vcmp.gt.f32.partialorder %v1327_v18, 0.0  ;;  %2521 = vmatprep.subr.bf16.mxu1 %v4663_v28  ;;  %v4676_v21 = vld [vmem:[#allocation2 + $0x70] ss:$8 sps:$4 sm:$0xff]  }
 0x216   : > { %vm1369_vm15 = vcmp.gt.f32.partialorder %v1329_v20, 0.0  ;;  %v1401_v42 = vmul.f32 0.01, %v1329_v20  ;;  %v1431_v15 = vsel %vm1367_vm13, %v1325_v8, %v1399_v33  ;;  %v4681_v44 = vld [vmem:[#allocation2 + $0x84] ss:$8 sps:$4 sm:$0xff]  }
 0x217   : > { %vm1370_vm0 = vcmp.gt.f32.partialorder %v1331_v41, 0.0  ;;  %v1402_v6 = vmul.f32 0.01, %v1331_v41  ;;  %v1432_v45 = vsel %vm1368_vm14, %v1327_v18, %v1400_v34  ;;  %v4679_v22 = vld [vmem:[#allocation2 + $0x80] ss:$8 sps:$4 sm:$0xff]  }
 0x218   : > { %v1433_v43 = vsel %vm1369_vm15, %v1329_v20, %v1401_v42  ;;  %2522 = vmatpush1.bf16.msra.mxu1 %v4661_v9  ;;  %v4684_v25 = vld [vmem:[#allocation2 + $0x94] ss:$8 sps:$4 sm:$0xff]   ;;  %v4682_v8 = vld [vmem:[#allocation2 + $0x90] ss:$8 sps:$4 sm:$0xff]   ;;  %v4687_v31 = vld [vmem:[#allocation2 + $0xa4] ss:$8 sps:$4 sm:$0xff]  }
 0x219   : > { %v1334_v47 = vpop.f32.mrb[28].mxu0  ;;  %v1434_v19 = vsel %vm1370_vm0, %v1331_v41, %v1402_v6  ;;  %v1484_v24 = vpack.c.bf16 %v1433_v43, %v1431_v15  ;;  %2523 = vmatprep.subr.bf16.mxu1 %v4666_v53  ;;  %v4685_v54 = vld [vmem:[#allocation2 + $0xa0] ss:$8 sps:$4 sm:$0xff]   ;;  %v4690_v18 = vld [vmem:[#allocation2 + $0xb4] ss:$8 sps:$4 sm:$0xff]  }
 0x21a   : > { %v1335_v36 = vadd.f32 %v1334_v47, %v5841_v52  ;;  %v1336_v26 = vpop.f32.mrb[29].mxu0  ;;  %v1485_v10 = vpack.c.bf16 %v1434_v19, %v1432_v45  ;;  %v4688_v30 = vld [vmem:[#allocation2 + $0xb0] ss:$8 sps:$4 sm:$0xff]   ;;  %v4693_v33 = vld [vmem:[#allocation2 + $0xc4] ss:$8 sps:$4 sm:$0xff]  }
 0x21b   : > { %v1337_v12 = vadd.f32 %v1336_v26, %v5844_v39  ;;  %v1338_v0 = vpop.f32.mrb[30].mxu0  ;;  %v4691_v20 = vld [vmem:[#allocation2 + $0xc0] ss:$8 sps:$4 sm:$0xff]   ;;  %v4696_v37 = vld [vmem:[#allocation2 + $0xd4] ss:$8 sps:$4 sm:$0xff]  }
 0x21c   : > { %v1403_v40 = vmul.f32 0.01, %v1335_v36  ;;  %v1339_v46 = vadd.f32 %v1338_v0, %v5841_v52  ;;  %v1340_v2 = vpop.f32.mrb[31].mxu0  ;;  %1751 = vmatprep.mubr.bf16.mxu1 %v1485_v10  ;;  %vm1371_vm3 = vcmp.gt.f32.partialorder %v1335_v36, 0.0  ;;  %v4651_v52 = vld [vmem:[%s6199_s6 + $0xe4] ss:$8 sps:$4 sm:$0xff]   ;;  %2524 = vmatpush1.bf16.msra.mxu1 %v4664_v1 }
 0x21d   : > { %v1404_v23 = vmul.f32 0.01, %v1337_v12  ;;  %v1341_v50 = vadd.f32 %v1340_v2, %v5844_v39  ;;  %1752 = vmatmul.mubr.bf16.gmra.mrb[24].mxu1 %v1484_v24  ;;  %vm1372_vm4 = vcmp.gt.f32.partialorder %v1337_v12, 0.0  ;;  %v4649_v39 = vld [vmem:[%s6199_s6 + $0xe0] ss:$8 sps:$4 sm:$0xff]   ;;  %2116 = vmatprep.subr.bf16.mxu0 %v4651_v52 }
 0x21e   : > { %vm1373_vm5 = vcmp.gt.f32.partialorder %v1339_v46, 0.0  ;;  %v1405_v59 = vmul.f32 0.01, %v1339_v46  ;;  %v1435_v51 = vsel %vm1371_vm3, %v1335_v36, %v1403_v40  ;;  %2117 = vmatpush1.bf16.msra.mxu0 %v4649_v39  ;;  %2525 = vmatprep.subr.bf16.mxu1 %v4669_v32  ;;  %v4694_v34 = vld [vmem:[#allocation2 + $0xd0] ss:$8 sps:$4 sm:$0xff]  }
 0x21f   : > { %vm1374_vm6 = vcmp.gt.f32.partialorder %v1341_v50, 0.0  ;;  %v1406_v58 = vmul.f32 0.01, %v1341_v50  ;;  %v1436_v63 = vsel %vm1372_vm4, %v1337_v12, %v1404_v23  ;;  %2118 = vmatprep.subr.bf16.mxu0 %v4654_v62  ;;  %v1471_v41 = vld [vmem:[%s6198_s5] sm:$0x3] }
 0x220   : > { %v1437_v27 = vsel %vm1373_vm5, %v1339_v46, %v1405_v59  ;;  %2526 = vmatpush1.bf16.msra.mxu1 %v4667_v11  ;;  %v5894_v42 = vrot.slane %v1471_v41, %v5832_v56  ;;  %v5897_v6 = vrot.slane %v1471_v41, %v5838_v16 }
 0x221   : > { %v1438_v13 = vsel %vm1374_vm6, %v1341_v50, %v1406_v58  ;;  %v1486_v55 = vpack.c.bf16 %v1437_v27, %v1435_v51  ;;  %2527 = vmatprep.subr.bf16.mxu1 %v4672_v14 }
 0x222   : > { %v1487_v57 = vpack.c.bf16 %v1438_v13, %v1436_v63  ;;  %2119 = vmatpush1.bf16.msra.mxu0 %v4652_v60 }
 0x224   : > { %1761 = vmatprep.mubr.bf16.mxu1 %v1487_v57  ;;  %2528 = vmatpush1.bf16.msra.mxu1 %v4670_v3 }
 0x225   : > { %1762 = vmatmul.mubr.bf16.gmra.mrb[28].mxu1 %v1486_v55  ;;  %2529 = vmatprep.subr.bf16.mxu1 %v4675_v17 }
 0x228   : > { %2530 = vmatpush1.bf16.msra.mxu1 %v4673_v35 }
 0x229   : > { %2531 = vmatprep.subr.bf16.mxu1 %v4678_v5 }
 0x22c   : > { %2532 = vmatpush1.bf16.msra.mxu1 %v4676_v21 }
 0x22d   : > { %2533 = vmatprep.subr.bf16.mxu1 %v4681_v44 }
 0x230   : > { %2534 = vmatpush1.bf16.msra.mxu1 %v4679_v22 }
 0x231   : > { %2535 = vmatprep.subr.bf16.mxu1 %v4684_v25 }
 0x234   : > { %2536 = vmatpush1.bf16.msra.mxu1 %v4682_v8 }
 0x235   : > { %2537 = vmatprep.subr.bf16.mxu1 %v4687_v31 }
 0x238   : > { %2538 = vmatpush1.bf16.msra.mxu1 %v4685_v54 }
 0x239   : > { %2539 = vmatprep.subr.bf16.mxu1 %v4690_v18 }
 0x23c   : > { %2540 = vmatpush1.bf16.msra.mxu1 %v4688_v30 }
 0x23d   : > { %2541 = vmatprep.subr.bf16.mxu1 %v4693_v33 }
 0x240   : > { %2542 = vmatpush1.bf16.msra.mxu1 %v4691_v20 }
 0x241   : > { %2543 = vmatprep.subr.bf16.mxu1 %v4696_v37 }
 0x244   : > { %2544 = vmatpush1.bf16.msra.mxu1 %v4694_v34 }
 0x2c0   : > { %v1693_v15 = vpop.f32.mrb[0].mxu1 }
 0x2c1   : > { %v1694_v43 = vadd.f32 %v1693_v15, %v5894_v42  ;;  %v1695_v47 = vpop.f32.mrb[1].mxu1 }
 0x2c2   : > { %v1696_v45 = vadd.f32 %v1695_v47, %v5897_v6  ;;  %v1697_v19 = vpop.f32.mrb[2].mxu1 }
 0x2c3   : > { %v1804_v24 = vmul.f32 0.01, %v1694_v43  ;;  %v1698_v36 = vadd.f32 %v1697_v19, %v5894_v42  ;;  %v1699_v26 = vpop.f32.mrb[3].mxu1  ;;  %vm1772_vm7 = vcmp.gt.f32.partialorder %v1694_v43, 0.0 }
 0x2c4   : > { %v1805_v10 = vmul.f32 0.01, %v1696_v45  ;;  %v1700_v12 = vadd.f32 %v1699_v26, %v5897_v6  ;;  %vm1773_vm8 = vcmp.gt.f32.partialorder %v1696_v45, 0.0 }
 0x2c5   : > { %vm1774_vm9 = vcmp.gt.f32.partialorder %v1698_v36, 0.0  ;;  %v1806_v0 = vmul.f32 0.01, %v1698_v36  ;;  %v1836_v46 = vsel %vm1772_vm7, %v1694_v43, %v1804_v24 }
 0x2c6   : > { %vm1775_vm10 = vcmp.gt.f32.partialorder %v1700_v12, 0.0  ;;  %v1807_v40 = vmul.f32 0.01, %v1700_v12  ;;  %v1837_v59 = vsel %vm1773_vm8, %v1696_v45, %v1805_v10 }
 0x2c7   : > { %v1838_v2 = vsel %vm1774_vm9, %v1698_v36, %v1806_v0 }
 0x2c8   : > { %v1901_v23 = vpack.c.bf16 %v1838_v2, %v1836_v46  ;;  %v1703_v50 = vpop.f32.mrb[4].mxu1  ;;  %v1839_v58 = vsel %vm1775_vm10, %v1700_v12, %v1807_v40 }
 0x2c9   : > { %v1704_v51 = vadd.f32 %v1703_v50, %v5894_v42  ;;  %v1705_v27 = vpop.f32.mrb[5].mxu1  ;;  %v1902_v63 = vpack.c.bf16 %v1839_v58, %v1837_v59 }
 0x2ca   : > { %v1706_v13 = vadd.f32 %v1705_v27, %v5897_v6  ;;  %v1707_v55 = vpop.f32.mrb[6].mxu1 }
 0x2cb   : > { %v1808_v57 = vmul.f32 0.01, %v1704_v51  ;;  %v1708_v52 = vadd.f32 %v1707_v55, %v5894_v42  ;;  %v1709_v39 = vpop.f32.mrb[7].mxu1  ;;  %2120 = vmatprep.mubr.bf16.mxu0 %v1902_v63  ;;  %vm1776_vm11 = vcmp.gt.f32.partialorder %v1704_v51, 0.0 }
 0x2cc   : > { %v1809_v62 = vmul.f32 0.01, %v1706_v13  ;;  %v1710_v60 = vadd.f32 %v1709_v39, %v5897_v6  ;;  %2121 = vmatmul.mubr.bf16.vlgmr.msra.gmra.mrb[32].mxu0 %v1901_v23  ;;  %vm1777_vm12 = vcmp.gt.f32.partialorder %v1706_v13, 0.0 }
 0x2cd   : > { %vm1778_vm13 = vcmp.gt.f32.partialorder %v1708_v52, 0.0  ;;  %v1810_v48 = vmul.f32 0.01, %v1708_v52  ;;  %v1840_v4 = vsel %vm1776_vm11, %v1704_v51, %v1808_v57 }
 0x2ce   : > { %vm1779_vm14 = vcmp.gt.f32.partialorder %v1710_v60, 0.0  ;;  %v1811_v49 = vmul.f32 0.01, %v1710_v60  ;;  %v1841_v9 = vsel %vm1777_vm12, %v1706_v13, %v1809_v62 }
 0x2cf   : > { %v1842_v7 = vsel %vm1778_vm13, %v1708_v52, %v1810_v48 }
 0x2d0   : > { %v1713_v28 = vpop.f32.mrb[8].mxu1  ;;  %v1843_v53 = vsel %vm1779_vm14, %v1710_v60, %v1811_v49  ;;  %v1903_v1 = vpack.c.bf16 %v1842_v7, %v1840_v4 }
 0x2d1   : > { %v1714_v32 = vadd.f32 %v1713_v28, %v5894_v42  ;;  %v1715_v11 = vpop.f32.mrb[9].mxu1  ;;  %v1904_v14 = vpack.c.bf16 %v1843_v53, %v1841_v9 }
 0x2d2   : > { %v1716_v3 = vadd.f32 %v1715_v11, %v5897_v6  ;;  %v1717_v17 = vpop.f32.mrb[10].mxu1 }
 0x2d3   : > { %v1812_v35 = vmul.f32 0.01, %v1714_v32  ;;  %v1718_v5 = vadd.f32 %v1717_v17, %v5894_v42  ;;  %v1719_v21 = vpop.f32.mrb[11].mxu1  ;;  %2130 = vmatprep.mubr.bf16.mxu0 %v1904_v14  ;;  %vm1780_vm15 = vcmp.gt.f32.partialorder %v1714_v32, 0.0 }
 0x2d4   : > { %v1813_v44 = vmul.f32 0.01, %v1716_v3  ;;  %v1720_v22 = vadd.f32 %v1719_v21, %v5897_v6  ;;  %2131 = vmatmul.mubr.bf16.gmra.mrb[36].mxu0 %v1903_v1  ;;  %vm1781_vm0 = vcmp.gt.f32.partialorder %v1716_v3, 0.0 }
 0x2d5   : > { %vm1782_vm3 = vcmp.gt.f32.partialorder %v1718_v5, 0.0  ;;  %v1814_v25 = vmul.f32 0.01, %v1718_v5  ;;  %v1844_v31 = vsel %vm1780_vm15, %v1714_v32, %v1812_v35 }
 0x2d6   : > { %vm1783_vm4 = vcmp.gt.f32.partialorder %v1720_v22, 0.0  ;;  %v1815_v8 = vmul.f32 0.01, %v1720_v22  ;;  %v1845_v30 = vsel %vm1781_vm0, %v1716_v3, %v1813_v44 }
 0x2d7   : > { %v1846_v54 = vsel %vm1782_vm3, %v1718_v5, %v1814_v25 }
 0x2d8   : > { %v1723_v18 = vpop.f32.mrb[12].mxu1  ;;  %v1847_v33 = vsel %vm1783_vm4, %v1720_v22, %v1815_v8  ;;  %v1905_v20 = vpack.c.bf16 %v1846_v54, %v1844_v31 }
 0x2d9   : > { %v1724_v37 = vadd.f32 %v1723_v18, %v5894_v42  ;;  %v1725_v34 = vpop.f32.mrb[13].mxu1  ;;  %v1906_v41 = vpack.c.bf16 %v1847_v33, %v1845_v30 }
 0x2da   : > { %v1726_v15 = vadd.f32 %v1725_v34, %v5897_v6  ;;  %v1727_v43 = vpop.f32.mrb[14].mxu1 }
 0x2db   : > { %v1816_v47 = vmul.f32 0.01, %v1724_v37  ;;  %v1728_v45 = vadd.f32 %v1727_v43, %v5894_v42  ;;  %v1729_v19 = vpop.f32.mrb[15].mxu1  ;;  %2140 = vmatprep.mubr.bf16.mxu0 %v1906_v41  ;;  %vm1784_vm5 = vcmp.gt.f32.partialorder %v1724_v37, 0.0 }
 0x2dc   : > { %v1817_v24 = vmul.f32 0.01, %v1726_v15  ;;  %v1730_v36 = vadd.f32 %v1729_v19, %v5897_v6  ;;  %2141 = vmatmul.mubr.bf16.gmra.mrb[40].mxu0 %v1905_v20  ;;  %vm1785_vm6 = vcmp.gt.f32.partialorder %v1726_v15, 0.0 }
 0x2dd   : > { %vm1786_vm7 = vcmp.gt.f32.partialorder %v1728_v45, 0.0  ;;  %v1818_v26 = vmul.f32 0.01, %v1728_v45  ;;  %v1848_v12 = vsel %vm1784_vm5, %v1724_v37, %v1816_v47 }
 0x2de   : > { %vm1787_vm8 = vcmp.gt.f32.partialorder %v1730_v36, 0.0  ;;  %v1819_v10 = vmul.f32 0.01, %v1730_v36  ;;  %v1849_v46 = vsel %vm1785_vm6, %v1726_v15, %v1817_v24 }
 0x2df   : > { %v1850_v0 = vsel %vm1786_vm7, %v1728_v45, %v1818_v26 }
 0x2e0   : > { %v1733_v40 = vpop.f32.mrb[16].mxu1  ;;  %v1851_v2 = vsel %vm1787_vm8, %v1730_v36, %v1819_v10  ;;  %v1907_v23 = vpack.c.bf16 %v1850_v0, %v1848_v12 }
 0x2e1   : > { %v1734_v50 = vadd.f32 %v1733_v40, %v5894_v42  ;;  %v1735_v59 = vpop.f32.mrb[17].mxu1  ;;  %v1908_v58 = vpack.c.bf16 %v1851_v2, %v1849_v46 }
 0x2e2   : > { %v1736_v51 = vadd.f32 %v1735_v59, %v5897_v6  ;;  %v1737_v27 = vpop.f32.mrb[18].mxu1 }
 0x2e3   : > { %v1820_v63 = vmul.f32 0.01, %v1734_v50  ;;  %v1738_v13 = vadd.f32 %v1737_v27, %v5894_v42  ;;  %v1739_v55 = vpop.f32.mrb[19].mxu1  ;;  %2150 = vmatprep.mubr.bf16.mxu0 %v1908_v58  ;;  %vm1788_vm9 = vcmp.gt.f32.partialorder %v1734_v50, 0.0 }
 0x2e4   : > { %v1821_v57 = vmul.f32 0.01, %v1736_v51  ;;  %v1740_v52 = vadd.f32 %v1739_v55, %v5897_v6  ;;  %2151 = vmatmul.mubr.bf16.gmra.mrb[44].mxu0 %v1907_v23  ;;  %vm1789_vm10 = vcmp.gt.f32.partialorder %v1736_v51, 0.0 }
 0x2e5   : > { %vm1790_vm11 = vcmp.gt.f32.partialorder %v1738_v13, 0.0  ;;  %v1822_v39 = vmul.f32 0.01, %v1738_v13  ;;  %v1852_v60 = vsel %vm1788_vm9, %v1734_v50, %v1820_v63 }
 0x2e6   : > { %vm1791_vm12 = vcmp.gt.f32.partialorder %v1740_v52, 0.0  ;;  %v1823_v62 = vmul.f32 0.01, %v1740_v52  ;;  %v1853_v4 = vsel %vm1789_vm10, %v1736_v51, %v1821_v57 }
 0x2e7   : > { %v1854_v48 = vsel %vm1790_vm11, %v1738_v13, %v1822_v39 }
 0x2e8   : > { %v1743_v49 = vpop.f32.mrb[20].mxu1  ;;  %v1855_v7 = vsel %vm1791_vm12, %v1740_v52, %v1823_v62  ;;  %v1909_v28 = vpack.c.bf16 %v1854_v48, %v1852_v60 }
 0x2e9   : > { %v1744_v9 = vadd.f32 %v1743_v49, %v5894_v42  ;;  %v1745_v53 = vpop.f32.mrb[21].mxu1  ;;  %v1910_v1 = vpack.c.bf16 %v1855_v7, %v1853_v4  ;;  %v4697_v4 = vld [vmem:[#allocation2 + $0xe0] ss:$8 sps:$4 sm:$0xff]   ;;  %v4702_v7 = vld [vmem:[#allocation2 + $0xf4] ss:$8 sps:$4 sm:$0xff]  }
 0x2ea   : > { %v1746_v32 = vadd.f32 %v1745_v53, %v5897_v6  ;;  %v1747_v11 = vpop.f32.mrb[22].mxu1  ;;  %v4708_v53 = vld [vmem:[#allocation4 + $0x14] ss:$8 sps:$4 sm:$0xff]  }
 0x2eb   : > { %v1824_v14 = vmul.f32 0.01, %v1744_v9  ;;  %v1748_v3 = vadd.f32 %v1747_v11, %v5894_v42  ;;  %v1749_v17 = vpop.f32.mrb[23].mxu1  ;;  %2160 = vmatprep.mubr.bf16.mxu0 %v1910_v1  ;;  %vm1792_vm13 = vcmp.gt.f32.partialorder %v1744_v9, 0.0  ;;  %v4706_v1 = vld [vmem:[#allocation4 + $0x10] ss:$8 sps:$4 sm:$0xff]  }
 0x2ec   : > { %v1825_v35 = vmul.f32 0.01, %v1746_v32  ;;  %v1750_v5 = vadd.f32 %v1749_v17, %v5897_v6  ;;  %2161 = vmatmul.mubr.bf16.gmra.mrb[48].mxu0 %v1909_v28  ;;  %vm1793_vm14 = vcmp.gt.f32.partialorder %v1746_v32, 0.0  ;;  %v4703_v28 = vld [vmem:[#allocation4] ss:$8 sps:$4 sm:$0xff]  }
 0x2ed   : > { %vm1794_vm15 = vcmp.gt.f32.partialorder %v1748_v3, 0.0  ;;  %v1826_v21 = vmul.f32 0.01, %v1748_v3  ;;  %v1856_v22 = vsel %vm1792_vm13, %v1744_v9, %v1824_v14  ;;  %v4705_v9 = vld [vmem:[#allocation4 + $0x4] ss:$8 sps:$4 sm:$0xff]  }
 0x2ee   : > { %vm1795_vm0 = vcmp.gt.f32.partialorder %v1750_v5, 0.0  ;;  %v1827_v44 = vmul.f32 0.01, %v1750_v5  ;;  %v1857_v31 = vsel %vm1793_vm14, %v1746_v32, %v1825_v35  ;;  %2946 = vmatprep.subr.bf16.mxu0 %v4705_v9  ;;  %v4711_v32 = vld [vmem:[#allocation4 + $0x24] ss:$8 sps:$4 sm:$0xff]  }
 0x2ef   : > { %v1858_v25 = vsel %vm1794_vm15, %v1748_v3, %v1826_v21  ;;  %2947 = vmatpush1.bf16.msra.mxu0 %v4703_v28  ;;  %v4709_v11 = vld [vmem:[#allocation4 + $0x20] ss:$8 sps:$4 sm:$0xff]   ;;  %v4714_v14 = vld [vmem:[#allocation4 + $0x34] ss:$8 sps:$4 sm:$0xff]   ;;  %v4712_v3 = vld [vmem:[#allocation4 + $0x30] ss:$8 sps:$4 sm:$0xff]  }
 0x2f0   : > { %v1753_v8 = vpop.f32.mrb[24].mxu1  ;;  %v1859_v54 = vsel %vm1795_vm0, %v1750_v5, %v1827_v44  ;;  %v1911_v18 = vpack.c.bf16 %v1858_v25, %v1856_v22  ;;  %2948 = vmatprep.subr.bf16.mxu0 %v4708_v53  ;;  %v4717_v17 = vld [vmem:[#allocation4 + $0x44] ss:$8 sps:$4 sm:$0xff]   ;;  %v4715_v35 = vld [vmem:[#allocation4 + $0x40] ss:$8 sps:$4 sm:$0xff]  }
 0x2f1   : > { %v1754_v30 = vadd.f32 %v1753_v8, %v5894_v42  ;;  %v1755_v33 = vpop.f32.mrb[25].mxu1  ;;  %v1912_v20 = vpack.c.bf16 %v1859_v54, %v1857_v31  ;;  %v4720_v5 = vld [vmem:[#allocation4 + $0x54] ss:$8 sps:$4 sm:$0xff]   ;;  %v4718_v21 = vld [vmem:[#allocation4 + $0x50] ss:$8 sps:$4 sm:$0xff]  }
 0x2f2   : > { %v1756_v37 = vadd.f32 %v1755_v33, %v5897_v6  ;;  %v1757_v34 = vpop.f32.mrb[26].mxu1  ;;  %v4723_v44 = vld [vmem:[#allocation4 + $0x64] ss:$8 sps:$4 sm:$0xff]   ;;  %v4721_v22 = vld [vmem:[#allocation4 + $0x60] ss:$8 sps:$4 sm:$0xff]  }
 0x2f3   : > { %v1828_v41 = vmul.f32 0.01, %v1754_v30  ;;  %v1758_v15 = vadd.f32 %v1757_v34, %v5894_v42  ;;  %v1759_v43 = vpop.f32.mrb[27].mxu1  ;;  %2170 = vmatprep.mubr.bf16.mxu0 %v1912_v20  ;;  %vm1796_vm3 = vcmp.gt.f32.partialorder %v1754_v30, 0.0  ;;  %2949 = vmatpush1.bf16.msra.mxu0 %v4706_v1  ;;  %v4726_v25 = vld [vmem:[#allocation4 + $0x74] ss:$8 sps:$4 sm:$0xff]  }
 0x2f4   : > { %v1829_v47 = vmul.f32 0.01, %v1756_v37  ;;  %v1760_v45 = vadd.f32 %v1759_v43, %v5897_v6  ;;  %2171 = vmatmul.mubr.bf16.gmra.mrb[52].mxu0 %v1911_v18  ;;  %vm1797_vm4 = vcmp.gt.f32.partialorder %v1756_v37, 0.0  ;;  %2950 = vmatprep.subr.bf16.mxu0 %v4711_v32  ;;  %v4724_v8 = vld [vmem:[#allocation4 + $0x70] ss:$8 sps:$4 sm:$0xff]  }
 0x2f5   : > { %vm1798_vm5 = vcmp.gt.f32.partialorder %v1758_v15, 0.0  ;;  %v1830_v19 = vmul.f32 0.01, %v1758_v15  ;;  %v1860_v36 = vsel %vm1796_vm3, %v1754_v30, %v1828_v41  ;;  %v4729_v31 = vld [vmem:[#allocation4 + $0x84] ss:$8 sps:$4 sm:$0xff]  }
 0x2f6   : > { %vm1799_vm6 = vcmp.gt.f32.partialorder %v1760_v45, 0.0  ;;  %v1831_v24 = vmul.f32 0.01, %v1760_v45  ;;  %v1861_v12 = vsel %vm1797_vm4, %v1756_v37, %v1829_v47  ;;  %v4727_v54 = vld [vmem:[#allocation4 + $0x80] ss:$8 sps:$4 sm:$0xff]  }
 0x2f7   : > { %v1862_v26 = vsel %vm1798_vm5, %v1758_v15, %v1830_v19  ;;  %2951 = vmatpush1.bf16.msra.mxu0 %v4709_v11  ;;  %v4732_v18 = vld [vmem:[#allocation4 + $0x94] ss:$8 sps:$4 sm:$0xff]   ;;  %v4730_v30 = vld [vmem:[#allocation4 + $0x90] ss:$8 sps:$4 sm:$0xff]   ;;  %v4735_v33 = vld [vmem:[#allocation4 + $0xa4] ss:$8 sps:$4 sm:$0xff]  }
 0x2f8   : > { %v1763_v10 = vpop.f32.mrb[28].mxu1  ;;  %v1863_v0 = vsel %vm1799_vm6, %v1760_v45, %v1831_v24  ;;  %v1913_v40 = vpack.c.bf16 %v1862_v26, %v1860_v36  ;;  %2952 = vmatprep.subr.bf16.mxu0 %v4714_v14  ;;  %v4733_v20 = vld [vmem:[#allocation4 + $0xa0] ss:$8 sps:$4 sm:$0xff]   ;;  %v4738_v37 = vld [vmem:[#allocation4 + $0xb4] ss:$8 sps:$4 sm:$0xff]  }
 0x2f9   : > { %v1764_v46 = vadd.f32 %v1763_v10, %v5894_v42  ;;  %v1765_v2 = vpop.f32.mrb[29].mxu1  ;;  %v1914_v23 = vpack.c.bf16 %v1863_v0, %v1861_v12  ;;  %v4736_v34 = vld [vmem:[#allocation4 + $0xb0] ss:$8 sps:$4 sm:$0xff]   ;;  %v4741_v41 = vld [vmem:[#allocation4 + $0xc4] ss:$8 sps:$4 sm:$0xff]  }
 0x2fa   : > { %v1766_v50 = vadd.f32 %v1765_v2, %v5897_v6  ;;  %v1767_v59 = vpop.f32.mrb[30].mxu1  ;;  %v4739_v15 = vld [vmem:[#allocation4 + $0xc0] ss:$8 sps:$4 sm:$0xff]   ;;  %v4744_v43 = vld [vmem:[#allocation4 + $0xd4] ss:$8 sps:$4 sm:$0xff]  }
 0x2fb   : > { %v1832_v58 = vmul.f32 0.01, %v1764_v46  ;;  %v1768_v51 = vadd.f32 %v1767_v59, %v5894_v42  ;;  %v1769_v27 = vpop.f32.mrb[31].mxu1  ;;  %2180 = vmatprep.mubr.bf16.mxu0 %v1914_v23  ;;  %vm1800_vm7 = vcmp.gt.f32.partialorder %v1764_v46, 0.0  ;;  %v4699_v42 = vld [vmem:[#allocation2 + $0xe4] ss:$8 sps:$4 sm:$0xff]   ;;  %2953 = vmatpush1.bf16.msra.mxu0 %v4712_v3 }
 0x2fc   : > { %v1833_v63 = vmul.f32 0.01, %v1766_v50  ;;  %v1770_v13 = vadd.f32 %v1769_v27, %v5897_v6  ;;  %2181 = vmatmul.mubr.bf16.gmra.mrb[56].mxu0 %v1913_v40  ;;  %vm1801_vm8 = vcmp.gt.f32.partialorder %v1766_v50, 0.0  ;;  %2545 = vmatprep.subr.bf16.mxu1 %v4699_v42  ;;  %v4700_v6 = vld [vmem:[#allocation2 + $0xf0] ss:$8 sps:$4 sm:$0xff]  }
 0x2fd   : > { %vm1802_vm9 = vcmp.gt.f32.partialorder %v1768_v51, 0.0  ;;  %v1834_v55 = vmul.f32 0.01, %v1768_v51  ;;  %v1864_v52 = vsel %vm1800_vm7, %v1764_v46, %v1832_v58  ;;  %2546 = vmatpush1.bf16.msra.mxu1 %v4697_v4  ;;  %2954 = vmatprep.subr.bf16.mxu0 %v4717_v17  ;;  %v4742_v47 = vld [vmem:[#allocation4 + $0xd0] ss:$8 sps:$4 sm:$0xff]  }
 0x2fe   : > { %vm1803_vm10 = vcmp.gt.f32.partialorder %v1770_v13, 0.0  ;;  %v1835_v57 = vmul.f32 0.01, %v1770_v13  ;;  %v1865_v62 = vsel %vm1801_vm8, %v1766_v50, %v1833_v63  ;;  %2547 = vmatprep.subr.bf16.mxu1 %v4702_v7  ;;  %v1900_v45 = vld [vmem:[%s6200_s7] sm:$0x3] }
 0x2ff   : > { %v1866_v39 = vsel %vm1802_vm9, %v1768_v51, %v1834_v55  ;;  %2955 = vmatpush1.bf16.msra.mxu0 %v4715_v35  ;;  %v5935_v19 = vrot.slane %v1900_v45, %v5832_v56  ;;  %v5938_v24 = vrot.slane %v1900_v45, %v5838_v16 }
 0x300   : > { %v1867_v60 = vsel %vm1803_vm10, %v1770_v13, %v1835_v57  ;;  %v1915_v48 = vpack.c.bf16 %v1866_v39, %v1864_v52  ;;  %2956 = vmatprep.subr.bf16.mxu0 %v4720_v5 }
 0x301   : > { %v1916_v49 = vpack.c.bf16 %v1867_v60, %v1865_v62  ;;  %2548 = vmatpush1.bf16.msra.mxu1 %v4700_v6 }
 0x303   : > { %2190 = vmatprep.mubr.bf16.mxu0 %v1916_v49  ;;  %2957 = vmatpush1.bf16.msra.mxu0 %v4718_v21 }
 0x304   : > { %2191 = vmatmul.mubr.bf16.gmra.mrb[60].mxu0 %v1915_v48  ;;  %2958 = vmatprep.subr.bf16.mxu0 %v4723_v44 }
 0x307   : > { %2959 = vmatpush1.bf16.msra.mxu0 %v4721_v22 }
 0x308   : > { %2960 = vmatprep.subr.bf16.mxu0 %v4726_v25 }
 0x30b   : > { %2961 = vmatpush1.bf16.msra.mxu0 %v4724_v8 }
 0x30c   : > { %2962 = vmatprep.subr.bf16.mxu0 %v4729_v31 }
 0x30f   : > { %2963 = vmatpush1.bf16.msra.mxu0 %v4727_v54 }
 0x310   : > { %2964 = vmatprep.subr.bf16.mxu0 %v4732_v18 }
 0x313   : > { %2965 = vmatpush1.bf16.msra.mxu0 %v4730_v30 }
 0x314   : > { %2966 = vmatprep.subr.bf16.mxu0 %v4735_v33 }
 0x317   : > { %2967 = vmatpush1.bf16.msra.mxu0 %v4733_v20 }
 0x318   : > { %2968 = vmatprep.subr.bf16.mxu0 %v4738_v37 }
 0x31b   : > { %2969 = vmatpush1.bf16.msra.mxu0 %v4736_v34 }
 0x31c   : > { %2970 = vmatprep.subr.bf16.mxu0 %v4741_v41 }
 0x31f   : > { %2971 = vmatpush1.bf16.msra.mxu0 %v4739_v15 }
 0x320   : > { %2972 = vmatprep.subr.bf16.mxu0 %v4744_v43 }
 0x323   : > { %2973 = vmatpush1.bf16.msra.mxu0 %v4742_v47 }
 0x39f   : > { %v2122_v36 = vpop.f32.mrb[32].mxu0 }
 0x3a0   : > { %v2123_v26 = vadd.f32 %v2122_v36, %v5935_v19  ;;  %v2124_v10 = vpop.f32.mrb[33].mxu0 }
 0x3a1   : > { %v2125_v12 = vadd.f32 %v2124_v10, %v5938_v24  ;;  %v2126_v0 = vpop.f32.mrb[34].mxu0 }
 0x3a2   : > { %v2233_v40 = vmul.f32 0.01, %v2123_v26  ;;  %v2127_v46 = vadd.f32 %v2126_v0, %v5935_v19  ;;  %v2128_v2 = vpop.f32.mrb[35].mxu0  ;;  %vm2201_vm11 = vcmp.gt.f32.partialorder %v2123_v26, 0.0 }
 0x3a3   : > { %v2234_v23 = vmul.f32 0.01, %v2125_v12  ;;  %v2129_v50 = vadd.f32 %v2128_v2, %v5938_v24  ;;  %vm2202_vm12 = vcmp.gt.f32.partialorder %v2125_v12, 0.0 }
 0x3a4   : > { %vm2203_vm13 = vcmp.gt.f32.partialorder %v2127_v46, 0.0  ;;  %v2235_v59 = vmul.f32 0.01, %v2127_v46  ;;  %v2265_v51 = vsel %vm2201_vm11, %v2123_v26, %v2233_v40 }
 0x3a5   : > { %vm2204_vm14 = vcmp.gt.f32.partialorder %v2129_v50, 0.0  ;;  %v2236_v58 = vmul.f32 0.01, %v2129_v50  ;;  %v2266_v55 = vsel %vm2202_vm12, %v2125_v12, %v2234_v23 }
 0x3a6   : > { %v2267_v27 = vsel %vm2203_vm13, %v2127_v46, %v2235_v59 }
 0x3a7   : > { %v2330_v63 = vpack.c.bf16 %v2267_v27, %v2265_v51  ;;  %v2132_v13 = vpop.f32.mrb[36].mxu0  ;;  %v2268_v57 = vsel %vm2204_vm14, %v2129_v50, %v2236_v58 }
 0x3a8   : > { %v2133_v52 = vadd.f32 %v2132_v13, %v5935_v19  ;;  %v2134_v39 = vpop.f32.mrb[37].mxu0  ;;  %v2331_v62 = vpack.c.bf16 %v2268_v57, %v2266_v55 }
 0x3a9   : > { %v2135_v60 = vadd.f32 %v2134_v39, %v5938_v24  ;;  %v2136_v48 = vpop.f32.mrb[38].mxu0 }
 0x3aa   : > { %v2237_v49 = vmul.f32 0.01, %v2133_v52  ;;  %v2137_v42 = vadd.f32 %v2136_v48, %v5935_v19  ;;  %v2138_v4 = vpop.f32.mrb[39].mxu0  ;;  %2549 = vmatprep.mubr.bf16.mxu1 %v2331_v62  ;;  %vm2205_vm15 = vcmp.gt.f32.partialorder %v2133_v52, 0.0 }
 0x3ab   : > { %v2238_v7 = vmul.f32 0.01, %v2135_v60  ;;  %v2139_v6 = vadd.f32 %v2138_v4, %v5938_v24  ;;  %2550 = vmatmul.mubr.bf16.vlgmr.msra.gmra.mrb[32].mxu1 %v2330_v63  ;;  %vm2206_vm0 = vcmp.gt.f32.partialorder %v2135_v60, 0.0 }
 0x3ac   : > { %vm2207_vm3 = vcmp.gt.f32.partialorder %v2137_v42, 0.0  ;;  %v2239_v28 = vmul.f32 0.01, %v2137_v42  ;;  %v2269_v53 = vsel %vm2205_vm15, %v2133_v52, %v2237_v49 }
 0x3ad   : > { %vm2208_vm4 = vcmp.gt.f32.partialorder %v2139_v6, 0.0  ;;  %v2240_v9 = vmul.f32 0.01, %v2139_v6  ;;  %v2270_v11 = vsel %vm2206_vm0, %v2135_v60, %v2238_v7 }
 0x3ae   : > { %v2271_v1 = vsel %vm2207_vm3, %v2137_v42, %v2239_v28 }
 0x3af   : > { %v2142_v32 = vpop.f32.mrb[40].mxu0  ;;  %v2272_v14 = vsel %vm2208_vm4, %v2139_v6, %v2240_v9  ;;  %v2332_v3 = vpack.c.bf16 %v2271_v1, %v2269_v53 }
 0x3b0   : > { %v2143_v17 = vadd.f32 %v2142_v32, %v5935_v19  ;;  %v2144_v35 = vpop.f32.mrb[41].mxu0  ;;  %v2333_v5 = vpack.c.bf16 %v2272_v14, %v2270_v11 }
 0x3b1   : > { %v2145_v21 = vadd.f32 %v2144_v35, %v5938_v24  ;;  %v2146_v44 = vpop.f32.mrb[42].mxu0 }
 0x3b2   : > { %v2241_v22 = vmul.f32 0.01, %v2143_v17  ;;  %v2147_v25 = vadd.f32 %v2146_v44, %v5935_v19  ;;  %v2148_v8 = vpop.f32.mrb[43].mxu0  ;;  %2559 = vmatprep.mubr.bf16.mxu1 %v2333_v5  ;;  %vm2209_vm5 = vcmp.gt.f32.partialorder %v2143_v17, 0.0 }
 0x3b3   : > { %v2242_v31 = vmul.f32 0.01, %v2145_v21  ;;  %v2149_v54 = vadd.f32 %v2148_v8, %v5938_v24  ;;  %2560 = vmatmul.mubr.bf16.gmra.mrb[36].mxu1 %v2332_v3  ;;  %vm2210_vm6 = vcmp.gt.f32.partialorder %v2145_v21, 0.0 }
 0x3b4   : > { %vm2211_vm7 = vcmp.gt.f32.partialorder %v2147_v25, 0.0  ;;  %v2243_v18 = vmul.f32 0.01, %v2147_v25  ;;  %v2273_v33 = vsel %vm2209_vm5, %v2143_v17, %v2241_v22 }
 0x3b5   : > { %vm2212_vm8 = vcmp.gt.f32.partialorder %v2149_v54, 0.0  ;;  %v2244_v30 = vmul.f32 0.01, %v2149_v54  ;;  %v2274_v34 = vsel %vm2210_vm6, %v2145_v21, %v2242_v31 }
 0x3b6   : > { %v2275_v20 = vsel %vm2211_vm7, %v2147_v25, %v2243_v18 }
 0x3b7   : > { %v2152_v37 = vpop.f32.mrb[44].mxu0  ;;  %v2276_v41 = vsel %vm2212_vm8, %v2149_v54, %v2244_v30  ;;  %v2334_v15 = vpack.c.bf16 %v2275_v20, %v2273_v33 }
 0x3b8   : > { %v2153_v43 = vadd.f32 %v2152_v37, %v5935_v19  ;;  %v2154_v47 = vpop.f32.mrb[45].mxu0  ;;  %v2335_v45 = vpack.c.bf16 %v2276_v41, %v2274_v34 }
 0x3b9   : > { %v2155_v36 = vadd.f32 %v2154_v47, %v5938_v24  ;;  %v2156_v26 = vpop.f32.mrb[46].mxu0 }
 0x3ba   : > { %v2245_v10 = vmul.f32 0.01, %v2153_v43  ;;  %v2157_v12 = vadd.f32 %v2156_v26, %v5935_v19  ;;  %v2158_v0 = vpop.f32.mrb[47].mxu0  ;;  %2569 = vmatprep.mubr.bf16.mxu1 %v2335_v45  ;;  %vm2213_vm9 = vcmp.gt.f32.partialorder %v2153_v43, 0.0 }
 0x3bb   : > { %v2246_v40 = vmul.f32 0.01, %v2155_v36  ;;  %v2159_v46 = vadd.f32 %v2158_v0, %v5938_v24  ;;  %2570 = vmatmul.mubr.bf16.gmra.mrb[40].mxu1 %v2334_v15  ;;  %vm2214_vm10 = vcmp.gt.f32.partialorder %v2155_v36, 0.0 }
 0x3bc   : > { %vm2215_vm11 = vcmp.gt.f32.partialorder %v2157_v12, 0.0  ;;  %v2247_v2 = vmul.f32 0.01, %v2157_v12  ;;  %v2277_v50 = vsel %vm2213_vm9, %v2153_v43, %v2245_v10 }
 0x3bd   : > { %vm2216_vm12 = vcmp.gt.f32.partialorder %v2159_v46, 0.0  ;;  %v2248_v23 = vmul.f32 0.01, %v2159_v46  ;;  %v2278_v51 = vsel %vm2214_vm10, %v2155_v36, %v2246_v40 }
 0x3be   : > { %v2279_v59 = vsel %vm2215_vm11, %v2157_v12, %v2247_v2 }
 0x3bf   : > { %v2162_v58 = vpop.f32.mrb[48].mxu0  ;;  %v2280_v27 = vsel %vm2216_vm12, %v2159_v46, %v2248_v23  ;;  %v2336_v63 = vpack.c.bf16 %v2279_v59, %v2277_v50 }
 0x3c0   : > { %v2163_v13 = vadd.f32 %v2162_v58, %v5935_v19  ;;  %v2164_v55 = vpop.f32.mrb[49].mxu0  ;;  %v2337_v57 = vpack.c.bf16 %v2280_v27, %v2278_v51 }
 0x3c1   : > { %v2165_v52 = vadd.f32 %v2164_v55, %v5938_v24  ;;  %v2166_v39 = vpop.f32.mrb[50].mxu0 }
 0x3c2   : > { %v2249_v62 = vmul.f32 0.01, %v2163_v13  ;;  %v2167_v60 = vadd.f32 %v2166_v39, %v5935_v19  ;;  %v2168_v48 = vpop.f32.mrb[51].mxu0  ;;  %2579 = vmatprep.mubr.bf16.mxu1 %v2337_v57  ;;  %vm2217_vm13 = vcmp.gt.f32.partialorder %v2163_v13, 0.0 }
 0x3c3   : > { %v2250_v49 = vmul.f32 0.01, %v2165_v52  ;;  %v2169_v42 = vadd.f32 %v2168_v48, %v5938_v24  ;;  %2580 = vmatmul.mubr.bf16.gmra.mrb[44].mxu1 %v2336_v63  ;;  %vm2218_vm14 = vcmp.gt.f32.partialorder %v2165_v52, 0.0 }
 0x3c4   : > { %vm2219_vm15 = vcmp.gt.f32.partialorder %v2167_v60, 0.0  ;;  %v2251_v4 = vmul.f32 0.01, %v2167_v60  ;;  %v2281_v6 = vsel %vm2217_vm13, %v2163_v13, %v2249_v62 }
 0x3c5   : > { %vm2220_vm0 = vcmp.gt.f32.partialorder %v2169_v42, 0.0  ;;  %v2252_v7 = vmul.f32 0.01, %v2169_v42  ;;  %v2282_v53 = vsel %vm2218_vm14, %v2165_v52, %v2250_v49 }
 0x3c6   : > { %v2283_v28 = vsel %vm2219_vm15, %v2167_v60, %v2251_v4 }
 0x3c7   : > { %v2172_v9 = vpop.f32.mrb[52].mxu0  ;;  %v2284_v1 = vsel %vm2220_vm0, %v2169_v42, %v2252_v7  ;;  %v2338_v32 = vpack.c.bf16 %v2283_v28, %v2281_v6 }
 0x3c8   : > { %v2173_v11 = vadd.f32 %v2172_v9, %v5935_v19  ;;  %v2174_v14 = vpop.f32.mrb[53].mxu0  ;;  %v2339_v3 = vpack.c.bf16 %v2284_v1, %v2282_v53  ;;  %v4745_v53 = vld [vmem:[#allocation4 + $0xe0] ss:$8 sps:$4 sm:$0xff]   ;;  %v4750_v1 = vld [vmem:[#allocation4 + $0xf4] ss:$8 sps:$4 sm:$0xff]  }
 0x3c9   : > { %v2175_v17 = vadd.f32 %v2174_v14, %v5938_v24  ;;  %v2176_v35 = vpop.f32.mrb[54].mxu0  ;;  %v4756_v14 = vld [vmem:[#allocation6 + $0x14] ss:$8 sps:$4 sm:$0xff]  }
 0x3ca   : > { %v2253_v5 = vmul.f32 0.01, %v2173_v11  ;;  %v2177_v21 = vadd.f32 %v2176_v35, %v5935_v19  ;;  %v2178_v44 = vpop.f32.mrb[55].mxu0  ;;  %2589 = vmatprep.mubr.bf16.mxu1 %v2339_v3  ;;  %vm2221_vm3 = vcmp.gt.f32.partialorder %v2173_v11, 0.0  ;;  %v4754_v3 = vld [vmem:[#allocation6 + $0x10] ss:$8 sps:$4 sm:$0xff]  }
 0x3cb   : > { %v2254_v22 = vmul.f32 0.01, %v2175_v17  ;;  %v2179_v25 = vadd.f32 %v2178_v44, %v5938_v24  ;;  %2590 = vmatmul.mubr.bf16.gmra.mrb[48].mxu1 %v2338_v32  ;;  %vm2222_vm4 = vcmp.gt.f32.partialorder %v2175_v17, 0.0  ;;  %v4751_v32 = vld [vmem:[#allocation6] ss:$8 sps:$4 sm:$0xff]  }
 0x3cc   : > { %vm2223_vm5 = vcmp.gt.f32.partialorder %v2177_v21, 0.0  ;;  %v2255_v8 = vmul.f32 0.01, %v2177_v21  ;;  %v2285_v54 = vsel %vm2221_vm3, %v2173_v11, %v2253_v5  ;;  %v4753_v11 = vld [vmem:[#allocation6 + $0x4] ss:$8 sps:$4 sm:$0xff]  }
 0x3cd   : > { %vm2224_vm6 = vcmp.gt.f32.partialorder %v2179_v25, 0.0  ;;  %v2256_v31 = vmul.f32 0.01, %v2179_v25  ;;  %v2286_v33 = vsel %vm2222_vm4, %v2175_v17, %v2254_v22  ;;  %3375 = vmatprep.subr.bf16.mxu1 %v4753_v11  ;;  %v4759_v17 = vld [vmem:[#allocation6 + $0x24] ss:$8 sps:$4 sm:$0xff]  }
 0x3ce   : > { %v2287_v18 = vsel %vm2223_vm5, %v2177_v21, %v2255_v8  ;;  %3376 = vmatpush1.bf16.msra.mxu1 %v4751_v32  ;;  %v4757_v35 = vld [vmem:[#allocation6 + $0x20] ss:$8 sps:$4 sm:$0xff]   ;;  %v4762_v5 = vld [vmem:[#allocation6 + $0x34] ss:$8 sps:$4 sm:$0xff]   ;;  %v4760_v21 = vld [vmem:[#allocation6 + $0x30] ss:$8 sps:$4 sm:$0xff]  }
 0x3cf   : > { %v2182_v30 = vpop.f32.mrb[56].mxu0  ;;  %v2288_v20 = vsel %vm2224_vm6, %v2179_v25, %v2256_v31  ;;  %v2340_v37 = vpack.c.bf16 %v2287_v18, %v2285_v54  ;;  %3377 = vmatprep.subr.bf16.mxu1 %v4756_v14  ;;  %v4765_v44 = vld [vmem:[#allocation6 + $0x44] ss:$8 sps:$4 sm:$0xff]   ;;  %v4763_v22 = vld [vmem:[#allocation6 + $0x40] ss:$8 sps:$4 sm:$0xff]  }
 0x3d0   : > { %v2183_v34 = vadd.f32 %v2182_v30, %v5935_v19  ;;  %v2184_v41 = vpop.f32.mrb[57].mxu0  ;;  %v2341_v15 = vpack.c.bf16 %v2288_v20, %v2286_v33  ;;  %v4768_v25 = vld [vmem:[#allocation6 + $0x54] ss:$8 sps:$4 sm:$0xff]   ;;  %v4766_v8 = vld [vmem:[#allocation6 + $0x50] ss:$8 sps:$4 sm:$0xff]  }
 0x3d1   : > { %v2185_v43 = vadd.f32 %v2184_v41, %v5938_v24  ;;  %v2186_v47 = vpop.f32.mrb[58].mxu0  ;;  %v4771_v31 = vld [vmem:[#allocation6 + $0x64] ss:$8 sps:$4 sm:$0xff]   ;;  %v4769_v54 = vld [vmem:[#allocation6 + $0x60] ss:$8 sps:$4 sm:$0xff]  }
 0x3d2   : > { %v2257_v45 = vmul.f32 0.01, %v2183_v34  ;;  %v2187_v36 = vadd.f32 %v2186_v47, %v5935_v19  ;;  %v2188_v26 = vpop.f32.mrb[59].mxu0  ;;  %2599 = vmatprep.mubr.bf16.mxu1 %v2341_v15  ;;  %vm2225_vm7 = vcmp.gt.f32.partialorder %v2183_v34, 0.0  ;;  %3378 = vmatpush1.bf16.msra.mxu1 %v4754_v3  ;;  %v4774_v18 = vld [vmem:[#allocation6 + $0x74] ss:$8 sps:$4 sm:$0xff]  }
 0x3d3   : > { %v2258_v10 = vmul.f32 0.01, %v2185_v43  ;;  %v2189_v12 = vadd.f32 %v2188_v26, %v5938_v24  ;;  %2600 = vmatmul.mubr.bf16.gmra.mrb[52].mxu1 %v2340_v37  ;;  %vm2226_vm8 = vcmp.gt.f32.partialorder %v2185_v43, 0.0  ;;  %3379 = vmatprep.subr.bf16.mxu1 %v4759_v17  ;;  %v4772_v30 = vld [vmem:[#allocation6 + $0x70] ss:$8 sps:$4 sm:$0xff]  }
 0x3d4   : > { %vm2227_vm9 = vcmp.gt.f32.partialorder %v2187_v36, 0.0  ;;  %v2259_v0 = vmul.f32 0.01, %v2187_v36  ;;  %v2289_v46 = vsel %vm2225_vm7, %v2183_v34, %v2257_v45  ;;  %v4777_v33 = vld [vmem:[#allocation6 + $0x84] ss:$8 sps:$4 sm:$0xff]  }
 0x3d5   : > { %vm2228_vm10 = vcmp.gt.f32.partialorder %v2189_v12, 0.0  ;;  %v2260_v40 = vmul.f32 0.01, %v2189_v12  ;;  %v2290_v50 = vsel %vm2226_vm8, %v2185_v43, %v2258_v10  ;;  %v4775_v20 = vld [vmem:[#allocation6 + $0x80] ss:$8 sps:$4 sm:$0xff]  }
 0x3d6   : > { %v2291_v2 = vsel %vm2227_vm9, %v2187_v36, %v2259_v0  ;;  %3380 = vmatpush1.bf16.msra.mxu1 %v4757_v35  ;;  %v4780_v37 = vld [vmem:[#allocation6 + $0x94] ss:$8 sps:$4 sm:$0xff]   ;;  %v4778_v34 = vld [vmem:[#allocation6 + $0x90] ss:$8 sps:$4 sm:$0xff]   ;;  %v4783_v41 = vld [vmem:[#allocation6 + $0xa4] ss:$8 sps:$4 sm:$0xff]  }
 0x3d7   : > { %v2192_v23 = vpop.f32.mrb[60].mxu0  ;;  %v2292_v59 = vsel %vm2228_vm10, %v2189_v12, %v2260_v40  ;;  %v2342_v58 = vpack.c.bf16 %v2291_v2, %v2289_v46  ;;  %3381 = vmatprep.subr.bf16.mxu1 %v4762_v5  ;;  %v4781_v15 = vld [vmem:[#allocation6 + $0xa0] ss:$8 sps:$4 sm:$0xff]   ;;  %v4786_v43 = vld [vmem:[#allocation6 + $0xb4] ss:$8 sps:$4 sm:$0xff]  }
 0x3d8   : > { %v2193_v51 = vadd.f32 %v2192_v23, %v5935_v19  ;;  %v2194_v27 = vpop.f32.mrb[61].mxu0  ;;  %v2343_v63 = vpack.c.bf16 %v2292_v59, %v2290_v50  ;;  %v4784_v47 = vld [vmem:[#allocation6 + $0xb0] ss:$8 sps:$4 sm:$0xff]   ;;  %v4789_v45 = vld [vmem:[#allocation6 + $0xc4] ss:$8 sps:$4 sm:$0xff]  }
 0x3d9   : > { %v2195_v13 = vadd.f32 %v2194_v27, %v5938_v24  ;;  %v2196_v55 = vpop.f32.mrb[62].mxu0  ;;  %v4787_v36 = vld [vmem:[#allocation6 + $0xc0] ss:$8 sps:$4 sm:$0xff]   ;;  %v4792_v26 = vld [vmem:[#allocation6 + $0xd4] ss:$8 sps:$4 sm:$0xff]  }
 0x3da   : > { %v2261_v57 = vmul.f32 0.01, %v2193_v51  ;;  %v2197_v52 = vadd.f32 %v2196_v55, %v5935_v19  ;;  %v2198_v39 = vpop.f32.mrb[63].mxu0  ;;  %2609 = vmatprep.mubr.bf16.mxu1 %v2343_v63  ;;  %vm2229_vm11 = vcmp.gt.f32.partialorder %v2193_v51, 0.0  ;;  %v4747_v19 = vld [vmem:[#allocation4 + $0xe4] ss:$8 sps:$4 sm:$0xff]   ;;  %3382 = vmatpush1.bf16.msra.mxu1 %v4760_v21 }
 0x3db   : > { %v2262_v62 = vmul.f32 0.01, %v2195_v13  ;;  %v2199_v60 = vadd.f32 %v2198_v39, %v5938_v24  ;;  %2610 = vmatmul.mubr.bf16.gmra.mrb[56].mxu1 %v2342_v58  ;;  %vm2230_vm12 = vcmp.gt.f32.partialorder %v2195_v13, 0.0  ;;  %2974 = vmatprep.subr.bf16.mxu0 %v4747_v19  ;;  %v4748_v24 = vld [vmem:[#allocation4 + $0xf0] ss:$8 sps:$4 sm:$0xff]  }
 0x3dc   : > { %vm2231_vm13 = vcmp.gt.f32.partialorder %v2197_v52, 0.0  ;;  %v2263_v48 = vmul.f32 0.01, %v2197_v52  ;;  %v2293_v42 = vsel %vm2229_vm11, %v2193_v51, %v2261_v57  ;;  %2975 = vmatpush1.bf16.msra.mxu0 %v4745_v53  ;;  %3383 = vmatprep.subr.bf16.mxu1 %v4765_v44  ;;  %v4790_v10 = vld [vmem:[#allocation6 + $0xd0] ss:$8 sps:$4 sm:$0xff]  }
 0x3dd   : > { %vm2232_vm14 = vcmp.gt.f32.partialorder %v2199_v60, 0.0  ;;  %v2264_v49 = vmul.f32 0.01, %v2199_v60  ;;  %v2294_v7 = vsel %vm2230_vm12, %v2195_v13, %v2262_v62  ;;  %2976 = vmatprep.subr.bf16.mxu0 %v4750_v1  ;;  %v2329_v12 = vld [vmem:[%s6228_s17] sm:$0x3] }
 0x3de   : > { %v2295_v4 = vsel %vm2231_vm13, %v2197_v52, %v2263_v48  ;;  %3384 = vmatpush1.bf16.msra.mxu1 %v4763_v22  ;;  %v5976_v0 = vrot.slane %v2329_v12, %v5832_v56  ;;  %v5979_v40 = vrot.slane %v2329_v12, %v5838_v16 }
 0x3df   : > { %v2296_v6 = vsel %vm2232_vm14, %v2199_v60, %v2264_v49  ;;  %v2344_v28 = vpack.c.bf16 %v2295_v4, %v2293_v42  ;;  %3385 = vmatprep.subr.bf16.mxu1 %v4768_v25 }
 0x3e0   : > { %v2345_v9 = vpack.c.bf16 %v2296_v6, %v2294_v7  ;;  %2977 = vmatpush1.bf16.msra.mxu0 %v4748_v24 }
 0x3e2   : > { %2619 = vmatprep.mubr.bf16.mxu1 %v2345_v9  ;;  %3386 = vmatpush1.bf16.msra.mxu1 %v4766_v8 }
 0x3e3   : > { %2620 = vmatmul.mubr.bf16.gmra.mrb[60].mxu1 %v2344_v28  ;;  %3387 = vmatprep.subr.bf16.mxu1 %v4771_v31 }
 0x3e6   : > { %3388 = vmatpush1.bf16.msra.mxu1 %v4769_v54 }
 0x3e7   : > { %3389 = vmatprep.subr.bf16.mxu1 %v4774_v18 }
 0x3ea   : > { %3390 = vmatpush1.bf16.msra.mxu1 %v4772_v30 }
 0x3eb   : > { %3391 = vmatprep.subr.bf16.mxu1 %v4777_v33 }
 0x3ee   : > { %3392 = vmatpush1.bf16.msra.mxu1 %v4775_v20 }
 0x3ef   : > { %3393 = vmatprep.subr.bf16.mxu1 %v4780_v37 }
 0x3f2   : > { %3394 = vmatpush1.bf16.msra.mxu1 %v4778_v34 }
 0x3f3   : > { %3395 = vmatprep.subr.bf16.mxu1 %v4783_v41 }
 0x3f6   : > { %3396 = vmatpush1.bf16.msra.mxu1 %v4781_v15 }
 0x3f7   : > { %3397 = vmatprep.subr.bf16.mxu1 %v4786_v43 }
 0x3fa   : > { %3398 = vmatpush1.bf16.msra.mxu1 %v4784_v47 }
 0x3fb   : > { %3399 = vmatprep.subr.bf16.mxu1 %v4789_v45 }
 0x3fe   : > { %3400 = vmatpush1.bf16.msra.mxu1 %v4787_v36 }
 0x3ff   : > { %3401 = vmatprep.subr.bf16.mxu1 %v4792_v26 }
 0x402   : > { %3402 = vmatpush1.bf16.msra.mxu1 %v4790_v10 }
 0x47e   : > { %v2551_v46 = vpop.f32.mrb[32].mxu1 }
 0x47f   : > { %v2552_v2 = vadd.f32 %v2551_v46, %v5976_v0  ;;  %v2553_v23 = vpop.f32.mrb[33].mxu1 }
 0x480   : > { %v2554_v50 = vadd.f32 %v2553_v23, %v5979_v40  ;;  %v2555_v59 = vpop.f32.mrb[34].mxu1 }
 0x481   : > { %v2662_v58 = vmul.f32 0.01, %v2552_v2  ;;  %v2556_v51 = vadd.f32 %v2555_v59, %v5976_v0  ;;  %v2557_v27 = vpop.f32.mrb[35].mxu1  ;;  %vm2630_vm15 = vcmp.gt.f32.partialorder %v2552_v2, 0.0 }
 0x482   : > { %v2663_v63 = vmul.f32 0.01, %v2554_v50  ;;  %v2558_v13 = vadd.f32 %v2557_v27, %v5979_v40  ;;  %vm2631_vm0 = vcmp.gt.f32.partialorder %v2554_v50, 0.0 }
 0x483   : > { %vm2632_vm3 = vcmp.gt.f32.partialorder %v2556_v51, 0.0  ;;  %v2664_v55 = vmul.f32 0.01, %v2556_v51  ;;  %v2694_v52 = vsel %vm2630_vm15, %v2552_v2, %v2662_v58 }
 0x484   : > { %vm2633_vm4 = vcmp.gt.f32.partialorder %v2558_v13, 0.0  ;;  %v2665_v57 = vmul.f32 0.01, %v2558_v13  ;;  %v2695_v48 = vsel %vm2631_vm0, %v2554_v50, %v2663_v63 }
 0x485   : > { %v2696_v39 = vsel %vm2632_vm3, %v2556_v51, %v2664_v55 }
 0x486   : > { %v2759_v62 = vpack.c.bf16 %v2696_v39, %v2694_v52  ;;  %v2561_v60 = vpop.f32.mrb[36].mxu1  ;;  %v2697_v49 = vsel %vm2633_vm4, %v2558_v13, %v2665_v57 }
 0x487   : > { %v2562_v42 = vadd.f32 %v2561_v60, %v5976_v0  ;;  %v2563_v4 = vpop.f32.mrb[37].mxu1  ;;  %v2760_v7 = vpack.c.bf16 %v2697_v49, %v2695_v48 }
 0x488   : > { %v2564_v6 = vadd.f32 %v2563_v4, %v5979_v40  ;;  %v2565_v28 = vpop.f32.mrb[38].mxu1 }
 0x489   : > { %v2666_v9 = vmul.f32 0.01, %v2562_v42  ;;  %v2566_v19 = vadd.f32 %v2565_v28, %v5976_v0  ;;  %v2567_v53 = vpop.f32.mrb[39].mxu1  ;;  %2978 = vmatprep.mubr.bf16.mxu0 %v2760_v7  ;;  %vm2634_vm5 = vcmp.gt.f32.partialorder %v2562_v42, 0.0 }
 0x48a   : > { %v2667_v1 = vmul.f32 0.01, %v2564_v6  ;;  %v2568_v24 = vadd.f32 %v2567_v53, %v5979_v40  ;;  %2979 = vmatmul.mubr.bf16.vlgmr.msra.gmra.mrb[64].mxu0 %v2759_v62  ;;  %vm2635_vm6 = vcmp.gt.f32.partialorder %v2564_v6, 0.0 }
 0x48b   : > { %vm2636_vm7 = vcmp.gt.f32.partialorder %v2566_v19, 0.0  ;;  %v2668_v32 = vmul.f32 0.01, %v2566_v19  ;;  %v2698_v14 = vsel %vm2634_vm5, %v2562_v42, %v2666_v9 }
 0x48c   : > { %vm2637_vm8 = vcmp.gt.f32.partialorder %v2568_v24, 0.0  ;;  %v2669_v11 = vmul.f32 0.01, %v2568_v24  ;;  %v2699_v35 = vsel %vm2635_vm6, %v2564_v6, %v2667_v1 }
 0x48d   : > { %v2700_v3 = vsel %vm2636_vm7, %v2566_v19, %v2668_v32 }
 0x48e   : > { %v2571_v17 = vpop.f32.mrb[40].mxu1  ;;  %v2701_v5 = vsel %vm2637_vm8, %v2568_v24, %v2669_v11  ;;  %v2761_v21 = vpack.c.bf16 %v2700_v3, %v2698_v14 }
 0x48f   : > { %v2572_v44 = vadd.f32 %v2571_v17, %v5976_v0  ;;  %v2573_v22 = vpop.f32.mrb[41].mxu1  ;;  %v2762_v25 = vpack.c.bf16 %v2701_v5, %v2699_v35 }
 0x490   : > { %v2574_v8 = vadd.f32 %v2573_v22, %v5979_v40  ;;  %v2575_v31 = vpop.f32.mrb[42].mxu1 }
 0x491   : > { %v2670_v54 = vmul.f32 0.01, %v2572_v44  ;;  %v2576_v18 = vadd.f32 %v2575_v31, %v5976_v0  ;;  %v2577_v30 = vpop.f32.mrb[43].mxu1  ;;  %2988 = vmatprep.mubr.bf16.mxu0 %v2762_v25  ;;  %vm2638_vm9 = vcmp.gt.f32.partialorder %v2572_v44, 0.0 }
 0x492   : > { %v2671_v33 = vmul.f32 0.01, %v2574_v8  ;;  %v2578_v20 = vadd.f32 %v2577_v30, %v5979_v40  ;;  %2989 = vmatmul.mubr.bf16.gmra.mrb[68].mxu0 %v2761_v21  ;;  %vm2639_vm10 = vcmp.gt.f32.partialorder %v2574_v8, 0.0 }
 0x493   : > { %vm2640_vm11 = vcmp.gt.f32.partialorder %v2576_v18, 0.0  ;;  %v2672_v37 = vmul.f32 0.01, %v2576_v18  ;;  %v2702_v41 = vsel %vm2638_vm9, %v2572_v44, %v2670_v54 }
 0x494   : > { %vm2641_vm12 = vcmp.gt.f32.partialorder %v2578_v20, 0.0  ;;  %v2673_v34 = vmul.f32 0.01, %v2578_v20  ;;  %v2703_v47 = vsel %vm2639_vm10, %v2574_v8, %v2671_v33 }
 0x495   : > { %v2704_v15 = vsel %vm2640_vm11, %v2576_v18, %v2672_v37 }
 0x496   : > { %v2581_v43 = vpop.f32.mrb[44].mxu1  ;;  %v2705_v45 = vsel %vm2641_vm12, %v2578_v20, %v2673_v34  ;;  %v2763_v36 = vpack.c.bf16 %v2704_v15, %v2702_v41 }
 0x497   : > { %v2582_v26 = vadd.f32 %v2581_v43, %v5976_v0  ;;  %v2583_v10 = vpop.f32.mrb[45].mxu1  ;;  %v2764_v12 = vpack.c.bf16 %v2705_v45, %v2703_v47 }
 0x498   : > { %v2584_v46 = vadd.f32 %v2583_v10, %v5979_v40  ;;  %v2585_v2 = vpop.f32.mrb[46].mxu1 }
 0x499   : > { %v2674_v23 = vmul.f32 0.01, %v2582_v26  ;;  %v2586_v50 = vadd.f32 %v2585_v2, %v5976_v0  ;;  %v2587_v59 = vpop.f32.mrb[47].mxu1  ;;  %2998 = vmatprep.mubr.bf16.mxu0 %v2764_v12  ;;  %vm2642_vm13 = vcmp.gt.f32.partialorder %v2582_v26, 0.0 }
 0x49a   : > { %v2675_v58 = vmul.f32 0.01, %v2584_v46  ;;  %v2588_v51 = vadd.f32 %v2587_v59, %v5979_v40  ;;  %2999 = vmatmul.mubr.bf16.gmra.mrb[72].mxu0 %v2763_v36  ;;  %vm2643_vm14 = vcmp.gt.f32.partialorder %v2584_v46, 0.0 }
 0x49b   : > { %vm2644_vm15 = vcmp.gt.f32.partialorder %v2586_v50, 0.0  ;;  %v2676_v27 = vmul.f32 0.01, %v2586_v50  ;;  %v2706_v13 = vsel %vm2642_vm13, %v2582_v26, %v2674_v23 }
 0x49c   : > { %vm2645_vm0 = vcmp.gt.f32.partialorder %v2588_v51, 0.0  ;;  %v2677_v63 = vmul.f32 0.01, %v2588_v51  ;;  %v2707_v52 = vsel %vm2643_vm14, %v2584_v46, %v2675_v58 }
 0x49d   : > { %v2708_v55 = vsel %vm2644_vm15, %v2586_v50, %v2676_v27 }
 0x49e   : > { %v2591_v57 = vpop.f32.mrb[48].mxu1  ;;  %v2709_v39 = vsel %vm2645_vm0, %v2588_v51, %v2677_v63  ;;  %v2765_v62 = vpack.c.bf16 %v2708_v55, %v2706_v13 }
 0x49f   : > { %v2592_v60 = vadd.f32 %v2591_v57, %v5976_v0  ;;  %v2593_v48 = vpop.f32.mrb[49].mxu1  ;;  %v2766_v49 = vpack.c.bf16 %v2709_v39, %v2707_v52 }
 0x4a0   : > { %v2594_v42 = vadd.f32 %v2593_v48, %v5979_v40  ;;  %v2595_v4 = vpop.f32.mrb[50].mxu1 }
 0x4a1   : > { %v2678_v7 = vmul.f32 0.01, %v2592_v60  ;;  %v2596_v6 = vadd.f32 %v2595_v4, %v5976_v0  ;;  %v2597_v28 = vpop.f32.mrb[51].mxu1  ;;  %3008 = vmatprep.mubr.bf16.mxu0 %v2766_v49  ;;  %vm2646_vm3 = vcmp.gt.f32.partialorder %v2592_v60, 0.0 }
 0x4a2   : > { %v2679_v9 = vmul.f32 0.01, %v2594_v42  ;;  %v2598_v19 = vadd.f32 %v2597_v28, %v5979_v40  ;;  %3009 = vmatmul.mubr.bf16.gmra.mrb[76].mxu0 %v2765_v62  ;;  %vm2647_vm4 = vcmp.gt.f32.partialorder %v2594_v42, 0.0 }
 0x4a3   : > { %vm2648_vm5 = vcmp.gt.f32.partialorder %v2596_v6, 0.0  ;;  %v2680_v53 = vmul.f32 0.01, %v2596_v6  ;;  %v2710_v24 = vsel %vm2646_vm3, %v2592_v60, %v2678_v7 }
 0x4a4   : > { %vm2649_vm6 = vcmp.gt.f32.partialorder %v2598_v19, 0.0  ;;  %v2681_v1 = vmul.f32 0.01, %v2598_v19  ;;  %v2711_v14 = vsel %vm2647_vm4, %v2594_v42, %v2679_v9 }
 0x4a5   : > { %v2712_v32 = vsel %vm2648_vm5, %v2596_v6, %v2680_v53 }
 0x4a6   : > { %v2601_v11 = vpop.f32.mrb[52].mxu1  ;;  %v2713_v3 = vsel %vm2649_vm6, %v2598_v19, %v2681_v1  ;;  %v2767_v17 = vpack.c.bf16 %v2712_v32, %v2710_v24 }
 0x4a7   : > { %v2602_v35 = vadd.f32 %v2601_v11, %v5976_v0  ;;  %v2603_v5 = vpop.f32.mrb[53].mxu1  ;;  %v2768_v21 = vpack.c.bf16 %v2713_v3, %v2711_v14  ;;  %v4793_v14 = vld [vmem:[#allocation6 + $0xe0] ss:$8 sps:$4 sm:$0xff]   ;;  %v4798_v3 = vld [vmem:[#allocation6 + $0xf4] ss:$8 sps:$4 sm:$0xff]  }
 0x4a8   : > { %v2604_v44 = vadd.f32 %v2603_v5, %v5979_v40  ;;  %v2605_v22 = vpop.f32.mrb[54].mxu1  ;;  %v4801_v5 = vld [vmem:[#allocation7 + $0x48] sm:$0xff]  }
 0x4a9   : > { %v2682_v25 = vmul.f32 0.01, %v2602_v35  ;;  %v2606_v8 = vadd.f32 %v2605_v22, %v5976_v0  ;;  %v2607_v31 = vpop.f32.mrb[55].mxu1  ;;  %3018 = vmatprep.mubr.bf16.mxu0 %v2768_v21  ;;  %vm2650_vm7 = vcmp.gt.f32.partialorder %v2602_v35, 0.0  ;;  %v4802_v21 = vld [vmem:[#allocation7 + $0x8] sm:$0xff]   ;;  %v4804_v22 = vld [vmem:[#allocation7 + $0x10] sm:$0xff]  }
 0x4aa   : > { %v2683_v54 = vmul.f32 0.01, %v2604_v44  ;;  %v2608_v18 = vadd.f32 %v2607_v31, %v5979_v40  ;;  %3019 = vmatmul.mubr.bf16.gmra.mrb[80].mxu0 %v2767_v17  ;;  %vm2651_vm8 = vcmp.gt.f32.partialorder %v2604_v44, 0.0  ;;  %v4799_v17 = vld [vmem:[#allocation7 + $0x40] sm:$0xff]  }
 0x4ab   : > { %vm2652_vm9 = vcmp.gt.f32.partialorder %v2606_v8, 0.0  ;;  %v2684_v30 = vmul.f32 0.01, %v2606_v8  ;;  %v2714_v20 = vsel %vm2650_vm7, %v2602_v35, %v2682_v25  ;;  %v4800_v35 = vld [vmem:[#allocation7] sm:$0xff]   ;;  %4357 = vmatprep.subr.bf16.mxu0 %v4799_v17  ;;  %v4805_v25 = vld [vmem:[#allocation7 + $0x58] sm:$0xff]  }
 0x4ac   : > { %vm2653_vm10 = vcmp.gt.f32.partialorder %v2608_v18, 0.0  ;;  %v2685_v33 = vmul.f32 0.01, %v2608_v18  ;;  %v2715_v41 = vsel %vm2651_vm8, %v2604_v44, %v2683_v54  ;;  %4358 = vmatpush3.bf16.msra.mxu0 %v4800_v35  ;;  %v4803_v44 = vld [vmem:[#allocation7 + $0x50] sm:$0xff]   ;;  %v4807_v31 = vld [vmem:[#allocation7 + $0x60] sm:$0xff]  }
 0x4ad   : > { %v2716_v37 = vsel %vm2652_vm9, %v2606_v8, %v2684_v30  ;;  %4359 = vmatprep.subr.bf16.mxu0 %v4801_v5  ;;  %v4806_v8 = vld [vmem:[#allocation7 + $0x18] sm:$0xff]   ;;  %v4808_v54 = vld [vmem:[#allocation7 + $0x20] sm:$0xff]   ;;  %v4810_v30 = vld [vmem:[#allocation7 + $0x28] sm:$0xff]  }
 0x4ae   : > { %v2611_v34 = vpop.f32.mrb[56].mxu1  ;;  %v2717_v15 = vsel %vm2653_vm10, %v2608_v18, %v2685_v33  ;;  %v2769_v43 = vpack.c.bf16 %v2716_v37, %v2714_v20  ;;  %v4809_v18 = vld [vmem:[#allocation7 + $0x68] sm:$0xff]   ;;  %v4811_v33 = vld [vmem:[#allocation7 + $0x70] sm:$0xff]   ;;  %v2758_v37 = vld [vmem:[%s6229_s19] sm:$0x3] }
 0x4af   : > { %v2612_v47 = vadd.f32 %v2611_v34, %v5976_v0  ;;  %v2613_v45 = vpop.f32.mrb[57].mxu1  ;;  %v2770_v36 = vpack.c.bf16 %v2717_v15, %v2715_v41  ;;  %v4812_v20 = vld [vmem:[#allocation7 + $0x30] sm:$0xff]   ;;  %v6017_v34 = vrot.slane %v2758_v37, %v5832_v56  ;;  %v6020_v41 = vrot.slane %v2758_v37, %v5838_v16 }
 0x4b0   : > { %v2614_v26 = vadd.f32 %v2613_v45, %v5979_v40  ;;  %v2615_v10 = vpop.f32.mrb[58].mxu1  ;;  %4360 = vmatpush3.bf16.msra.mxu0 %v4802_v21 }
 0x4b1   : > { %v2686_v12 = vmul.f32 0.01, %v2612_v47  ;;  %v2616_v46 = vadd.f32 %v2615_v10, %v5976_v0  ;;  %v2617_v2 = vpop.f32.mrb[59].mxu1  ;;  %3028 = vmatprep.mubr.bf16.mxu0 %v2770_v36  ;;  %vm2654_vm11 = vcmp.gt.f32.partialorder %v2612_v47, 0.0  ;;  %4361 = vmatprep.subr.bf16.mxu0 %v4803_v44 }
 0x4b2   : > { %v2687_v23 = vmul.f32 0.01, %v2614_v26  ;;  %v2618_v50 = vadd.f32 %v2617_v2, %v5979_v40  ;;  %3029 = vmatmul.mubr.bf16.gmra.mrb[84].mxu0 %v2769_v43  ;;  %vm2655_vm12 = vcmp.gt.f32.partialorder %v2614_v26, 0.0 }
 0x4b3   : > { %vm2656_vm13 = vcmp.gt.f32.partialorder %v2616_v46, 0.0  ;;  %v2688_v59 = vmul.f32 0.01, %v2616_v46  ;;  %v2718_v51 = vsel %vm2654_vm11, %v2612_v47, %v2686_v12 }
 0x4b4   : > { %vm2657_vm14 = vcmp.gt.f32.partialorder %v2618_v50, 0.0  ;;  %v2689_v58 = vmul.f32 0.01, %v2618_v50  ;;  %v2719_v13 = vsel %vm2655_vm12, %v2614_v26, %v2687_v23  ;;  %4362 = vmatpush3.bf16.msra.mxu0 %v4804_v22 }
 0x4b5   : > { %v2720_v27 = vsel %vm2656_vm13, %v2616_v46, %v2688_v59  ;;  %4363 = vmatprep.subr.bf16.mxu0 %v4805_v25 }
 0x4b6   : > { %v2621_v63 = vpop.f32.mrb[60].mxu1  ;;  %v2721_v55 = vsel %vm2657_vm14, %v2618_v50, %v2689_v58  ;;  %v2771_v57 = vpack.c.bf16 %v2720_v27, %v2718_v51 }
 0x4b7   : > { %v2622_v52 = vadd.f32 %v2621_v63, %v5976_v0  ;;  %v2623_v39 = vpop.f32.mrb[61].mxu1  ;;  %v2772_v62 = vpack.c.bf16 %v2721_v55, %v2719_v13 }
 0x4b8   : > { %v2624_v60 = vadd.f32 %v2623_v39, %v5979_v40  ;;  %v2625_v48 = vpop.f32.mrb[62].mxu1  ;;  %4364 = vmatpush3.bf16.msra.mxu0 %v4806_v8 }
 0x4b9   : > { %v2690_v49 = vmul.f32 0.01, %v2622_v52  ;;  %v2626_v42 = vadd.f32 %v2625_v48, %v5976_v0  ;;  %v2627_v4 = vpop.f32.mrb[63].mxu1  ;;  %3038 = vmatprep.mubr.bf16.mxu0 %v2772_v62  ;;  %vm2658_vm15 = vcmp.gt.f32.partialorder %v2622_v52, 0.0  ;;  %v4795_v0 = vld [vmem:[#allocation6 + $0xe4] ss:$8 sps:$4 sm:$0xff]   ;;  %4365 = vmatprep.subr.bf16.mxu0 %v4807_v31 }
 0x4ba   : > { %v2691_v7 = vmul.f32 0.01, %v2624_v60  ;;  %v2628_v6 = vadd.f32 %v2627_v4, %v5979_v40  ;;  %3039 = vmatmul.mubr.bf16.gmra.mrb[88].mxu0 %v2771_v57  ;;  %vm2659_vm0 = vcmp.gt.f32.partialorder %v2624_v60, 0.0  ;;  %3403 = vmatprep.subr.bf16.mxu1 %v4795_v0  ;;  %v4796_v40 = vld [vmem:[#allocation6 + $0xf0] ss:$8 sps:$4 sm:$0xff]  }
 0x4bb   : > { %vm2660_vm3 = vcmp.gt.f32.partialorder %v2626_v42, 0.0  ;;  %v2692_v28 = vmul.f32 0.01, %v2626_v42  ;;  %v2722_v19 = vsel %vm2658_vm15, %v2622_v52, %v2690_v49  ;;  %3404 = vmatpush1.bf16.msra.mxu1 %v4793_v14 }
 0x4bc   : > { %vm2661_vm4 = vcmp.gt.f32.partialorder %v2628_v6, 0.0  ;;  %v2693_v9 = vmul.f32 0.01, %v2628_v6  ;;  %v2723_v1 = vsel %vm2659_vm0, %v2624_v60, %v2691_v7  ;;  %3405 = vmatprep.subr.bf16.mxu1 %v4798_v3  ;;  %4366 = vmatpush3.bf16.msra.mxu0 %v4808_v54 }
 0x4bd   : > { %v2724_v53 = vsel %vm2660_vm3, %v2626_v42, %v2692_v28  ;;  %4367 = vmatprep.subr.bf16.mxu0 %v4809_v18 }
 0x4be   : > { %v2725_v24 = vsel %vm2661_vm4, %v2628_v6, %v2693_v9  ;;  %v2773_v32 = vpack.c.bf16 %v2724_v53, %v2722_v19 }
 0x4bf   : > { %v2774_v11 = vpack.c.bf16 %v2725_v24, %v2723_v1  ;;  %3406 = vmatpush1.bf16.msra.mxu1 %v4796_v40 }
 0x4c0   : > { %4368 = vmatpush3.bf16.msra.mxu0 %v4810_v30 }
 0x4c1   : > { %3048 = vmatprep.mubr.bf16.mxu0 %v2774_v11  ;;  %4369 = vmatprep.subr.bf16.mxu0 %v4811_v33 }
 0x4c2   : > { %3049 = vmatmul.mubr.bf16.gmra.mrb[92].mxu0 %v2773_v32 }
 0x4c4   : > { %4370 = vmatpush3.bf16.msra.mxu0 %v4812_v20 }
 0x55d   : > { %v2980_v15 = vpop.f32.mrb[64].mxu0 }
 0x55e   : > { %v2981_v43 = vadd.f32 %v2980_v15, %v6017_v34  ;;  %v2982_v47 = vpop.f32.mrb[65].mxu0 }
 0x55f   : > { %v2983_v45 = vadd.f32 %v2982_v47, %v6020_v41  ;;  %v2984_v36 = vpop.f32.mrb[66].mxu0 }
 0x560   : > { %v3091_v26 = vmul.f32 0.01, %v2981_v43  ;;  %v2985_v10 = vadd.f32 %v2984_v36, %v6017_v34  ;;  %v2986_v12 = vpop.f32.mrb[67].mxu0  ;;  %vm3059_vm5 = vcmp.gt.f32.partialorder %v2981_v43, 0.0 }
 0x561   : > { %v3092_v46 = vmul.f32 0.01, %v2983_v45  ;;  %v2987_v2 = vadd.f32 %v2986_v12, %v6020_v41  ;;  %vm3060_vm6 = vcmp.gt.f32.partialorder %v2983_v45, 0.0 }
 0x562   : > { %vm3061_vm7 = vcmp.gt.f32.partialorder %v2985_v10, 0.0  ;;  %v3093_v23 = vmul.f32 0.01, %v2985_v10  ;;  %v3123_v59 = vsel %vm3059_vm5, %v2981_v43, %v3091_v26 }
 0x563   : > { %vm3062_vm8 = vcmp.gt.f32.partialorder %v2987_v2, 0.0  ;;  %v3094_v50 = vmul.f32 0.01, %v2987_v2  ;;  %v3124_v63 = vsel %vm3060_vm6, %v2983_v45, %v3092_v46 }
 0x564   : > { %v3125_v58 = vsel %vm3061_vm7, %v2985_v10, %v3093_v23 }
 0x565   : > { %v3188_v51 = vpack.c.bf16 %v3125_v58, %v3123_v59  ;;  %v2990_v27 = vpop.f32.mrb[68].mxu0  ;;  %v3126_v13 = vsel %vm3062_vm8, %v2987_v2, %v3094_v50 }
 0x566   : > { %v2991_v55 = vadd.f32 %v2990_v27, %v6017_v34  ;;  %v2992_v57 = vpop.f32.mrb[69].mxu0  ;;  %v3189_v52 = vpack.c.bf16 %v3126_v13, %v3124_v63 }
 0x567   : > { %v2993_v39 = vadd.f32 %v2992_v57, %v6020_v41  ;;  %v2994_v62 = vpop.f32.mrb[70].mxu0 }
 0x568   : > { %v3095_v60 = vmul.f32 0.01, %v2991_v55  ;;  %v2995_v48 = vadd.f32 %v2994_v62, %v6017_v34  ;;  %v2996_v49 = vpop.f32.mrb[71].mxu0  ;;  %3407 = vmatprep.mubr.bf16.mxu1 %v3189_v52  ;;  %vm3063_vm9 = vcmp.gt.f32.partialorder %v2991_v55, 0.0 }
 0x569   : > { %v3096_v42 = vmul.f32 0.01, %v2993_v39  ;;  %v2997_v4 = vadd.f32 %v2996_v49, %v6020_v41  ;;  %3408 = vmatmul.mubr.bf16.vlgmr.msra.gmra.mrb[64].mxu1 %v3188_v51  ;;  %vm3064_vm10 = vcmp.gt.f32.partialorder %v2993_v39, 0.0 }
 0x56a   : > { %vm3065_vm11 = vcmp.gt.f32.partialorder %v2995_v48, 0.0  ;;  %v3097_v7 = vmul.f32 0.01, %v2995_v48  ;;  %v3127_v28 = vsel %vm3063_vm9, %v2991_v55, %v3095_v60 }
 0x56b   : > { %vm3066_vm12 = vcmp.gt.f32.partialorder %v2997_v4, 0.0  ;;  %v3098_v6 = vmul.f32 0.01, %v2997_v4  ;;  %v3128_v53 = vsel %vm3064_vm10, %v2993_v39, %v3096_v42 }
 0x56c   : > { %v3129_v9 = vsel %vm3065_vm11, %v2995_v48, %v3097_v7 }
 0x56d   : > { %v3000_v19 = vpop.f32.mrb[72].mxu0  ;;  %v3130_v1 = vsel %vm3066_vm12, %v2997_v4, %v3098_v6  ;;  %v3190_v24 = vpack.c.bf16 %v3129_v9, %v3127_v28 }
 0x56e   : > { %v3001_v32 = vadd.f32 %v3000_v19, %v6017_v34  ;;  %v3002_v11 = vpop.f32.mrb[73].mxu0  ;;  %v3191_v0 = vpack.c.bf16 %v3130_v1, %v3128_v53 }
 0x56f   : > { %v3003_v14 = vadd.f32 %v3002_v11, %v6020_v41  ;;  %v3004_v3 = vpop.f32.mrb[74].mxu0 }
 0x570   : > { %v3099_v40 = vmul.f32 0.01, %v3001_v32  ;;  %v3005_v17 = vadd.f32 %v3004_v3, %v6017_v34  ;;  %v3006_v35 = vpop.f32.mrb[75].mxu0  ;;  %3417 = vmatprep.mubr.bf16.mxu1 %v3191_v0  ;;  %vm3067_vm13 = vcmp.gt.f32.partialorder %v3001_v32, 0.0 }
 0x571   : > { %v3100_v5 = vmul.f32 0.01, %v3003_v14  ;;  %v3007_v21 = vadd.f32 %v3006_v35, %v6020_v41  ;;  %3418 = vmatmul.mubr.bf16.gmra.mrb[68].mxu1 %v3190_v24  ;;  %vm3068_vm14 = vcmp.gt.f32.partialorder %v3003_v14, 0.0 }
 0x572   : > { %vm3069_vm15 = vcmp.gt.f32.partialorder %v3005_v17, 0.0  ;;  %v3101_v44 = vmul.f32 0.01, %v3005_v17  ;;  %v3131_v25 = vsel %vm3067_vm13, %v3001_v32, %v3099_v40 }
 0x573   : > { %vm3070_vm0 = vcmp.gt.f32.partialorder %v3007_v21, 0.0  ;;  %v3102_v22 = vmul.f32 0.01, %v3007_v21  ;;  %v3132_v54 = vsel %vm3068_vm14, %v3003_v14, %v3100_v5 }
 0x574   : > { %v3133_v8 = vsel %vm3069_vm15, %v3005_v17, %v3101_v44 }
 0x575   : > { %v3010_v31 = vpop.f32.mrb[76].mxu0  ;;  %v3134_v18 = vsel %vm3070_vm0, %v3007_v21, %v3102_v22  ;;  %v3192_v30 = vpack.c.bf16 %v3133_v8, %v3131_v25 }
 0x576   : > { %v3011_v33 = vadd.f32 %v3010_v31, %v6017_v34  ;;  %v3012_v20 = vpop.f32.mrb[77].mxu0  ;;  %v3193_v37 = vpack.c.bf16 %v3134_v18, %v3132_v54 }
 0x577   : > { %v3013_v15 = vadd.f32 %v3012_v20, %v6020_v41  ;;  %v3014_v43 = vpop.f32.mrb[78].mxu0 }
 0x578   : > { %v3103_v47 = vmul.f32 0.01, %v3011_v33  ;;  %v3015_v45 = vadd.f32 %v3014_v43, %v6017_v34  ;;  %v3016_v36 = vpop.f32.mrb[79].mxu0  ;;  %3427 = vmatprep.mubr.bf16.mxu1 %v3193_v37  ;;  %vm3071_vm3 = vcmp.gt.f32.partialorder %v3011_v33, 0.0 }
 0x579   : > { %v3104_v26 = vmul.f32 0.01, %v3013_v15  ;;  %v3017_v10 = vadd.f32 %v3016_v36, %v6020_v41  ;;  %3428 = vmatmul.mubr.bf16.gmra.mrb[72].mxu1 %v3192_v30  ;;  %vm3072_vm4 = vcmp.gt.f32.partialorder %v3013_v15, 0.0 }
 0x57a   : > { %vm3073_vm5 = vcmp.gt.f32.partialorder %v3015_v45, 0.0  ;;  %v3105_v12 = vmul.f32 0.01, %v3015_v45  ;;  %v3135_v2 = vsel %vm3071_vm3, %v3011_v33, %v3103_v47 }
 0x57b   : > { %vm3074_vm6 = vcmp.gt.f32.partialorder %v3017_v10, 0.0  ;;  %v3106_v46 = vmul.f32 0.01, %v3017_v10  ;;  %v3136_v59 = vsel %vm3072_vm4, %v3013_v15, %v3104_v26 }
 0x57c   : > { %v3137_v23 = vsel %vm3073_vm5, %v3015_v45, %v3105_v12 }
 0x57d   : > { %v3020_v50 = vpop.f32.mrb[80].mxu0  ;;  %v3138_v58 = vsel %vm3074_vm6, %v3017_v10, %v3106_v46  ;;  %v3194_v51 = vpack.c.bf16 %v3137_v23, %v3135_v2 }
 0x57e   : > { %v3021_v27 = vadd.f32 %v3020_v50, %v6017_v34  ;;  %v3022_v63 = vpop.f32.mrb[81].mxu0  ;;  %v3195_v13 = vpack.c.bf16 %v3138_v58, %v3136_v59 }
 0x57f   : > { %v3023_v55 = vadd.f32 %v3022_v63, %v6020_v41  ;;  %v3024_v57 = vpop.f32.mrb[82].mxu0 }
 0x580   : > { %v3107_v52 = vmul.f32 0.01, %v3021_v27  ;;  %v3025_v39 = vadd.f32 %v3024_v57, %v6017_v34  ;;  %v3026_v62 = vpop.f32.mrb[83].mxu0  ;;  %3437 = vmatprep.mubr.bf16.mxu1 %v3195_v13  ;;  %vm3075_vm7 = vcmp.gt.f32.partialorder %v3021_v27, 0.0 }
 0x581   : > { %v3108_v60 = vmul.f32 0.01, %v3023_v55  ;;  %v3027_v48 = vadd.f32 %v3026_v62, %v6020_v41  ;;  %3438 = vmatmul.mubr.bf16.gmra.mrb[76].mxu1 %v3194_v51  ;;  %vm3076_vm8 = vcmp.gt.f32.partialorder %v3023_v55, 0.0 }
 0x582   : > { %vm3077_vm9 = vcmp.gt.f32.partialorder %v3025_v39, 0.0  ;;  %v3109_v49 = vmul.f32 0.01, %v3025_v39  ;;  %v3139_v4 = vsel %vm3075_vm7, %v3021_v27, %v3107_v52 }
 0x583   : > { %vm3078_vm10 = vcmp.gt.f32.partialorder %v3027_v48, 0.0  ;;  %v3110_v42 = vmul.f32 0.01, %v3027_v48  ;;  %v3140_v28 = vsel %vm3076_vm8, %v3023_v55, %v3108_v60 }
 0x584   : > { %v3141_v7 = vsel %vm3077_vm9, %v3025_v39, %v3109_v49 }
 0x585   : > { %v3030_v6 = vpop.f32.mrb[84].mxu0  ;;  %v3142_v9 = vsel %vm3078_vm10, %v3027_v48, %v3110_v42  ;;  %v3196_v19 = vpack.c.bf16 %v3141_v7, %v3139_v4 }
 0x586   : > { %v3031_v53 = vadd.f32 %v3030_v6, %v6017_v34  ;;  %v3032_v1 = vpop.f32.mrb[85].mxu0  ;;  %v3197_v24 = vpack.c.bf16 %v3142_v9, %v3140_v28  ;;  %v4814_v28 = vld [vmem:[#allocation7 + $0x38] sm:$0xff]  }
 0x587   : > { %v3033_v32 = vadd.f32 %v3032_v1, %v6020_v41  ;;  %v3034_v11 = vpop.f32.mrb[86].mxu0 }
 0x588   : > { %v3111_v0 = vmul.f32 0.01, %v3031_v53  ;;  %v3035_v14 = vadd.f32 %v3034_v11, %v6017_v34  ;;  %v3036_v3 = vpop.f32.mrb[87].mxu0  ;;  %3447 = vmatprep.mubr.bf16.mxu1 %v3197_v24  ;;  %vm3079_vm11 = vcmp.gt.f32.partialorder %v3031_v53, 0.0 }
 0x589   : > { %v3112_v40 = vmul.f32 0.01, %v3033_v32  ;;  %v3037_v17 = vadd.f32 %v3036_v3, %v6020_v41  ;;  %3448 = vmatmul.mubr.bf16.gmra.mrb[80].mxu1 %v3196_v19  ;;  %vm3080_vm12 = vcmp.gt.f32.partialorder %v3033_v32, 0.0 }
 0x58a   : > { %vm3081_vm13 = vcmp.gt.f32.partialorder %v3035_v14, 0.0  ;;  %v3113_v35 = vmul.f32 0.01, %v3035_v14  ;;  %v3143_v21 = vsel %vm3079_vm11, %v3031_v53, %v3111_v0 }
 0x58b   : > { %vm3082_vm14 = vcmp.gt.f32.partialorder %v3037_v17, 0.0  ;;  %v3114_v5 = vmul.f32 0.01, %v3037_v17  ;;  %v3144_v25 = vsel %vm3080_vm12, %v3033_v32, %v3112_v40 }
 0x58c   : > { %v3145_v44 = vsel %vm3081_vm13, %v3035_v14, %v3113_v35 }
 0x58d   : > { %v3040_v22 = vpop.f32.mrb[88].mxu0  ;;  %v3146_v8 = vsel %vm3082_vm14, %v3037_v17, %v3114_v5  ;;  %v3198_v31 = vpack.c.bf16 %v3145_v44, %v3143_v21 }
 0x58e   : > { %v3041_v54 = vadd.f32 %v3040_v22, %v6017_v34  ;;  %v3042_v18 = vpop.f32.mrb[89].mxu0  ;;  %v3199_v30 = vpack.c.bf16 %v3146_v8, %v3144_v25 }
 0x58f   : > { %v3043_v33 = vadd.f32 %v3042_v18, %v6020_v41  ;;  %v3044_v20 = vpop.f32.mrb[90].mxu0 }
 0x590   : > { %v3115_v37 = vmul.f32 0.01, %v3041_v54  ;;  %v3045_v15 = vadd.f32 %v3044_v20, %v6017_v34  ;;  %v3046_v43 = vpop.f32.mrb[91].mxu0  ;;  %3457 = vmatprep.mubr.bf16.mxu1 %v3199_v30  ;;  %vm3083_vm15 = vcmp.gt.f32.partialorder %v3041_v54, 0.0 }
 0x591   : > { %v3116_v47 = vmul.f32 0.01, %v3043_v33  ;;  %v3047_v45 = vadd.f32 %v3046_v43, %v6020_v41  ;;  %3458 = vmatmul.mubr.bf16.gmra.mrb[84].mxu1 %v3198_v31  ;;  %vm3084_vm0 = vcmp.gt.f32.partialorder %v3043_v33, 0.0 }
 0x592   : > { %vm3085_vm3 = vcmp.gt.f32.partialorder %v3045_v15, 0.0  ;;  %v3117_v36 = vmul.f32 0.01, %v3045_v15  ;;  %v3147_v10 = vsel %vm3083_vm15, %v3041_v54, %v3115_v37 }
 0x593   : > { %vm3086_vm4 = vcmp.gt.f32.partialorder %v3047_v45, 0.0  ;;  %v3118_v26 = vmul.f32 0.01, %v3047_v45  ;;  %v3148_v2 = vsel %vm3084_vm0, %v3043_v33, %v3116_v47 }
 0x594   : > { %v3149_v12 = vsel %vm3085_vm3, %v3045_v15, %v3117_v36 }
 0x595   : > { %v3050_v46 = vpop.f32.mrb[92].mxu0  ;;  %v3150_v23 = vsel %vm3086_vm4, %v3047_v45, %v3118_v26  ;;  %v3200_v50 = vpack.c.bf16 %v3149_v12, %v3147_v10 }
 0x596   : > { %v3051_v59 = vadd.f32 %v3050_v46, %v6017_v34  ;;  %v3052_v58 = vpop.f32.mrb[93].mxu0  ;;  %v3201_v51 = vpack.c.bf16 %v3150_v23, %v3148_v2 }
 0x597   : > { %v3053_v27 = vadd.f32 %v3052_v58, %v6020_v41  ;;  %v3054_v63 = vpop.f32.mrb[94].mxu0 }
 0x598   : > { %v3119_v13 = vmul.f32 0.01, %v3051_v59  ;;  %v3055_v55 = vadd.f32 %v3054_v63, %v6017_v34  ;;  %v3056_v57 = vpop.f32.mrb[95].mxu0  ;;  %3467 = vmatprep.mubr.bf16.mxu1 %v3201_v51  ;;  %vm3087_vm5 = vcmp.gt.f32.partialorder %v3051_v59, 0.0  ;;  %v4813_v34 = vld [vmem:[#allocation7 + $0x78] sm:$0xff]  }
 0x599   : > { %v3120_v52 = vmul.f32 0.01, %v3053_v27  ;;  %v3057_v39 = vadd.f32 %v3056_v57, %v6020_v41  ;;  %3468 = vmatmul.mubr.bf16.gmra.mrb[88].mxu1 %v3200_v50  ;;  %vm3088_vm6 = vcmp.gt.f32.partialorder %v3053_v27, 0.0  ;;  %4371 = vmatprep.subr.bf16.mxu0 %v4813_v34  ;;  %v3187_v41 = vld [vmem:[%s6230_s16] sm:$0x3] }
 0x59a   : > { %vm3089_vm7 = vcmp.gt.f32.partialorder %v3055_v55, 0.0  ;;  %v3121_v62 = vmul.f32 0.01, %v3055_v55  ;;  %v3151_v48 = vsel %vm3087_vm5, %v3051_v59, %v3119_v13  ;;  %4372 = vmatpush3.bf16.msra.mxu0 %v4814_v28  ;;  %v6058_v9 = vrot.slane %v3187_v41, %v5832_v56 }
 0x59b   : > { %vm3090_vm8 = vcmp.gt.f32.partialorder %v3057_v39, 0.0  ;;  %v3122_v60 = vmul.f32 0.01, %v3057_v39  ;;  %v3152_v42 = vsel %vm3088_vm6, %v3053_v27, %v3120_v52  ;;  %v6061_v19 = vrot.slane %v3187_v41, %v5838_v16 }
 0x59c   : > { %v3153_v49 = vsel %vm3089_vm7, %v3055_v55, %v3121_v62 }
 0x59d   : > { %v3154_v4 = vsel %vm3090_vm8, %v3057_v39, %v3122_v60  ;;  %v3202_v7 = vpack.c.bf16 %v3153_v49, %v3151_v48 }
 0x59e   : > { %v3203_v6 = vpack.c.bf16 %v3154_v4, %v3152_v42 }
 0x5a0   : > { %3477 = vmatprep.mubr.bf16.mxu1 %v3203_v6 }
 0x5a1   : > { %3478 = vmatmul.mubr.bf16.gmra.mrb[92].mxu1 %v3202_v7 }
 0x63c   : > { %v3409_v53 = vpop.f32.mrb[64].mxu1 }
 0x63d   : > { %v3410_v1 = vadd.f32 %v3409_v53, %v6058_v9  ;;  %v3411_v24 = vpop.f32.mrb[65].mxu1 }
 0x63e   : > { %v3412_v32 = vadd.f32 %v3411_v24, %v6061_v19  ;;  %v3413_v11 = vpop.f32.mrb[66].mxu1 }
 0x63f   : > { %v3520_v0 = vmul.f32 0.01, %v3410_v1  ;;  %v3414_v14 = vadd.f32 %v3413_v11, %v6058_v9  ;;  %v3415_v3 = vpop.f32.mrb[67].mxu1  ;;  %vm3488_vm9 = vcmp.gt.f32.partialorder %v3410_v1, 0.0 }
 0x640   : > { %v3521_v40 = vmul.f32 0.01, %v3412_v32  ;;  %v3416_v17 = vadd.f32 %v3415_v3, %v6061_v19  ;;  %vm3489_vm10 = vcmp.gt.f32.partialorder %v3412_v32, 0.0 }
 0x641   : > { %vm3490_vm11 = vcmp.gt.f32.partialorder %v3414_v14, 0.0  ;;  %v3522_v56 = vmul.f32 0.01, %v3414_v14  ;;  %v3552_v35 = vsel %vm3488_vm9, %v3410_v1, %v3520_v0 }
 0x642   : > { %vm3491_vm12 = vcmp.gt.f32.partialorder %v3416_v17, 0.0  ;;  %v3523_v16 = vmul.f32 0.01, %v3416_v17  ;;  %v3553_v22 = vsel %vm3489_vm10, %v3412_v32, %v3521_v40 }
 0x643   : > { %v3554_v5 = vsel %vm3490_vm11, %v3414_v14, %v3522_v56 }
 0x644   : > { %v3617_v21 = vpack.c.bf16 %v3554_v5, %v3552_v35  ;;  %v3419_v44 = vpop.f32.mrb[68].mxu1  ;;  %v3555_v25 = vsel %vm3491_vm12, %v3416_v17, %v3523_v16 }
 0x645   : > { %v3420_v8 = vadd.f32 %v3419_v44, %v6058_v9  ;;  %v3421_v31 = vpop.f32.mrb[69].mxu1  ;;  %v3618_v54 = vpack.c.bf16 %v3555_v25, %v3553_v22 }
 0x646   : > { %v3422_v18 = vadd.f32 %v3421_v31, %v6061_v19  ;;  %v3423_v30 = vpop.f32.mrb[70].mxu1 }
 0x647   : > { %v3524_v33 = vmul.f32 0.01, %v3420_v8  ;;  %v3424_v20 = vadd.f32 %v3423_v30, %v6058_v9  ;;  %v3425_v37 = vpop.f32.mrb[71].mxu1  ;;  %3767 = vmatprep.mubr.bf16.mxu0 %v3618_v54  ;;  %vm3492_vm13 = vcmp.gt.f32.partialorder %v3420_v8, 0.0 }
 0x648   : > { %v3525_v15 = vmul.f32 0.01, %v3422_v18  ;;  %v3426_v43 = vadd.f32 %v3425_v37, %v6061_v19  ;;  %3768 = vmatmul.mubr.bf16.vlgmr.msra.gmra.mrb[96].mxu0 %v3617_v21  ;;  %vm3493_vm14 = vcmp.gt.f32.partialorder %v3422_v18, 0.0 }
 0x649   : > { %vm3494_vm15 = vcmp.gt.f32.partialorder %v3424_v20, 0.0  ;;  %v3526_v47 = vmul.f32 0.01, %v3424_v20  ;;  %v3556_v36 = vsel %vm3492_vm13, %v3420_v8, %v3524_v33 }
 0x64a   : > { %vm3495_vm0 = vcmp.gt.f32.partialorder %v3426_v43, 0.0  ;;  %v3527_v45 = vmul.f32 0.01, %v3426_v43  ;;  %v3557_v12 = vsel %vm3493_vm14, %v3422_v18, %v3525_v15 }
 0x64b   : > { %v3558_v26 = vsel %vm3494_vm15, %v3424_v20, %v3526_v47 }
 0x64c   : > { %v3429_v10 = vpop.f32.mrb[72].mxu1  ;;  %v3559_v46 = vsel %vm3495_vm0, %v3426_v43, %v3527_v45  ;;  %v3619_v2 = vpack.c.bf16 %v3558_v26, %v3556_v36 }
 0x64d   : > { %v3430_v23 = vadd.f32 %v3429_v10, %v6058_v9  ;;  %v3431_v50 = vpop.f32.mrb[73].mxu1  ;;  %v3620_v59 = vpack.c.bf16 %v3559_v46, %v3557_v12 }
 0x64e   : > { %v3432_v58 = vadd.f32 %v3431_v50, %v6061_v19  ;;  %v3433_v51 = vpop.f32.mrb[74].mxu1 }
 0x64f   : > { %v3528_v27 = vmul.f32 0.01, %v3430_v23  ;;  %v3434_v63 = vadd.f32 %v3433_v51, %v6058_v9  ;;  %v3435_v13 = vpop.f32.mrb[75].mxu1  ;;  %3775 = vmatprep.mubr.bf16.mxu0 %v3620_v59  ;;  %vm3496_vm3 = vcmp.gt.f32.partialorder %v3430_v23, 0.0 }
 0x650   : > { %v3529_v55 = vmul.f32 0.01, %v3432_v58  ;;  %v3436_v57 = vadd.f32 %v3435_v13, %v6061_v19  ;;  %3776 = vmatmul.mubr.bf16.gmra.mrb[100].mxu0 %v3619_v2  ;;  %vm3497_vm4 = vcmp.gt.f32.partialorder %v3432_v58, 0.0 }
 0x651   : > { %vm3498_vm5 = vcmp.gt.f32.partialorder %v3434_v63, 0.0  ;;  %v3530_v52 = vmul.f32 0.01, %v3434_v63  ;;  %v3560_v62 = vsel %vm3496_vm3, %v3430_v23, %v3528_v27 }
 0x652   : > { %vm3499_vm6 = vcmp.gt.f32.partialorder %v3436_v57, 0.0  ;;  %v3531_v39 = vmul.f32 0.01, %v3436_v57  ;;  %v3561_v49 = vsel %vm3497_vm4, %v3432_v58, %v3529_v55 }
 0x653   : > { %v3562_v60 = vsel %vm3498_vm5, %v3434_v63, %v3530_v52 }
 0x654   : > { %v3439_v48 = vpop.f32.mrb[76].mxu1  ;;  %v3563_v42 = vsel %vm3499_vm6, %v3436_v57, %v3531_v39  ;;  %v3621_v4 = vpack.c.bf16 %v3562_v60, %v3560_v62 }
 0x655   : > { %v3440_v7 = vadd.f32 %v3439_v48, %v6058_v9  ;;  %v3441_v6 = vpop.f32.mrb[77].mxu1  ;;  %v3622_v34 = vpack.c.bf16 %v3563_v42, %v3561_v49 }
 0x656   : > { %v3442_v28 = vadd.f32 %v3441_v6, %v6061_v19  ;;  %v3443_v41 = vpop.f32.mrb[78].mxu1 }
 0x657   : > { %v3532_v53 = vmul.f32 0.01, %v3440_v7  ;;  %v3444_v1 = vadd.f32 %v3443_v41, %v6058_v9  ;;  %v3445_v24 = vpop.f32.mrb[79].mxu1  ;;  %3783 = vmatprep.mubr.bf16.mxu0 %v3622_v34  ;;  %vm3500_vm7 = vcmp.gt.f32.partialorder %v3440_v7, 0.0 }
 0x658   : > { %v3533_v32 = vmul.f32 0.01, %v3442_v28  ;;  %v3446_v11 = vadd.f32 %v3445_v24, %v6061_v19  ;;  %3784 = vmatmul.mubr.bf16.gmra.mrb[104].mxu0 %v3621_v4  ;;  %vm3501_vm8 = vcmp.gt.f32.partialorder %v3442_v28, 0.0 }
 0x659   : > { %vm3502_vm9 = vcmp.gt.f32.partialorder %v3444_v1, 0.0  ;;  %v3534_v0 = vmul.f32 0.01, %v3444_v1  ;;  %v3564_v3 = vsel %vm3500_vm7, %v3440_v7, %v3532_v53 }
 0x65a   : > { %vm3503_vm10 = vcmp.gt.f32.partialorder %v3446_v11, 0.0  ;;  %v3535_v14 = vmul.f32 0.01, %v3446_v11  ;;  %v3565_v56 = vsel %vm3501_vm8, %v3442_v28, %v3533_v32 }
 0x65b   : > { %v3566_v40 = vsel %vm3502_vm9, %v3444_v1, %v3534_v0 }
 0x65c   : > { %v3449_v17 = vpop.f32.mrb[80].mxu1  ;;  %v3567_v16 = vsel %vm3503_vm10, %v3446_v11, %v3535_v14  ;;  %v3623_v35 = vpack.c.bf16 %v3566_v40, %v3564_v3 }
 0x65d   : > { %v3450_v5 = vadd.f32 %v3449_v17, %v6058_v9  ;;  %v3451_v21 = vpop.f32.mrb[81].mxu1  ;;  %v3624_v44 = vpack.c.bf16 %v3567_v16, %v3565_v56 }
 0x65e   : > { %v3452_v22 = vadd.f32 %v3451_v21, %v6061_v19  ;;  %v3453_v25 = vpop.f32.mrb[82].mxu1 }
 0x65f   : > { %v3536_v8 = vmul.f32 0.01, %v3450_v5  ;;  %v3454_v31 = vadd.f32 %v3453_v25, %v6058_v9  ;;  %v3455_v54 = vpop.f32.mrb[83].mxu1  ;;  %3791 = vmatprep.mubr.bf16.mxu0 %v3624_v44  ;;  %vm3504_vm11 = vcmp.gt.f32.partialorder %v3450_v5, 0.0 }
 0x660   : > { %v3537_v18 = vmul.f32 0.01, %v3452_v22  ;;  %v3456_v30 = vadd.f32 %v3455_v54, %v6061_v19  ;;  %3792 = vmatmul.mubr.bf16.gmra.mrb[108].mxu0 %v3623_v35  ;;  %vm3505_vm12 = vcmp.gt.f32.partialorder %v3452_v22, 0.0 }
 0x661   : > { %vm3506_vm13 = vcmp.gt.f32.partialorder %v3454_v31, 0.0  ;;  %v3538_v33 = vmul.f32 0.01, %v3454_v31  ;;  %v3568_v37 = vsel %vm3504_vm11, %v3450_v5, %v3536_v8 }
 0x662   : > { %vm3507_vm14 = vcmp.gt.f32.partialorder %v3456_v30, 0.0  ;;  %v3539_v20 = vmul.f32 0.01, %v3456_v30  ;;  %v3569_v47 = vsel %vm3505_vm12, %v3452_v22, %v3537_v18 }
 0x663   : > { %v3570_v15 = vsel %vm3506_vm13, %v3454_v31, %v3538_v33 }
 0x664   : > { %v3459_v43 = vpop.f32.mrb[84].mxu1  ;;  %v3571_v45 = vsel %vm3507_vm14, %v3456_v30, %v3539_v20  ;;  %v3625_v36 = vpack.c.bf16 %v3570_v15, %v3568_v37  ;;  %v6098_v15 = vld [vmem:[%s6231_s26] ss:$0 sm:$0xff] }
 0x665   : > { %v3460_v26 = vadd.f32 %v3459_v43, %v6058_v9  ;;  %v3461_v10 = vpop.f32.mrb[85].mxu1  ;;  %v3626_v12 = vpack.c.bf16 %v3571_v45, %v3569_v47 }
 0x666   : > { %v3462_v46 = vadd.f32 %v3461_v10, %v6061_v19  ;;  %v3463_v2 = vpop.f32.mrb[86].mxu1 }
 0x667   : > { %v3540_v23 = vmul.f32 0.01, %v3460_v26  ;;  %v3464_v50 = vadd.f32 %v3463_v2, %v6058_v9  ;;  %v3465_v59 = vpop.f32.mrb[87].mxu1  ;;  %3799 = vmatprep.mubr.bf16.mxu0 %v3626_v12  ;;  %vm3508_vm15 = vcmp.gt.f32.partialorder %v3460_v26, 0.0 }
 0x668   : > { %v3541_v58 = vmul.f32 0.01, %v3462_v46  ;;  %v3466_v51 = vadd.f32 %v3465_v59, %v6061_v19  ;;  %3800 = vmatmul.mubr.bf16.gmra.mrb[112].mxu0 %v3625_v36  ;;  %vm3509_vm0 = vcmp.gt.f32.partialorder %v3462_v46, 0.0 }
 0x669   : > { %vm3510_vm3 = vcmp.gt.f32.partialorder %v3464_v50, 0.0  ;;  %v3542_v27 = vmul.f32 0.01, %v3464_v50  ;;  %v3572_v13 = vsel %vm3508_vm15, %v3460_v26, %v3540_v23 }
 0x66a   : > { %vm3511_vm4 = vcmp.gt.f32.partialorder %v3466_v51, 0.0  ;;  %v3543_v63 = vmul.f32 0.01, %v3466_v51  ;;  %v3573_v52 = vsel %vm3509_vm0, %v3462_v46, %v3541_v58 }
 0x66b   : > { %v3574_v55 = vsel %vm3510_vm3, %v3464_v50, %v3542_v27 }
 0x66c   : > { %v3469_v57 = vpop.f32.mrb[88].mxu1  ;;  %v3575_v39 = vsel %vm3511_vm4, %v3466_v51, %v3543_v63  ;;  %v3627_v62 = vpack.c.bf16 %v3574_v55, %v3572_v13 }
 0x66d   : > { %v3470_v60 = vadd.f32 %v3469_v57, %v6058_v9  ;;  %v3471_v48 = vpop.f32.mrb[89].mxu1  ;;  %v3628_v49 = vpack.c.bf16 %v3575_v39, %v3573_v52 }
 0x66e   : > { %v3472_v42 = vadd.f32 %v3471_v48, %v6061_v19  ;;  %v3473_v4 = vpop.f32.mrb[90].mxu1 }
 0x66f   : > { %v3544_v7 = vmul.f32 0.01, %v3470_v60  ;;  %v3474_v6 = vadd.f32 %v3473_v4, %v6058_v9  ;;  %v3475_v34 = vpop.f32.mrb[91].mxu1  ;;  %3807 = vmatprep.mubr.bf16.mxu0 %v3628_v49  ;;  %vm3512_vm5 = vcmp.gt.f32.partialorder %v3470_v60, 0.0 }
 0x670   : > { %v3545_v28 = vmul.f32 0.01, %v3472_v42  ;;  %v3476_v41 = vadd.f32 %v3475_v34, %v6061_v19  ;;  %3808 = vmatmul.mubr.bf16.gmra.mrb[116].mxu0 %v3627_v62  ;;  %vm3513_vm6 = vcmp.gt.f32.partialorder %v3472_v42, 0.0 }
 0x671   : > { %vm3514_vm7 = vcmp.gt.f32.partialorder %v3474_v6, 0.0  ;;  %v3546_v53 = vmul.f32 0.01, %v3474_v6  ;;  %v3576_v24 = vsel %vm3512_vm5, %v3470_v60, %v3544_v7 }
 0x672   : > { %vm3515_vm8 = vcmp.gt.f32.partialorder %v3476_v41, 0.0  ;;  %v3547_v1 = vmul.f32 0.01, %v3476_v41  ;;  %v3577_v0 = vsel %vm3513_vm6, %v3472_v42, %v3545_v28 }
 0x673   : > { %v3578_v32 = vsel %vm3514_vm7, %v3474_v6, %v3546_v53 }
 0x674   : > { %v3479_v11 = vpop.f32.mrb[92].mxu1  ;;  %v3579_v14 = vsel %vm3515_vm8, %v3476_v41, %v3547_v1  ;;  %v3629_v3 = vpack.c.bf16 %v3578_v32, %v3576_v24 }
 0x675   : > { %v3480_v40 = vadd.f32 %v3479_v11, %v6058_v9  ;;  %v3481_v17 = vpop.f32.mrb[93].mxu1  ;;  %v3630_v56 = vpack.c.bf16 %v3579_v14, %v3577_v0 }
 0x676   : > { %v3482_v16 = vadd.f32 %v3481_v17, %v6061_v19  ;;  %v3483_v35 = vpop.f32.mrb[94].mxu1 }
 0x677   : > { %v3548_v5 = vmul.f32 0.01, %v3480_v40  ;;  %v3484_v21 = vadd.f32 %v3483_v35, %v6058_v9  ;;  %v3485_v44 = vpop.f32.mrb[95].mxu1  ;;  %3815 = vmatprep.mubr.bf16.mxu0 %v3630_v56  ;;  %vm3516_vm9 = vcmp.gt.f32.partialorder %v3480_v40, 0.0  ;;  %v4881_v35 = vld [vmem:[%s5272_s23 + $0x78] sm:$0xff] }
 0x678   : > { %v3549_v22 = vmul.f32 0.01, %v3482_v16  ;;  %v3486_v25 = vadd.f32 %v3485_v44, %v6061_v19  ;;  %3816 = vmatmul.mubr.bf16.gmra.mrb[120].mxu0 %v3629_v3  ;;  %vm3517_vm10 = vcmp.gt.f32.partialorder %v3482_v16, 0.0  ;;  %v4880_v3 = vld [vmem:[%s5272_s23 + $0x70] sm:$0xff] }
 0x679   : > { %vm3518_vm11 = vcmp.gt.f32.partialorder %v3484_v21, 0.0  ;;  %v3550_v8 = vmul.f32 0.01, %v3484_v21  ;;  %v3580_v54 = vsel %vm3516_vm9, %v3480_v40, %v3548_v5  ;;  %v669_v40 = vmul.f32 0.0089, %v4880_v3 }
 0x67a   : > { %vm3519_vm12 = vcmp.gt.f32.partialorder %v3486_v25, 0.0  ;;  %v3551_v31 = vmul.f32 0.01, %v3486_v25  ;;  %v3581_v30 = vsel %vm3517_vm10, %v3482_v16, %v3549_v22  ;;  %v670_v5 = vmul.f32 0.0089, %v4881_v35 }
 0x67b   : > { %v3582_v18 = vsel %vm3518_vm11, %v3484_v21, %v3550_v8  ;;  %v733_v8 = vmul.f32 -0.0316, %v4880_v3 }
 0x67c   : > { %v3583_v33 = vsel %vm3519_vm12, %v3486_v25, %v3551_v31  ;;  %v3631_v20 = vpack.c.bf16 %v3582_v18, %v3580_v54  ;;  %v699_v25 = vmul.f32 1.442695, %v669_v40  ;;  %v701_v18 = vmul.f32 1.442695, %v670_v5  ;;  %v942_v40 = vpop.permute.xlu1 %941 }
 0x67d   : > { %v3632_v37 = vpack.c.bf16 %v3583_v33, %v3581_v30  ;;  %v734_v30 = vmul.f32 -0.0316, %v4881_v35 }
 0x67e   : > { %4871 = vpow2.f32 %v699_v25 }
 0x67f   : > { %3823 = vmatprep.mubr.bf16.mxu0 %v3632_v37  ;;  %v763_v37 = vmul.f32 1.442695, %v733_v8  ;;  %4873 = vpow2.f32 %v701_v18 }
 0x680   : > { %3824 = vmatmul.mubr.bf16.gmra.mrb[124].mxu0 %v3631_v20 }
 0x681   : > { %4875 = vpow2.f32 %v763_v37 }
 0x71b   : > { %v4373_v9 = vpop.f32.mrb[96].mxu0 }
 0x71c   : > { %v4374_v19 = vpop.f32.mrb[97].mxu0 }
 0x71d   : > { %v4375_v43 = vadd.f32 %v4374_v19, %v4373_v9  ;;  %v4376_v47 = vpop.f32.mrb[98].mxu0 }
 0x71e   : > { %v4377_v45 = vpop.f32.mrb[99].mxu0 }
 0x71f   : > { %v3770_v36 = vadd.f32 %v4375_v43, %v6098_v15  ;;  %v4378_v26 = vadd.f32 %v4377_v45, %v4376_v47  ;;  %v765_v47 = vmul.f32 1.442695, %v734_v30 }
 0x721   : > { %v3832_v10 = vmul.f32 0.001, %v3770_v36  ;;  %v3773_v12 = vadd.f32 %v4378_v26, %v6098_v15  ;;  %4877 = vpow2.f32 %v765_v47 }
 0x723   : > { %v3833_v46 = vmul.f32 0.001, %v3773_v12  ;;  %v4379_v2 = vpop.f32.mrb[100].mxu0  ;;  %3850 = vperm.xlu0 %4477, %v3832_v10  }
 0x724   : > { %v4380_v23 = vpop.f32.mrb[101].mxu0 }
 0x725   : > { %v4381_v50 = vadd.f32 %v4380_v23, %v4379_v2  ;;  %v4382_v59 = vpop.f32.mrb[102].mxu0  ;;  %3855 = vperm.xlu1 %4488, %v3833_v46  }
 0x726   : > { %v4383_v58 = vpop.f32.mrb[103].mxu0 }
 0x727   : > { %v3778_v51 = vadd.f32 %v4381_v50, %v6098_v15  ;;  %v4384_v27 = vadd.f32 %v4383_v58, %v4382_v59  ;;  %v4872_v58 = vpop.eup %4871 }
 0x729   : > { %v3834_v63 = vmul.f32 0.001, %v3778_v51  ;;  %v3781_v13 = vadd.f32 %v4384_v27, %v6098_v15 }
 0x72b   : > { %v3835_v55 = vmul.f32 0.001, %v3781_v13  ;;  %v4385_v57 = vpop.f32.mrb[104].mxu0  ;;  %3860 = vperm.xlu0 %4477, %v3834_v63   ;;  %v4874_v13 = vpop.eup %4873 }
 0x72c   : > { %v4386_v52 = vpop.f32.mrb[105].mxu0 }
 0x72d   : > { %v4387_v39 = vadd.f32 %v4386_v52, %v4385_v57  ;;  %v4388_v62 = vpop.f32.mrb[106].mxu0  ;;  %3865 = vperm.xlu1 %4488, %v3835_v55   ;;  %v717_v55 = vmul.f32 0.0873, %v4872_v58 }
 0x72e   : > { %v4389_v60 = vpop.f32.mrb[107].mxu0 }
 0x72f   : > { %v3786_v48 = vadd.f32 %v4387_v39, %v6098_v15  ;;  %v4390_v49 = vadd.f32 %v4389_v60, %v4388_v62  ;;  %v4876_v39 = vpop.eup %4875  ;;  %v718_v62 = vmul.f32 0.0873, %v4874_v13 }
 0x731   : > { %v3836_v42 = vmul.f32 0.001, %v3786_v48  ;;  %v3789_v4 = vadd.f32 %v4390_v49, %v6098_v15  ;;  %v4878_v49 = vpop.eup %4877 }
 0x733   : > { %v3837_v7 = vmul.f32 0.001, %v3789_v4  ;;  %v4391_v6 = vpop.f32.mrb[108].mxu0  ;;  %3870 = vperm.xlu0 %4477, %v3836_v42   ;;  %v797_v4 = vsub.f32 0.0, %v717_v55 }
 0x734   : > { %v4392_v34 = vpop.f32.mrb[109].mxu0 }
 0x735   : > { %v4393_v28 = vadd.f32 %v4392_v34, %v4391_v6  ;;  %v4394_v41 = vpop.f32.mrb[110].mxu0  ;;  %3875 = vperm.xlu1 %4488, %v3837_v7   ;;  %v781_v7 = vmul.f32 0.0052, %v4876_v39 }
 0x736   : > { %v4395_v53 = vpop.f32.mrb[111].mxu0 }
 0x737   : > { %v3794_v1 = vadd.f32 %v4393_v28, %v6098_v15  ;;  %v4396_v24 = vadd.f32 %v4395_v53, %v4394_v41  ;;  %v798_v41 = vsub.f32 0.0, %v718_v62  ;;  %v782_v53 = vmul.f32 0.0052, %v4878_v49 }
 0x739   : > { %v3838_v32 = vmul.f32 0.001, %v3794_v1  ;;  %v3797_v11 = vadd.f32 %v4396_v24, %v6098_v15 }
 0x73b   : > { %v3839_v0 = vmul.f32 0.001, %v3797_v11  ;;  %v4397_v14 = vpop.f32.mrb[112].mxu0  ;;  %3880 = vperm.xlu0 %4477, %v3838_v32   ;;  %v940_v32 = vpop.permute.xlu0 %939  ;;  %v877_v11 = vmul.f32 %v5657_v38, %v797_v4 }
 0x73c   : > { %v4398_v17 = vpop.f32.mrb[113].mxu0 }
 0x73d   : > { %v4399_v56 = vadd.f32 %v4398_v17, %v4397_v14  ;;  %v4400_v16 = vpop.f32.mrb[114].mxu0  ;;  %3885 = vperm.xlu1 %4488, %v3839_v0   ;;  %v973_v0 = vmul.f32 %v940_v32, %v781_v7  ;;  %v878_v17 = vmul.f32 %v5653_v29, %v798_v41 }
 0x73e   : > { %v4401_v21 = vpop.f32.mrb[115].mxu0 }
 0x73f   : > { %v3802_v44 = vadd.f32 %v4399_v56, %v6098_v15  ;;  %v4402_v22 = vadd.f32 %v4401_v21, %v4400_v16  ;;  %v974_v56 = vmul.f32 %v942_v40, %v782_v53  ;;  %v989_v35 = vadd.f32 %v973_v0, %v877_v11  ;;  %v3931_v21 = vpop.permute.xlu0 %3930 }
 0x741   : > { %v3840_v31 = vmul.f32 0.001, %v3802_v44  ;;  %v3805_v54 = vadd.f32 %v4402_v22, %v6098_v15  ;;  %v990_v5 = vadd.f32 %v974_v56, %v878_v17  ;;  %v3936_v44 = vpop.permute.xlu1 %3935 }
 0x743   : > { %v3841_v33 = vmul.f32 0.001, %v3805_v54  ;;  %v4403_v20 = vpop.f32.mrb[116].mxu0  ;;  %3890 = vperm.xlu0 %4477, %v3840_v31   ;;  %v3941_v22 = vpop.permute.xlu0 %3940 }
 0x744   : > { %v4404_v9 = vpop.f32.mrb[117].mxu0 }
 0x745   : > { %v4405_v19 = vadd.f32 %v4404_v9, %v4403_v20  ;;  %v4406_v43 = vpop.f32.mrb[118].mxu0  ;;  %3895 = vperm.xlu1 %4488, %v3841_v33   ;;  %v3946_v38 = vpop.permute.xlu1 %3945 }
 0x746   : > { %v4407_v45 = vpop.f32.mrb[119].mxu0 }
 0x747   : > { %v3810_v36 = vadd.f32 %v4405_v19, %v6098_v15  ;;  %v4408_v26 = vadd.f32 %v4407_v45, %v4406_v43  ;;  %v3951_v25 = vpop.permute.xlu0 %3950 }
 0x749   : > { %v3842_v10 = vmul.f32 0.001, %v3810_v36  ;;  %v3813_v12 = vadd.f32 %v4408_v26, %v6098_v15  ;;  %v3956_v8 = vpop.permute.xlu1 %3955 }
 0x74b   : > { %v3843_v46 = vmul.f32 0.001, %v3813_v12  ;;  %v4409_v2 = vpop.f32.mrb[120].mxu0  ;;  %3900 = vperm.xlu0 %4477, %v3842_v10   ;;  %v3961_v31 = vpop.permute.xlu0 %3960 }
 0x74c   : > { %v4410_v23 = vpop.f32.mrb[121].mxu0 }
 0x74d   : > { %v4411_v50 = vadd.f32 %v4410_v23, %v4409_v2  ;;  %v4412_v59 = vpop.f32.mrb[122].mxu0  ;;  %3905 = vperm.xlu1 %4488, %v3843_v46  }
 0x74e   : > { %v4413_v51 = vpop.f32.mrb[123].mxu0 }
 0x74f   : > { %v3818_v27 = vadd.f32 %v4411_v50, %v6098_v15  ;;  %v4414_v63 = vadd.f32 %v4413_v51, %v4412_v59  ;;  %v3971_v54 = vpop.permute.xlu0 %3970 }
 0x751   : > { %v3844_v57 = vmul.f32 0.001, %v3818_v27  ;;  %v3821_v52 = vadd.f32 %v4414_v63, %v6098_v15 }
 0x753   : > { %v3845_v60 = vmul.f32 0.001, %v3821_v52  ;;  %v4415_v48 = vpop.f32.mrb[124].mxu0  ;;  %3910 = vperm.xlu0 %4477, %v3844_v57   ;;  %v3981_v29 = vpop.permute.xlu0 %3980 }
 0x754   : > { %v4416_v42 = vpop.f32.mrb[125].mxu0 }
 0x755   : > { %v4417_v6 = vadd.f32 %v4416_v42, %v4415_v48  ;;  %v4418_v34 = vpop.f32.mrb[126].mxu0  ;;  %3915 = vperm.xlu1 %4488, %v3845_v60  }
 0x756   : > { %v4419_v28 = vpop.f32.mrb[127].mxu0 }
 0x757   : > { %v3826_v1 = vadd.f32 %v4417_v6, %v6098_v15  ;;  %v4420_v24 = vadd.f32 %v4419_v28, %v4418_v34  ;;  %v3991_v33 = vpop.permute.xlu0 %3990 }
 0x759   : > { %v3846_v14 = vmul.f32 0.001, %v3826_v1  ;;  %v3829_v3 = vadd.f32 %v4420_v24, %v6098_v15  ;;  %v3966_v15 = vpop.permute.xlu1 %3965 }
 0x75b   : > { %v3847_v16 = vmul.f32 0.001, %v3829_v3  ;;  %3920 = vperm.xlu0 %4477, %v3846_v14  }
 0x75d   : > { %3925 = vperm.xlu1 %4488, %v3847_v16   ;;  %v3976_v18 = vpop.permute.xlu1 %3975 }
 0x75f   : > { %4000 = vperm.xlu0 %4477, %v989_v35  }
 0x761   : > { %4005 = vperm.xlu1 %4488, %v990_v5   ;;  %v3986_v30 = vpop.permute.xlu1 %3985 }
 0x765   : > { %v3996_v20 = vpop.permute.xlu1 %3995 }
 0x7a2   : > { %v3851_v37 = vpop.permute.xlu0 %3850 }
 0x7a3   : > { %v4008_v9 = vsel %vm993_vm1, %v3851_v37, %v3931_v21 }
 0x7a4   : > { %4024 = vst.msk [vmem:[%s6124_s13] sm:$0xff] %vm1198_vm2, %v4008_v9  ;;  %v3856_v19 = vpop.permute.xlu1 %3855 }
 0x7a5   : > { %v4009_v43 = vsel %vm993_vm1, %v3856_v19, %v3936_v44 }
 0x7a6   : > { %4025 = vst.msk [vmem:[%s6124_s13 + $0x8] sm:$0xff] %vm1198_vm2, %v4009_v43 }
 0x7aa   : > { %v3861_v47 = vpop.permute.xlu0 %3860 }
 0x7ab   : > { %v4010_v45 = vsel %vm993_vm1, %v3861_v47, %v3941_v22 }
 0x7ac   : > { %4026 = vst.msk [vmem:[%s6124_s13 + $0x10] sm:$0xff] %vm1198_vm2, %v4010_v45  ;;  %v3866_v36 = vpop.permute.xlu1 %3865 }
 0x7ad   : > { %v4011_v26 = vsel %vm993_vm1, %v3866_v36, %v3946_v38 }
 0x7ae   : > { %4027 = vst.msk [vmem:[%s6124_s13 + $0x18] sm:$0xff] %vm1198_vm2, %v4011_v26 }
 0x7b2   : > { %v3871_v10 = vpop.permute.xlu0 %3870 }
 0x7b3   : > { %v4012_v12 = vsel %vm993_vm1, %v3871_v10, %v3951_v25 }
 0x7b4   : > { %4028 = vst.msk [vmem:[%s6124_s13 + $0x20] sm:$0xff] %vm1198_vm2, %v4012_v12  ;;  %v3876_v46 = vpop.permute.xlu1 %3875 }
 0x7b5   : > { %v4013_v2 = vsel %vm993_vm1, %v3876_v46, %v3956_v8 }
 0x7b6   : > { %4029 = vst.msk [vmem:[%s6124_s13 + $0x28] sm:$0xff] %vm1198_vm2, %v4013_v2 }
 0x7ba   : > { %v3881_v23 = vpop.permute.xlu0 %3880 }
 0x7bb   : > { %v4014_v50 = vsel %vm993_vm1, %v3881_v23, %v3961_v31 }
 0x7bc   : > { %4030 = vst.msk [vmem:[%s6124_s13 + $0x30] sm:$0xff] %vm1198_vm2, %v4014_v50  ;;  %v3886_v59 = vpop.permute.xlu1 %3885 }
 0x7bd   : > { %v4015_v58 = vsel %vm993_vm1, %v3886_v59, %v3966_v15 }
 0x7be   : > { %4031 = vst.msk [vmem:[%s6124_s13 + $0x38] sm:$0xff] %vm1198_vm2, %v4015_v58 }
 0x7c2   : > { %v3891_v51 = vpop.permute.xlu0 %3890 }
 0x7c3   : > { %v4016_v27 = vsel %vm993_vm1, %v3891_v51, %v3971_v54 }
 0x7c4   : > { %4032 = vst.msk [vmem:[%s6124_s13 + $0x40] sm:$0xff] %vm1198_vm2, %v4016_v27  ;;  %v3896_v63 = vpop.permute.xlu1 %3895 }
 0x7c5   : > { %v4017_v13 = vsel %vm993_vm1, %v3896_v63, %v3976_v18 }
 0x7c6   : > { %4033 = vst.msk [vmem:[%s6124_s13 + $0x48] sm:$0xff] %vm1198_vm2, %v4017_v13 }
 0x7ca   : > { %v3901_v55 = vpop.permute.xlu0 %3900 }
 0x7cb   : > { %v4018_v57 = vsel %vm993_vm1, %v3901_v55, %v3981_v29 }
 0x7cc   : > { %4034 = vst.msk [vmem:[%s6124_s13 + $0x50] sm:$0xff] %vm1198_vm2, %v4018_v57  ;;  %v3906_v52 = vpop.permute.xlu1 %3905 }
 0x7cd   : > { %v4019_v39 = vsel %vm993_vm1, %v3906_v52, %v3986_v30 }
 0x7ce   : > { %4035 = vst.msk [vmem:[%s6124_s13 + $0x58] sm:$0xff] %vm1198_vm2, %v4019_v39 }
 0x7d2   : > { %v3911_v62 = vpop.permute.xlu0 %3910 }
 0x7d3   : > { %v4020_v60 = vsel %vm993_vm1, %v3911_v62, %v3991_v33 }
 0x7d4   : > { %4036 = vst.msk [vmem:[%s6124_s13 + $0x60] sm:$0xff] %vm1198_vm2, %v4020_v60  ;;  %v3916_v48 = vpop.permute.xlu1 %3915 }
 0x7d5   : > { %v4021_v49 = vsel %vm993_vm1, %v3916_v48, %v3996_v20 }
 0x7d6   : > { %4037 = vst.msk [vmem:[%s6124_s13 + $0x68] sm:$0xff] %vm1198_vm2, %v4021_v49 }
 0x7da   : > { %v3921_v42 = vpop.permute.xlu0 %3920 }
 0x7dc   : > { %v3926_v4 = vpop.permute.xlu1 %3925 }
 0x7de   : > { %v4001_v7 = vpop.permute.xlu0 %4000 }
 0x7df   : > { %v4022_v6 = vsel %vm993_vm1, %v3921_v42, %v4001_v7 }
 0x7e0   : > { %4038 = vst.msk [vmem:[%s6124_s13 + $0x70] sm:$0xff] %vm1198_vm2, %v4022_v6  ;;  %v4006_v34 = vpop.permute.xlu1 %4005 }
 0x7e1   : > { %v4023_v28 = vsel %vm993_vm1, %v3926_v4, %v4006_v34 }
 0x7e2   : > { %4039 = vst.msk [vmem:[%s6124_s13 + $0x78] sm:$0xff] %vm1198_vm2, %v4023_v28 }
 0x7e3 PF: > { %s29_s21 = sadd.s32 1, %s5012_s21  }
 0x7e4   : > { %p26_p3 = scmp.ge.s32.totalorder %s29_s21, 4  }
 0x7e6   :  { %28 = sbr.rel (!%p26_p3) target bundleno = 10 (0xa), region = 134 }
 0x7ed   :  { %4062 = vsyncpa [#allocation3], 1 }
 0x7ee   :  { %4064 = vsyncpa [#allocation3 + $0x1], 1 }
 0x7ef   :  { %4065 = vsyncpa [#allocation5], 1 }
 0x7f0   :  { %4066 = vsyncpa [#allocation8], 1 }

</bundles_post_ra>
